<compile_context>
chip_gen: v6e
topology: v6e:2x2x1
jax: 0.10.0
libtpu: 0.0.40
codegen_flags: <defaults>
</compile_context>

<pallas_src>
import numpy as np
import jax
import jax.numpy as jnp
from jax import lax
from jax.experimental import pallas as pl
from jax.experimental.pallas import tpu as pltpu

CONV_CFG = ((32, 8, 4), (64, 4, 2), (64, 3, 1))   # (out_channels, kernel, stride)
FC_HIDDEN = 512


def _conv_out(n, k, s):
    return (n - k) // s + 1


def features_size(H, W):
    h, w = H, W
    for _, k, s in CONV_CFG:
        h, w = _conv_out(h, k, s), _conv_out(w, k, s)
    return CONV_CFG[-1][0] * h * w


# ----------------------------------------------------------------------------
# Parameters in PyTorch layout (deterministic init, shapes match the nn.Module)
# ----------------------------------------------------------------------------
def init_params(key, in_channels, feat_size, num_actions):
    def uinit(k, shape, fan_in):
        bound = 1.0 / np.sqrt(float(fan_in))
        return jax.random.uniform(k, shape, jnp.float32, -bound, bound)

    (oc1, k1, _), (oc2, k2, _), (oc3, k3, _) = CONV_CFG
    ks = jax.random.split(key, 10)
    return {
        "c1w": uinit(ks[0], (oc1, in_channels, k1, k1), in_channels * k1 * k1),
        "c1b": uinit(ks[1], (oc1,), in_channels * k1 * k1),
        "c2w": uinit(ks[2], (oc2, oc1, k2, k2), oc1 * k2 * k2),
        "c2b": uinit(ks[3], (oc2,), oc1 * k2 * k2),
        "c3w": uinit(ks[4], (oc3, oc2, k3, k3), oc2 * k3 * k3),
        "c3b": uinit(ks[5], (oc3,), oc2 * k3 * k3),
        "f1w": uinit(ks[6], (FC_HIDDEN, feat_size), feat_size),
        "f1b": uinit(ks[7], (FC_HIDDEN,), feat_size),
        "f2w": uinit(ks[8], (num_actions, FC_HIDDEN), FC_HIDDEN),
        "f2b": uinit(ks[9], (num_actions,), FC_HIDDEN),
    }


# ----------------------------------------------------------------------------
# One-time weight / selection-matrix preparation (outside the jitted forward)
# ----------------------------------------------------------------------------
def _selection(oh, ow, h_in, w_in, stride, kh, kw):
    """One-hot (oh*ow, h_in*w_in) matrix: output row (i, j) gathers input row
    (stride*i + kh) * w_in + (stride*j + kw).  Turns patch gather into a matmul."""
    S = np.zeros((oh * ow, h_in * w_in), np.float32)
    for i in range(oh):
        for j in range(ow):
            S[i * ow + j, (stride * i + kh) * w_in + (stride * j + kw)] = 1.0
    return S


def prepare_params(params, input_chw, num_actions):
    C, H, W = input_chw
    (oc1, k1, s1), (oc2, k2, s2), (oc3, k3, s3) = CONV_CFG
    assert k1 % s1 == 0 and (H - k1) % s1 == 0 and (W - k1) % s1 == 0, \
        "conv1 stride-blocking requires stride | kernel and clean output size"
    OH1, OW1 = _conv_out(H, k1, s1), _conv_out(W, k1, s1)
    OH2, OW2 = _conv_out(OH1, k2, s2), _conv_out(OW1, k2, s2)
    OH3, OW3 = _conv_out(OH2, k3, s3), _conv_out(OW2, k3, s3)
    Hb, Wb = H // s1, W // s1
    q1 = k1 // s1

    # conv1: stride-blocked input -> only (k1/s1)^2 offsets over (Hb, Wb) block grid.
    S1 = np.stack([_selection(OH1, OW1, Hb, Wb, 1, qh, qw)
                   for qh in range(q1) for qw in range(q1)])
    w1t = np.asarray(params["c1w"]).transpose(2, 3, 1, 0)          # (k1,k1,C,oc1)
    W1 = np.stack([w1t[s1 * qh:s1 * qh + s1, s1 * qw:s1 * qw + s1]
                   .reshape(s1 * s1 * C, oc1)
                   for qh in range(q1) for qw in range(q1)])       # (q1*q1, s1*s1*C, oc1)

    S2 = np.stack([_selection(OH2, OW2, OH1, OW1, s2, kh, kw)
                   for kh in range(k2) for kw in range(k2)])
    W2 = np.asarray(params["c2w"]).transpose(2, 3, 1, 0).reshape(k2 * k2, oc1, oc2)

    S3 = np.stack([_selection(OH3, OW3, OH2, OW2, s3, kh, kw)
                   for kh in range(k3) for kw in range(k3)])
    W3 = np.asarray(params["c3w"]).transpose(2, 3, 1, 0).reshape(k3 * k3, oc2, oc3)

    # fc1: fold PyTorch's (C, H, W)-flatten order into the weight layout.
    R3 = OH3 * OW3
    f1w = np.asarray(params["f1w"])                                # (512, oc3*R3)
    Wf1 = f1w.reshape(f1w.shape[0], oc3, R3).transpose(2, 1, 0)    # (R3, oc3, 512)
    Wf2 = np.asarray(params["f2w"]).T                              # (512, NA)

    bf16, f32 = jnp.bfloat16, jnp.float32
    return {
        "S1": jnp.asarray(S1, bf16), "W1": jnp.asarray(W1, bf16),
        "b1": jnp.asarray(params["c1b"], f32).reshape(1, oc1),
        "S2": jnp.asarray(S2, bf16), "W2": jnp.asarray(W2, bf16),
        "b2": jnp.asarray(params["c2b"], f32).reshape(1, oc2),
        "S3": jnp.asarray(S3, bf16), "W3": jnp.asarray(W3, bf16),
        "b3": jnp.asarray(params["c3b"], f32).reshape(1, oc3),
        "Wf1": jnp.asarray(Wf1, bf16),
        "bf1": jnp.asarray(params["f1b"], f32).reshape(1, -1),
        "Wf2": jnp.asarray(Wf2, bf16),
        "bf2": jnp.asarray(params["f2b"], f32).reshape(1, num_actions),
    }


# ----------------------------------------------------------------------------
# Fused Pallas kernel: whole network for one batch element per grid step
# ----------------------------------------------------------------------------
def _fused_kernel(x_ref, s1_ref, w1_ref, b1_ref, s2_ref, w2_ref, b2_ref,
                  s3_ref, w3_ref, b3_ref, wf1_ref, bf1_ref, wf2_ref, bf2_ref,
                  o_ref):
    bf16, f32 = jnp.bfloat16, jnp.float32

    def conv_layer(act_bf, s_ref, w_ref, b_ref):
        # relu( sum_t (S_t @ act) @ W_t + b ): patch gather + conv both on the MXU.
        acc = None
        for t in range(s_ref.shape[0]):
            gathered = jnp.dot(s_ref[t], act_bf, preferred_element_type=f32)
            term = jnp.dot(gathered.astype(bf16), w_ref[t],
                           preferred_element_type=f32)
            acc = term if acc is None else acc + term
        return jnp.maximum(acc + b_ref[...], 0.0)

    h1 = conv_layer(x_ref[0], s1_ref, w1_ref, b1_ref)              # (OH1*OW1, 32) f32
    h2 = conv_layer(h1.astype(bf16), s2_ref, w2_ref, b2_ref)       # (OH2*OW2, 64)
    h3 = conv_layer(h2.astype(bf16), s3_ref, w3_ref, b3_ref)       # (OH3*OW3, 64)

    # fc1: contraction over conv3 rows and channels (flatten order folded into Wf1).
    h3b = h3.astype(bf16)
    acc = None
    for r in range(wf1_ref.shape[0]):
        term = jnp.dot(h3b[r:r + 1, :], wf1_ref[r], preferred_element_type=f32)
        acc = term if acc is None else acc + term
    h4 = jnp.maximum(acc + bf1_ref[...], 0.0)                      # (1, 512)

    # fc2 + softmax (f32 epilogue).
    logits = jnp.dot(h4.astype(bf16), wf2_ref[...],
                     preferred_element_type=f32) + bf2_ref[...]    # (1, NA)
    m = jnp.max(logits, axis=-1, keepdims=True)
    e = jnp.exp(logits - m)
    denom = jnp.sum(e, axis=-1, keepdims=True)
    o_ref[0] = e * pl.reciprocal(denom, approx=True)


def _full_spec(a):
    zeros = (0,) * a.ndim
    return pl.BlockSpec(a.shape, lambda b: zeros)      # same block every grid step


@jax.jit
def action_model_forward(prep, x):
    """x: (B, C, H, W) float32 NCHW  ->  (B, num_actions) action probabilities."""
    B, C, H, W = x.shape
    s1 = CONV_CFG[0][2]
    Hb, Wb = H // s1, W // s1
    # Single non-duplicating relayout: NCHW -> stride-blocked channels-last 2-D matrix
    # (B, Hb*Wb, s1*s1*C); rows = (hb, wb) blocks, cols = (rh, rw, c).
    xb = x.transpose(0, 2, 3, 1).reshape(B, Hb, s1, Wb, s1, C)
    xb = xb.transpose(0, 1, 3, 2, 4, 5).reshape(B, Hb * Wb, s1 * s1 * C)
    xb = xb.astype(jnp.bfloat16)

    NA = prep["bf2"].shape[1]
    order = ("S1", "W1", "b1", "S2", "W2", "b2", "S3", "W3", "b3",
             "Wf1", "bf1", "Wf2", "bf2")
    operands = [prep[k] for k in order]

    out = pl.pallas_call(
        _fused_kernel,
        out_shape=jax.ShapeDtypeStruct((B, 1, NA), jnp.float32),
        grid=(B,),
        in_specs=[pl.BlockSpec((1, Hb * Wb, s1 * s1 * C), lambda b: (b, 0, 0))]
                 + [_full_spec(a) for a in operands],
        out_specs=pl.BlockSpec((1, 1, NA), lambda b: (b, 0, 0)),
        compiler_params=pltpu.CompilerParams(dimension_semantics=("parallel",)),
    )(xb, *operands)
    return out[:, 0, :]


# ----------------------------------------------------------------------------
# Pure-JAX f32 reference (same PyTorch-layout params) for validation
# ----------------------------------------------------------------------------
def reference_forward(params, x):
    def conv(v, w, b, s):
        y = lax.conv_general_dilated(v, w, (s, s), "VALID",
                                     dimension_numbers=("NCHW", "OIHW", "NCHW"))
        return jax.nn.relu(y + b[None, :, None, None])

    strides = [c[2] for c in CONV_CFG]
    v = conv(x, params["c1w"], params["c1b"], strides[0])
    v = conv(v, params["c2w"], params["c2b"], strides[1])
    v = conv(v, params["c3w"], params["c3b"], strides[2])
    flat = v.reshape(v.shape[0], -1)
    h = jax.nn.relu(flat @ params["f1w"].T + params["f1b"])
    logits = h @ params["f2w"].T + params["f2b"]
    return jax.nn.softmax(logits, axis=-1)


if __name__ == "__main__":
    # Smallest clean spatial size for the 8/4, 4/2, 3/1 conv stack is 36x36.
    B, C, H, W = 2, 4, 36, 36
    NUM_ACTIONS = 6

    key = jax.random.PRNGKey(0)
    kx, kp = jax.random.split(key)
    x = jax.random.normal(kx, (B, C, H, W), jnp.float32)

    params = init_params(kp, C, features_size(H, W), NUM_ACTIONS)
    prep = prepare_params(params, (C, H, W), NUM_ACTIONS)

    probs = jax.block_until_ready(action_model_forward(prep, x))

    assert probs.shape == (B, NUM_ACTIONS)
    assert bool(jnp.all(jnp.isfinite(probs)))
    # approx reciprocal in the softmax => slightly relaxed row-sum tolerance
    assert bool(jnp.allclose(jnp.sum(probs, axis=-1), 1.0, atol=2e-3))

    # Cross-check against the plain-JAX f32 reference (bf16 MXU operands => loose tol).
    ref = jax.block_until_ready(reference_forward(params, x))
    assert bool(jnp.max(jnp.abs(probs - ref)) < 5e-2)

    print("KERNEL_OK")
</pallas_src>

<mosaic_0001>
module attributes {stable_mosaic.version = 11 : i64} {
  func.func @_fused_kernel(%arg0: i32, %arg1: memref<1x81x64xbf16, #tpu.memory_space<vmem>>, %arg2: memref<4x64x81xbf16, #tpu.memory_space<vmem>>, %arg3: memref<4x64x32xbf16, #tpu.memory_space<vmem>>, %arg4: memref<1x32xf32, #tpu.memory_space<vmem>>, %arg5: memref<16x9x64xbf16, #tpu.memory_space<vmem>>, %arg6: memref<16x32x64xbf16, #tpu.memory_space<vmem>>, %arg7: memref<1x64xf32, #tpu.memory_space<vmem>>, %arg8: memref<9x1x9xbf16, #tpu.memory_space<vmem>>, %arg9: memref<9x64x64xbf16, #tpu.memory_space<vmem>>, %arg10: memref<1x64xf32, #tpu.memory_space<vmem>>, %arg11: memref<1x64x512xbf16, #tpu.memory_space<vmem>>, %arg12: memref<1x512xf32, #tpu.memory_space<vmem>>, %arg13: memref<512x6xbf16, #tpu.memory_space<vmem>>, %arg14: memref<1x6xf32, #tpu.memory_space<vmem>>, %arg15: memref<1x1x6xf32, #tpu.memory_space<vmem>>) attributes {dimension_semantics = [#tpu.dimension_semantics<parallel>], iteration_bounds = array<i64: 2>, scalar_prefetch = 0 : i64, scratch_operands = 0 : i64, tpu.core_type = #tpu.core_type<tc>, window_params = [{transform_indices = @transform_0, window_bounds = array<i64: 1, 81, 64>}, {pipeline_mode = #tpu.pipeline_mode<synchronous>, transform_indices = @transform_1, window_bounds = array<i64: 4, 64, 81>}, {pipeline_mode = #tpu.pipeline_mode<synchronous>, transform_indices = @transform_2, window_bounds = array<i64: 4, 64, 32>}, {pipeline_mode = #tpu.pipeline_mode<synchronous>, transform_indices = @transform_3, window_bounds = array<i64: 1, 32>}, {pipeline_mode = #tpu.pipeline_mode<synchronous>, transform_indices = @transform_4, window_bounds = array<i64: 16, 9, 64>}, {pipeline_mode = #tpu.pipeline_mode<synchronous>, transform_indices = @transform_5, window_bounds = array<i64: 16, 32, 64>}, {pipeline_mode = #tpu.pipeline_mode<synchronous>, transform_indices = @transform_6, window_bounds = array<i64: 1, 64>}, {pipeline_mode = #tpu.pipeline_mode<synchronous>, transform_indices = @transform_7, window_bounds = array<i64: 9, 1, 9>}, {pipeline_mode = #tpu.pipeline_mode<synchronous>, transform_indices = @transform_8, window_bounds = array<i64: 9, 64, 64>}, {pipeline_mode = #tpu.pipeline_mode<synchronous>, transform_indices = @transform_9, window_bounds = array<i64: 1, 64>}, {pipeline_mode = #tpu.pipeline_mode<synchronous>, transform_indices = @transform_10, window_bounds = array<i64: 1, 64, 512>}, {pipeline_mode = #tpu.pipeline_mode<synchronous>, transform_indices = @transform_11, window_bounds = array<i64: 1, 512>}, {pipeline_mode = #tpu.pipeline_mode<synchronous>, transform_indices = @transform_12, window_bounds = array<i64: 512, 6>}, {pipeline_mode = #tpu.pipeline_mode<synchronous>, transform_indices = @transform_13, window_bounds = array<i64: 1, 6>}, {transform_indices = @transform_14, window_bounds = array<i64: 1, 1, 6>}]} {
    %c0 = arith.constant 0 : index
    %c0_0 = arith.constant 0 : index
    %c0_1 = arith.constant 0 : index
    %0 = vector.load %arg1[%c0, %c0_0, %c0_1] : memref<1x81x64xbf16, #tpu.memory_space<vmem>>, vector<1x81x64xbf16>
    %1 = vector.shape_cast %0 : vector<1x81x64xbf16> to vector<81x64xbf16>
    %c0_2 = arith.constant 0 : index
    %c0_3 = arith.constant 0 : index
    %c0_4 = arith.constant 0 : index
    %2 = vector.load %arg2[%c0_2, %c0_3, %c0_4] : memref<4x64x81xbf16, #tpu.memory_space<vmem>>, vector<1x64x81xbf16>
    %3 = vector.shape_cast %2 : vector<1x64x81xbf16> to vector<64x81xbf16>
    %cst = arith.constant dense<0.000000e+00> : vector<64x64xf32>
    %4 = tpu.matmul %3, %1, %cst {dimension_numbers = #tpu.dot_dimension_numbers<[1], [0], [0], [1], [0, 0, 1, 1], [], []>} : vector<64x81xbf16>, vector<81x64xbf16>, vector<64x64xf32> -> vector<64x64xf32>
    %5 = arith.truncf %4 : vector<64x64xf32> to vector<64x64xbf16>
    %c0_5 = arith.constant 0 : index
    %c0_6 = arith.constant 0 : index
    %c0_7 = arith.constant 0 : index
    %6 = vector.load %arg3[%c0_5, %c0_6, %c0_7] : memref<4x64x32xbf16, #tpu.memory_space<vmem>>, vector<1x64x32xbf16>
    %7 = vector.shape_cast %6 : vector<1x64x32xbf16> to vector<64x32xbf16>
    %cst_8 = arith.constant dense<0.000000e+00> : vector<64x32xf32>
    %8 = tpu.matmul %5, %7, %cst_8 {dimension_numbers = #tpu.dot_dimension_numbers<[1], [0], [0], [1], [0, 0, 1, 1], [], []>} : vector<64x64xbf16>, vector<64x32xbf16>, vector<64x32xf32> -> vector<64x32xf32>
    %c1 = arith.constant 1 : index
    %c0_9 = arith.constant 0 : index
    %c0_10 = arith.constant 0 : index
    %9 = vector.load %arg2[%c1, %c0_9, %c0_10] : memref<4x64x81xbf16, #tpu.memory_space<vmem>>, vector<1x64x81xbf16>
    %10 = vector.shape_cast %9 : vector<1x64x81xbf16> to vector<64x81xbf16>
    %cst_11 = arith.constant dense<0.000000e+00> : vector<64x64xf32>
    %11 = tpu.matmul %10, %1, %cst_11 {dimension_numbers = #tpu.dot_dimension_numbers<[1], [0], [0], [1], [0, 0, 1, 1], [], []>} : vector<64x81xbf16>, vector<81x64xbf16>, vector<64x64xf32> -> vector<64x64xf32>
    %12 = arith.truncf %11 : vector<64x64xf32> to vector<64x64xbf16>
    %c1_12 = arith.constant 1 : index
    %c0_13 = arith.constant 0 : index
    %c0_14 = arith.constant 0 : index
    %13 = vector.load %arg3[%c1_12, %c0_13, %c0_14] : memref<4x64x32xbf16, #tpu.memory_space<vmem>>, vector<1x64x32xbf16>
    %14 = vector.shape_cast %13 : vector<1x64x32xbf16> to vector<64x32xbf16>
    %cst_15 = arith.constant dense<0.000000e+00> : vector<64x32xf32>
    %15 = tpu.matmul %12, %14, %cst_15 {dimension_numbers = #tpu.dot_dimension_numbers<[1], [0], [0], [1], [0, 0, 1, 1], [], []>} : vector<64x64xbf16>, vector<64x32xbf16>, vector<64x32xf32> -> vector<64x32xf32>
    %16 = arith.addf %8, %15 : vector<64x32xf32>
    %c2 = arith.constant 2 : index
    %c0_16 = arith.constant 0 : index
    %c0_17 = arith.constant 0 : index
    %17 = vector.load %arg2[%c2, %c0_16, %c0_17] : memref<4x64x81xbf16, #tpu.memory_space<vmem>>, vector<1x64x81xbf16>
    %18 = vector.shape_cast %17 : vector<1x64x81xbf16> to vector<64x81xbf16>
    %cst_18 = arith.constant dense<0.000000e+00> : vector<64x64xf32>
    %19 = tpu.matmul %18, %1, %cst_18 {dimension_numbers = #tpu.dot_dimension_numbers<[1], [0], [0], [1], [0, 0, 1, 1], [], []>} : vector<64x81xbf16>, vector<81x64xbf16>, vector<64x64xf32> -> vector<64x64xf32>
    %20 = arith.truncf %19 : vector<64x64xf32> to vector<64x64xbf16>
    %c2_19 = arith.constant 2 : index
    %c0_20 = arith.constant 0 : index
    %c0_21 = arith.constant 0 : index
    %21 = vector.load %arg3[%c2_19, %c0_20, %c0_21] : memref<4x64x32xbf16, #tpu.memory_space<vmem>>, vector<1x64x32xbf16>
    %22 = vector.shape_cast %21 : vector<1x64x32xbf16> to vector<64x32xbf16>
    %cst_22 = arith.constant dense<0.000000e+00> : vector<64x32xf32>
    %23 = tpu.matmul %20, %22, %cst_22 {dimension_numbers = #tpu.dot_dimension_numbers<[1], [0], [0], [1], [0, 0, 1, 1], [], []>} : vector<64x64xbf16>, vector<64x32xbf16>, vector<64x32xf32> -> vector<64x32xf32>
    %24 = arith.addf %16, %23 : vector<64x32xf32>
    %c3 = arith.constant 3 : index
    %c0_23 = arith.constant 0 : index
    %c0_24 = arith.constant 0 : index
    %25 = vector.load %arg2[%c3, %c0_23, %c0_24] : memref<4x64x81xbf16, #tpu.memory_space<vmem>>, vector<1x64x81xbf16>
    %26 = vector.shape_cast %25 : vector<1x64x81xbf16> to vector<64x81xbf16>
    %cst_25 = arith.constant dense<0.000000e+00> : vector<64x64xf32>
    %27 = tpu.matmul %26, %1, %cst_25 {dimension_numbers = #tpu.dot_dimension_numbers<[1], [0], [0], [1], [0, 0, 1, 1], [], []>} : vector<64x81xbf16>, vector<81x64xbf16>, vector<64x64xf32> -> vector<64x64xf32>
    %28 = arith.truncf %27 : vector<64x64xf32> to vector<64x64xbf16>
    %c3_26 = arith.constant 3 : index
    %c0_27 = arith.constant 0 : index
    %c0_28 = arith.constant 0 : index
    %29 = vector.load %arg3[%c3_26, %c0_27, %c0_28] : memref<4x64x32xbf16, #tpu.memory_space<vmem>>, vector<1x64x32xbf16>
    %30 = vector.shape_cast %29 : vector<1x64x32xbf16> to vector<64x32xbf16>
    %cst_29 = arith.constant dense<0.000000e+00> : vector<64x32xf32>
    %31 = tpu.matmul %28, %30, %cst_29 {dimension_numbers = #tpu.dot_dimension_numbers<[1], [0], [0], [1], [0, 0, 1, 1], [], []>} : vector<64x64xbf16>, vector<64x32xbf16>, vector<64x32xf32> -> vector<64x32xf32>
    %32 = arith.addf %24, %31 : vector<64x32xf32>
    %c0_30 = arith.constant 0 : index
    %c0_31 = arith.constant 0 : index
    %33 = vector.load %arg4[%c0_30, %c0_31] : memref<1x32xf32, #tpu.memory_space<vmem>>, vector<1x32xf32>
    %34 = vector.broadcast %33 : vector<1x32xf32> to vector<64x32xf32>
    %35 = arith.addf %32, %34 : vector<64x32xf32>
    %cst_32 = arith.constant 0.000000e+00 : f32
    %36 = vector.broadcast %cst_32 : f32 to vector<64x32xf32>
    %37 = arith.maximumf %35, %36 : vector<64x32xf32>
    %38 = arith.truncf %37 : vector<64x32xf32> to vector<64x32xbf16>
    %c0_33 = arith.constant 0 : index
    %c0_34 = arith.constant 0 : index
    %c0_35 = arith.constant 0 : index
    %39 = vector.load %arg5[%c0_33, %c0_34, %c0_35] : memref<16x9x64xbf16, #tpu.memory_space<vmem>>, vector<1x9x64xbf16>
    %40 = vector.shape_cast %39 : vector<1x9x64xbf16> to vector<9x64xbf16>
    %cst_36 = arith.constant dense<0.000000e+00> : vector<9x32xf32>
    %41 = tpu.matmul %40, %38, %cst_36 {dimension_numbers = #tpu.dot_dimension_numbers<[1], [0], [0], [1], [0, 0, 1, 1], [], []>} : vector<9x64xbf16>, vector<64x32xbf16>, vector<9x32xf32> -> vector<9x32xf32>
    %42 = arith.truncf %41 : vector<9x32xf32> to vector<9x32xbf16>
    %c0_37 = arith.constant 0 : index
    %c0_38 = arith.constant 0 : index
    %c0_39 = arith.constant 0 : index
    %43 = vector.load %arg6[%c0_37, %c0_38, %c0_39] : memref<16x32x64xbf16, #tpu.memory_space<vmem>>, vector<1x32x64xbf16>
    %44 = vector.shape_cast %43 : vector<1x32x64xbf16> to vector<32x64xbf16>
    %cst_40 = arith.constant dense<0.000000e+00> : vector<9x64xf32>
    %45 = tpu.matmul %42, %44, %cst_40 {dimension_numbers = #tpu.dot_dimension_numbers<[1], [0], [0], [1], [0, 0, 1, 1], [], []>} : vector<9x32xbf16>, vector<32x64xbf16>, vector<9x64xf32> -> vector<9x64xf32>
    %c1_41 = arith.constant 1 : index
    %c0_42 = arith.constant 0 : index
    %c0_43 = arith.constant 0 : index
    %46 = vector.load %arg5[%c1_41, %c0_42, %c0_43] : memref<16x9x64xbf16, #tpu.memory_space<vmem>>, vector<1x9x64xbf16>
    %47 = vector.shape_cast %46 : vector<1x9x64xbf16> to vector<9x64xbf16>
    %cst_44 = arith.constant dense<0.000000e+00> : vector<9x32xf32>
    %48 = tpu.matmul %47, %38, %cst_44 {dimension_numbers = #tpu.dot_dimension_numbers<[1], [0], [0], [1], [0, 0, 1, 1], [], []>} : vector<9x64xbf16>, vector<64x32xbf16>, vector<9x32xf32> -> vector<9x32xf32>
    %49 = arith.truncf %48 : vector<9x32xf32> to vector<9x32xbf16>
    %c1_45 = arith.constant 1 : index
    %c0_46 = arith.constant 0 : index
    %c0_47 = arith.constant 0 : index
    %50 = vector.load %arg6[%c1_45, %c0_46, %c0_47] : memref<16x32x64xbf16, #tpu.memory_space<vmem>>, vector<1x32x64xbf16>
    %51 = vector.shape_cast %50 : vector<1x32x64xbf16> to vector<32x64xbf16>
    %cst_48 = arith.constant dense<0.000000e+00> : vector<9x64xf32>
    %52 = tpu.matmul %49, %51, %cst_48 {dimension_numbers = #tpu.dot_dimension_numbers<[1], [0], [0], [1], [0, 0, 1, 1], [], []>} : vector<9x32xbf16>, vector<32x64xbf16>, vector<9x64xf32> -> vector<9x64xf32>
    %53 = arith.addf %45, %52 : vector<9x64xf32>
    %c2_49 = arith.constant 2 : index
    %c0_50 = arith.constant 0 : index
    %c0_51 = arith.constant 0 : index
    %54 = vector.load %arg5[%c2_49, %c0_50, %c0_51] : memref<16x9x64xbf16, #tpu.memory_space<vmem>>, vector<1x9x64xbf16>
    %55 = vector.shape_cast %54 : vector<1x9x64xbf16> to vector<9x64xbf16>
    %cst_52 = arith.constant dense<0.000000e+00> : vector<9x32xf32>
    %56 = tpu.matmul %55, %38, %cst_52 {dimension_numbers = #tpu.dot_dimension_numbers<[1], [0], [0], [1], [0, 0, 1, 1], [], []>} : vector<9x64xbf16>, vector<64x32xbf16>, vector<9x32xf32> -> vector<9x32xf32>
    %57 = arith.truncf %56 : vector<9x32xf32> to vector<9x32xbf16>
    %c2_53 = arith.constant 2 : index
    %c0_54 = arith.constant 0 : index
    %c0_55 = arith.constant 0 : index
    %58 = vector.load %arg6[%c2_53, %c0_54, %c0_55] : memref<16x32x64xbf16, #tpu.memory_space<vmem>>, vector<1x32x64xbf16>
    %59 = vector.shape_cast %58 : vector<1x32x64xbf16> to vector<32x64xbf16>
    %cst_56 = arith.constant dense<0.000000e+00> : vector<9x64xf32>
    %60 = tpu.matmul %57, %59, %cst_56 {dimension_numbers = #tpu.dot_dimension_numbers<[1], [0], [0], [1], [0, 0, 1, 1], [], []>} : vector<9x32xbf16>, vector<32x64xbf16>, vector<9x64xf32> -> vector<9x64xf32>
    %61 = arith.addf %53, %60 : vector<9x64xf32>
    %c3_57 = arith.constant 3 : index
    %c0_58 = arith.constant 0 : index
    %c0_59 = arith.constant 0 : index
    %62 = vector.load %arg5[%c3_57, %c0_58, %c0_59] : memref<16x9x64xbf16, #tpu.memory_space<vmem>>, vector<1x9x64xbf16>
    %63 = vector.shape_cast %62 : vector<1x9x64xbf16> to vector<9x64xbf16>
    %cst_60 = arith.constant dense<0.000000e+00> : vector<9x32xf32>
    %64 = tpu.matmul %63, %38, %cst_60 {dimension_numbers = #tpu.dot_dimension_numbers<[1], [0], [0], [1], [0, 0, 1, 1], [], []>} : vector<9x64xbf16>, vector<64x32xbf16>, vector<9x32xf32> -> vector<9x32xf32>
    %65 = arith.truncf %64 : vector<9x32xf32> to vector<9x32xbf16>
    %c3_61 = arith.constant 3 : index
    %c0_62 = arith.constant 0 : index
    %c0_63 = arith.constant 0 : index
    %66 = vector.load %arg6[%c3_61, %c0_62, %c0_63] : memref<16x32x64xbf16, #tpu.memory_space<vmem>>, vector<1x32x64xbf16>
    %67 = vector.shape_cast %66 : vector<1x32x64xbf16> to vector<32x64xbf16>
    %cst_64 = arith.constant dense<0.000000e+00> : vector<9x64xf32>
    %68 = tpu.matmul %65, %67, %cst_64 {dimension_numbers = #tpu.dot_dimension_numbers<[1], [0], [0], [1], [0, 0, 1, 1], [], []>} : vector<9x32xbf16>, vector<32x64xbf16>, vector<9x64xf32> -> vector<9x64xf32>
    %69 = arith.addf %61, %68 : vector<9x64xf32>
    %c4 = arith.constant 4 : index
    %c0_65 = arith.constant 0 : index
    %c0_66 = arith.constant 0 : index
    %70 = vector.load %arg5[%c4, %c0_65, %c0_66] : memref<16x9x64xbf16, #tpu.memory_space<vmem>>, vector<1x9x64xbf16>
    %71 = vector.shape_cast %70 : vector<1x9x64xbf16> to vector<9x64xbf16>
    %cst_67 = arith.constant dense<0.000000e+00> : vector<9x32xf32>
    %72 = tpu.matmul %71, %38, %cst_67 {dimension_numbers = #tpu.dot_dimension_numbers<[1], [0], [0], [1], [0, 0, 1, 1], [], []>} : vector<9x64xbf16>, vector<64x32xbf16>, vector<9x32xf32> -> vector<9x32xf32>
    %73 = arith.truncf %72 : vector<9x32xf32> to vector<9x32xbf16>
    %c4_68 = arith.constant 4 : index
    %c0_69 = arith.constant 0 : index
    %c0_70 = arith.constant 0 : index
    %74 = vector.load %arg6[%c4_68, %c0_69, %c0_70] : memref<16x32x64xbf16, #tpu.memory_space<vmem>>, vector<1x32x64xbf16>
    %75 = vector.shape_cast %74 : vector<1x32x64xbf16> to vector<32x64xbf16>
    %cst_71 = arith.constant dense<0.000000e+00> : vector<9x64xf32>
    %76 = tpu.matmul %73, %75, %cst_71 {dimension_numbers = #tpu.dot_dimension_numbers<[1], [0], [0], [1], [0, 0, 1, 1], [], []>} : vector<9x32xbf16>, vector<32x64xbf16>, vector<9x64xf32> -> vector<9x64xf32>
    %77 = arith.addf %69, %76 : vector<9x64xf32>
    %c5 = arith.constant 5 : index
    %c0_72 = arith.constant 0 : index
    %c0_73 = arith.constant 0 : index
    %78 = vector.load %arg5[%c5, %c0_72, %c0_73] : memref<16x9x64xbf16, #tpu.memory_space<vmem>>, vector<1x9x64xbf16>
    %79 = vector.shape_cast %78 : vector<1x9x64xbf16> to vector<9x64xbf16>
    %cst_74 = arith.constant dense<0.000000e+00> : vector<9x32xf32>
    %80 = tpu.matmul %79, %38, %cst_74 {dimension_numbers = #tpu.dot_dimension_numbers<[1], [0], [0], [1], [0, 0, 1, 1], [], []>} : vector<9x64xbf16>, vector<64x32xbf16>, vector<9x32xf32> -> vector<9x32xf32>
    %81 = arith.truncf %80 : vector<9x32xf32> to vector<9x32xbf16>
    %c5_75 = arith.constant 5 : index
    %c0_76 = arith.constant 0 : index
    %c0_77 = arith.constant 0 : index
    %82 = vector.load %arg6[%c5_75, %c0_76, %c0_77] : memref<16x32x64xbf16, #tpu.memory_space<vmem>>, vector<1x32x64xbf16>
    %83 = vector.shape_cast %82 : vector<1x32x64xbf16> to vector<32x64xbf16>
    %cst_78 = arith.constant dense<0.000000e+00> : vector<9x64xf32>
    %84 = tpu.matmul %81, %83, %cst_78 {dimension_numbers = #tpu.dot_dimension_numbers<[1], [0], [0], [1], [0, 0, 1, 1], [], []>} : vector<9x32xbf16>, vector<32x64xbf16>, vector<9x64xf32> -> vector<9x64xf32>
    %85 = arith.addf %77, %84 : vector<9x64xf32>
    %c6 = arith.constant 6 : index
    %c0_79 = arith.constant 0 : index
    %c0_80 = arith.constant 0 : index
    %86 = vector.load %arg5[%c6, %c0_79, %c0_80] : memref<16x9x64xbf16, #tpu.memory_space<vmem>>, vector<1x9x64xbf16>
    %87 = vector.shape_cast %86 : vector<1x9x64xbf16> to vector<9x64xbf16>
    %cst_81 = arith.constant dense<0.000000e+00> : vector<9x32xf32>
    %88 = tpu.matmul %87, %38, %cst_81 {dimension_numbers = #tpu.dot_dimension_numbers<[1], [0], [0], [1], [0, 0, 1, 1], [], []>} : vector<9x64xbf16>, vector<64x32xbf16>, vector<9x32xf32> -> vector<9x32xf32>
    %89 = arith.truncf %88 : vector<9x32xf32> to vector<9x32xbf16>
    %c6_82 = arith.constant 6 : index
    %c0_83 = arith.constant 0 : index
    %c0_84 = arith.constant 0 : index
    %90 = vector.load %arg6[%c6_82, %c0_83, %c0_84] : memref<16x32x64xbf16, #tpu.memory_space<vmem>>, vector<1x32x64xbf16>
    %91 = vector.shape_cast %90 : vector<1x32x64xbf16> to vector<32x64xbf16>
    %cst_85 = arith.constant dense<0.000000e+00> : vector<9x64xf32>
    %92 = tpu.matmul %89, %91, %cst_85 {dimension_numbers = #tpu.dot_dimension_numbers<[1], [0], [0], [1], [0, 0, 1, 1], [], []>} : vector<9x32xbf16>, vector<32x64xbf16>, vector<9x64xf32> -> vector<9x64xf32>
    %93 = arith.addf %85, %92 : vector<9x64xf32>
    %c7 = arith.constant 7 : index
    %c0_86 = arith.constant 0 : index
    %c0_87 = arith.constant 0 : index
    %94 = vector.load %arg5[%c7, %c0_86, %c0_87] : memref<16x9x64xbf16, #tpu.memory_space<vmem>>, vector<1x9x64xbf16>
    %95 = vector.shape_cast %94 : vector<1x9x64xbf16> to vector<9x64xbf16>
    %cst_88 = arith.constant dense<0.000000e+00> : vector<9x32xf32>
    %96 = tpu.matmul %95, %38, %cst_88 {dimension_numbers = #tpu.dot_dimension_numbers<[1], [0], [0], [1], [0, 0, 1, 1], [], []>} : vector<9x64xbf16>, vector<64x32xbf16>, vector<9x32xf32> -> vector<9x32xf32>
    %97 = arith.truncf %96 : vector<9x32xf32> to vector<9x32xbf16>
    %c7_89 = arith.constant 7 : index
    %c0_90 = arith.constant 0 : index
    %c0_91 = arith.constant 0 : index
    %98 = vector.load %arg6[%c7_89, %c0_90, %c0_91] : memref<16x32x64xbf16, #tpu.memory_space<vmem>>, vector<1x32x64xbf16>
    %99 = vector.shape_cast %98 : vector<1x32x64xbf16> to vector<32x64xbf16>
    %cst_92 = arith.constant dense<0.000000e+00> : vector<9x64xf32>
    %100 = tpu.matmul %97, %99, %cst_92 {dimension_numbers = #tpu.dot_dimension_numbers<[1], [0], [0], [1], [0, 0, 1, 1], [], []>} : vector<9x32xbf16>, vector<32x64xbf16>, vector<9x64xf32> -> vector<9x64xf32>
    %101 = arith.addf %93, %100 : vector<9x64xf32>
    %c8 = arith.constant 8 : index
    %c0_93 = arith.constant 0 : index
    %c0_94 = arith.constant 0 : index
    %102 = vector.load %arg5[%c8, %c0_93, %c0_94] : memref<16x9x64xbf16, #tpu.memory_space<vmem>>, vector<1x9x64xbf16>
    %103 = vector.shape_cast %102 : vector<1x9x64xbf16> to vector<9x64xbf16>
    %cst_95 = arith.constant dense<0.000000e+00> : vector<9x32xf32>
    %104 = tpu.matmul %103, %38, %cst_95 {dimension_numbers = #tpu.dot_dimension_numbers<[1], [0], [0], [1], [0, 0, 1, 1], [], []>} : vector<9x64xbf16>, vector<64x32xbf16>, vector<9x32xf32> -> vector<9x32xf32>
    %105 = arith.truncf %104 : vector<9x32xf32> to vector<9x32xbf16>
    %c8_96 = arith.constant 8 : index
    %c0_97 = arith.constant 0 : index
    %c0_98 = arith.constant 0 : index
    %106 = vector.load %arg6[%c8_96, %c0_97, %c0_98] : memref<16x32x64xbf16, #tpu.memory_space<vmem>>, vector<1x32x64xbf16>
    %107 = vector.shape_cast %106 : vector<1x32x64xbf16> to vector<32x64xbf16>
    %cst_99 = arith.constant dense<0.000000e+00> : vector<9x64xf32>
    %108 = tpu.matmul %105, %107, %cst_99 {dimension_numbers = #tpu.dot_dimension_numbers<[1], [0], [0], [1], [0, 0, 1, 1], [], []>} : vector<9x32xbf16>, vector<32x64xbf16>, vector<9x64xf32> -> vector<9x64xf32>
    %109 = arith.addf %101, %108 : vector<9x64xf32>
    %c9 = arith.constant 9 : index
    %c0_100 = arith.constant 0 : index
    %c0_101 = arith.constant 0 : index
    %110 = vector.load %arg5[%c9, %c0_100, %c0_101] : memref<16x9x64xbf16, #tpu.memory_space<vmem>>, vector<1x9x64xbf16>
    %111 = vector.shape_cast %110 : vector<1x9x64xbf16> to vector<9x64xbf16>
    %cst_102 = arith.constant dense<0.000000e+00> : vector<9x32xf32>
    %112 = tpu.matmul %111, %38, %cst_102 {dimension_numbers = #tpu.dot_dimension_numbers<[1], [0], [0], [1], [0, 0, 1, 1], [], []>} : vector<9x64xbf16>, vector<64x32xbf16>, vector<9x32xf32> -> vector<9x32xf32>
    %113 = arith.truncf %112 : vector<9x32xf32> to vector<9x32xbf16>
    %c9_103 = arith.constant 9 : index
    %c0_104 = arith.constant 0 : index
    %c0_105 = arith.constant 0 : index
    %114 = vector.load %arg6[%c9_103, %c0_104, %c0_105] : memref<16x32x64xbf16, #tpu.memory_space<vmem>>, vector<1x32x64xbf16>
    %115 = vector.shape_cast %114 : vector<1x32x64xbf16> to vector<32x64xbf16>
    %cst_106 = arith.constant dense<0.000000e+00> : vector<9x64xf32>
    %116 = tpu.matmul %113, %115, %cst_106 {dimension_numbers = #tpu.dot_dimension_numbers<[1], [0], [0], [1], [0, 0, 1, 1], [], []>} : vector<9x32xbf16>, vector<32x64xbf16>, vector<9x64xf32> -> vector<9x64xf32>
    %117 = arith.addf %109, %116 : vector<9x64xf32>
    %c10 = arith.constant 10 : index
    %c0_107 = arith.constant 0 : index
    %c0_108 = arith.constant 0 : index
    %118 = vector.load %arg5[%c10, %c0_107, %c0_108] : memref<16x9x64xbf16, #tpu.memory_space<vmem>>, vector<1x9x64xbf16>
    %119 = vector.shape_cast %118 : vector<1x9x64xbf16> to vector<9x64xbf16>
    %cst_109 = arith.constant dense<0.000000e+00> : vector<9x32xf32>
    %120 = tpu.matmul %119, %38, %cst_109 {dimension_numbers = #tpu.dot_dimension_numbers<[1], [0], [0], [1], [0, 0, 1, 1], [], []>} : vector<9x64xbf16>, vector<64x32xbf16>, vector<9x32xf32> -> vector<9x32xf32>
    %121 = arith.truncf %120 : vector<9x32xf32> to vector<9x32xbf16>
    %c10_110 = arith.constant 10 : index
    %c0_111 = arith.constant 0 : index
    %c0_112 = arith.constant 0 : index
    %122 = vector.load %arg6[%c10_110, %c0_111, %c0_112] : memref<16x32x64xbf16, #tpu.memory_space<vmem>>, vector<1x32x64xbf16>
    %123 = vector.shape_cast %122 : vector<1x32x64xbf16> to vector<32x64xbf16>
    %cst_113 = arith.constant dense<0.000000e+00> : vector<9x64xf32>
    %124 = tpu.matmul %121, %123, %cst_113 {dimension_numbers = #tpu.dot_dimension_numbers<[1], [0], [0], [1], [0, 0, 1, 1], [], []>} : vector<9x32xbf16>, vector<32x64xbf16>, vector<9x64xf32> -> vector<9x64xf32>
    %125 = arith.addf %117, %124 : vector<9x64xf32>
    %c11 = arith.constant 11 : index
    %c0_114 = arith.constant 0 : index
    %c0_115 = arith.constant 0 : index
    %126 = vector.load %arg5[%c11, %c0_114, %c0_115] : memref<16x9x64xbf16, #tpu.memory_space<vmem>>, vector<1x9x64xbf16>
    %127 = vector.shape_cast %126 : vector<1x9x64xbf16> to vector<9x64xbf16>
    %cst_116 = arith.constant dense<0.000000e+00> : vector<9x32xf32>
    %128 = tpu.matmul %127, %38, %cst_116 {dimension_numbers = #tpu.dot_dimension_numbers<[1], [0], [0], [1], [0, 0, 1, 1], [], []>} : vector<9x64xbf16>, vector<64x32xbf16>, vector<9x32xf32> -> vector<9x32xf32>
    %129 = arith.truncf %128 : vector<9x32xf32> to vector<9x32xbf16>
    %c11_117 = arith.constant 11 : index
    %c0_118 = arith.constant 0 : index
    %c0_119 = arith.constant 0 : index
    %130 = vector.load %arg6[%c11_117, %c0_118, %c0_119] : memref<16x32x64xbf16, #tpu.memory_space<vmem>>, vector<1x32x64xbf16>
    %131 = vector.shape_cast %130 : vector<1x32x64xbf16> to vector<32x64xbf16>
    %cst_120 = arith.constant dense<0.000000e+00> : vector<9x64xf32>
    %132 = tpu.matmul %129, %131, %cst_120 {dimension_numbers = #tpu.dot_dimension_numbers<[1], [0], [0], [1], [0, 0, 1, 1], [], []>} : vector<9x32xbf16>, vector<32x64xbf16>, vector<9x64xf32> -> vector<9x64xf32>
    %133 = arith.addf %125, %132 : vector<9x64xf32>
    %c12 = arith.constant 12 : index
    %c0_121 = arith.constant 0 : index
    %c0_122 = arith.constant 0 : index
    %134 = vector.load %arg5[%c12, %c0_121, %c0_122] : memref<16x9x64xbf16, #tpu.memory_space<vmem>>, vector<1x9x64xbf16>
    %135 = vector.shape_cast %134 : vector<1x9x64xbf16> to vector<9x64xbf16>
    %cst_123 = arith.constant dense<0.000000e+00> : vector<9x32xf32>
    %136 = tpu.matmul %135, %38, %cst_123 {dimension_numbers = #tpu.dot_dimension_numbers<[1], [0], [0], [1], [0, 0, 1, 1], [], []>} : vector<9x64xbf16>, vector<64x32xbf16>, vector<9x32xf32> -> vector<9x32xf32>
    %137 = arith.truncf %136 : vector<9x32xf32> to vector<9x32xbf16>
    %c12_124 = arith.constant 12 : index
    %c0_125 = arith.constant 0 : index
    %c0_126 = arith.constant 0 : index
    %138 = vector.load %arg6[%c12_124, %c0_125, %c0_126] : memref<16x32x64xbf16, #tpu.memory_space<vmem>>, vector<1x32x64xbf16>
    %139 = vector.shape_cast %138 : vector<1x32x64xbf16> to vector<32x64xbf16>
    %cst_127 = arith.constant dense<0.000000e+00> : vector<9x64xf32>
    %140 = tpu.matmul %137, %139, %cst_127 {dimension_numbers = #tpu.dot_dimension_numbers<[1], [0], [0], [1], [0, 0, 1, 1], [], []>} : vector<9x32xbf16>, vector<32x64xbf16>, vector<9x64xf32> -> vector<9x64xf32>
    %141 = arith.addf %133, %140 : vector<9x64xf32>
    %c13 = arith.constant 13 : index
    %c0_128 = arith.constant 0 : index
    %c0_129 = arith.constant 0 : index
    %142 = vector.load %arg5[%c13, %c0_128, %c0_129] : memref<16x9x64xbf16, #tpu.memory_space<vmem>>, vector<1x9x64xbf16>
    %143 = vector.shape_cast %142 : vector<1x9x64xbf16> to vector<9x64xbf16>
    %cst_130 = arith.constant dense<0.000000e+00> : vector<9x32xf32>
    %144 = tpu.matmul %143, %38, %cst_130 {dimension_numbers = #tpu.dot_dimension_numbers<[1], [0], [0], [1], [0, 0, 1, 1], [], []>} : vector<9x64xbf16>, vector<64x32xbf16>, vector<9x32xf32> -> vector<9x32xf32>
    %145 = arith.truncf %144 : vector<9x32xf32> to vector<9x32xbf16>
    %c13_131 = arith.constant 13 : index
    %c0_132 = arith.constant 0 : index
    %c0_133 = arith.constant 0 : index
    %146 = vector.load %arg6[%c13_131, %c0_132, %c0_133] : memref<16x32x64xbf16, #tpu.memory_space<vmem>>, vector<1x32x64xbf16>
    %147 = vector.shape_cast %146 : vector<1x32x64xbf16> to vector<32x64xbf16>
    %cst_134 = arith.constant dense<0.000000e+00> : vector<9x64xf32>
    %148 = tpu.matmul %145, %147, %cst_134 {dimension_numbers = #tpu.dot_dimension_numbers<[1], [0], [0], [1], [0, 0, 1, 1], [], []>} : vector<9x32xbf16>, vector<32x64xbf16>, vector<9x64xf32> -> vector<9x64xf32>
    %149 = arith.addf %141, %148 : vector<9x64xf32>
    %c14 = arith.constant 14 : index
    %c0_135 = arith.constant 0 : index
    %c0_136 = arith.constant 0 : index
    %150 = vector.load %arg5[%c14, %c0_135, %c0_136] : memref<16x9x64xbf16, #tpu.memory_space<vmem>>, vector<1x9x64xbf16>
    %151 = vector.shape_cast %150 : vector<1x9x64xbf16> to vector<9x64xbf16>
    %cst_137 = arith.constant dense<0.000000e+00> : vector<9x32xf32>
    %152 = tpu.matmul %151, %38, %cst_137 {dimension_numbers = #tpu.dot_dimension_numbers<[1], [0], [0], [1], [0, 0, 1, 1], [], []>} : vector<9x64xbf16>, vector<64x32xbf16>, vector<9x32xf32> -> vector<9x32xf32>
    %153 = arith.truncf %152 : vector<9x32xf32> to vector<9x32xbf16>
    %c14_138 = arith.constant 14 : index
    %c0_139 = arith.constant 0 : index
    %c0_140 = arith.constant 0 : index
    %154 = vector.load %arg6[%c14_138, %c0_139, %c0_140] : memref<16x32x64xbf16, #tpu.memory_space<vmem>>, vector<1x32x64xbf16>
    %155 = vector.shape_cast %154 : vector<1x32x64xbf16> to vector<32x64xbf16>
    %cst_141 = arith.constant dense<0.000000e+00> : vector<9x64xf32>
    %156 = tpu.matmul %153, %155, %cst_141 {dimension_numbers = #tpu.dot_dimension_numbers<[1], [0], [0], [1], [0, 0, 1, 1], [], []>} : vector<9x32xbf16>, vector<32x64xbf16>, vector<9x64xf32> -> vector<9x64xf32>
    %157 = arith.addf %149, %156 : vector<9x64xf32>
    %c15 = arith.constant 15 : index
    %c0_142 = arith.constant 0 : index
    %c0_143 = arith.constant 0 : index
    %158 = vector.load %arg5[%c15, %c0_142, %c0_143] : memref<16x9x64xbf16, #tpu.memory_space<vmem>>, vector<1x9x64xbf16>
    %159 = vector.shape_cast %158 : vector<1x9x64xbf16> to vector<9x64xbf16>
    %cst_144 = arith.constant dense<0.000000e+00> : vector<9x32xf32>
    %160 = tpu.matmul %159, %38, %cst_144 {dimension_numbers = #tpu.dot_dimension_numbers<[1], [0], [0], [1], [0, 0, 1, 1], [], []>} : vector<9x64xbf16>, vector<64x32xbf16>, vector<9x32xf32> -> vector<9x32xf32>
    %161 = arith.truncf %160 : vector<9x32xf32> to vector<9x32xbf16>
    %c15_145 = arith.constant 15 : index
    %c0_146 = arith.constant 0 : index
    %c0_147 = arith.constant 0 : index
    %162 = vector.load %arg6[%c15_145, %c0_146, %c0_147] : memref<16x32x64xbf16, #tpu.memory_space<vmem>>, vector<1x32x64xbf16>
    %163 = vector.shape_cast %162 : vector<1x32x64xbf16> to vector<32x64xbf16>
    %cst_148 = arith.constant dense<0.000000e+00> : vector<9x64xf32>
    %164 = tpu.matmul %161, %163, %cst_148 {dimension_numbers = #tpu.dot_dimension_numbers<[1], [0], [0], [1], [0, 0, 1, 1], [], []>} : vector<9x32xbf16>, vector<32x64xbf16>, vector<9x64xf32> -> vector<9x64xf32>
    %165 = arith.addf %157, %164 : vector<9x64xf32>
    %c0_149 = arith.constant 0 : index
    %c0_150 = arith.constant 0 : index
    %166 = vector.load %arg7[%c0_149, %c0_150] : memref<1x64xf32, #tpu.memory_space<vmem>>, vector<1x64xf32>
    %167 = vector.broadcast %166 : vector<1x64xf32> to vector<9x64xf32>
    %168 = arith.addf %165, %167 : vector<9x64xf32>
    %cst_151 = arith.constant 0.000000e+00 : f32
    %169 = vector.broadcast %cst_151 : f32 to vector<9x64xf32>
    %170 = arith.maximumf %168, %169 : vector<9x64xf32>
    %171 = arith.truncf %170 : vector<9x64xf32> to vector<9x64xbf16>
    %c0_152 = arith.constant 0 : index
    %c0_153 = arith.constant 0 : index
    %c0_154 = arith.constant 0 : index
    %172 = vector.load %arg8[%c0_152, %c0_153, %c0_154] : memref<9x1x9xbf16, #tpu.memory_space<vmem>>, vector<1x1x9xbf16>
    %173 = vector.shape_cast %172 : vector<1x1x9xbf16> to vector<1x9xbf16>
    %cst_155 = arith.constant dense<0.000000e+00> : vector<1x64xf32>
    %174 = tpu.matmul %173, %171, %cst_155 {dimension_numbers = #tpu.dot_dimension_numbers<[1], [0], [0], [1], [0, 0, 1, 1], [], []>} : vector<1x9xbf16>, vector<9x64xbf16>, vector<1x64xf32> -> vector<1x64xf32>
    %175 = arith.truncf %174 : vector<1x64xf32> to vector<1x64xbf16>
    %c0_156 = arith.constant 0 : index
    %c0_157 = arith.constant 0 : index
    %c0_158 = arith.constant 0 : index
    %176 = vector.load %arg9[%c0_156, %c0_157, %c0_158] : memref<9x64x64xbf16, #tpu.memory_space<vmem>>, vector<1x64x64xbf16>
    %177 = vector.shape_cast %176 : vector<1x64x64xbf16> to vector<64x64xbf16>
    %cst_159 = arith.constant dense<0.000000e+00> : vector<1x64xf32>
    %178 = tpu.matmul %175, %177, %cst_159 {dimension_numbers = #tpu.dot_dimension_numbers<[1], [0], [0], [1], [0, 0, 1, 1], [], []>} : vector<1x64xbf16>, vector<64x64xbf16>, vector<1x64xf32> -> vector<1x64xf32>
    %c1_160 = arith.constant 1 : index
    %c0_161 = arith.constant 0 : index
    %c0_162 = arith.constant 0 : index
    %179 = vector.load %arg8[%c1_160, %c0_161, %c0_162] : memref<9x1x9xbf16, #tpu.memory_space<vmem>>, vector<1x1x9xbf16>
    %180 = vector.shape_cast %179 : vector<1x1x9xbf16> to vector<1x9xbf16>
    %cst_163 = arith.constant dense<0.000000e+00> : vector<1x64xf32>
    %181 = tpu.matmul %180, %171, %cst_163 {dimension_numbers = #tpu.dot_dimension_numbers<[1], [0], [0], [1], [0, 0, 1, 1], [], []>} : vector<1x9xbf16>, vector<9x64xbf16>, vector<1x64xf32> -> vector<1x64xf32>
    %182 = arith.truncf %181 : vector<1x64xf32> to vector<1x64xbf16>
    %c1_164 = arith.constant 1 : index
    %c0_165 = arith.constant 0 : index
    %c0_166 = arith.constant 0 : index
    %183 = vector.load %arg9[%c1_164, %c0_165, %c0_166] : memref<9x64x64xbf16, #tpu.memory_space<vmem>>, vector<1x64x64xbf16>
    %184 = vector.shape_cast %183 : vector<1x64x64xbf16> to vector<64x64xbf16>
    %cst_167 = arith.constant dense<0.000000e+00> : vector<1x64xf32>
    %185 = tpu.matmul %182, %184, %cst_167 {dimension_numbers = #tpu.dot_dimension_numbers<[1], [0], [0], [1], [0, 0, 1, 1], [], []>} : vector<1x64xbf16>, vector<64x64xbf16>, vector<1x64xf32> -> vector<1x64xf32>
    %186 = arith.addf %178, %185 : vector<1x64xf32>
    %c2_168 = arith.constant 2 : index
    %c0_169 = arith.constant 0 : index
    %c0_170 = arith.constant 0 : index
    %187 = vector.load %arg8[%c2_168, %c0_169, %c0_170] : memref<9x1x9xbf16, #tpu.memory_space<vmem>>, vector<1x1x9xbf16>
    %188 = vector.shape_cast %187 : vector<1x1x9xbf16> to vector<1x9xbf16>
    %cst_171 = arith.constant dense<0.000000e+00> : vector<1x64xf32>
    %189 = tpu.matmul %188, %171, %cst_171 {dimension_numbers = #tpu.dot_dimension_numbers<[1], [0], [0], [1], [0, 0, 1, 1], [], []>} : vector<1x9xbf16>, vector<9x64xbf16>, vector<1x64xf32> -> vector<1x64xf32>
    %190 = arith.truncf %189 : vector<1x64xf32> to vector<1x64xbf16>
    %c2_172 = arith.constant 2 : index
    %c0_173 = arith.constant 0 : index
    %c0_174 = arith.constant 0 : index
    %191 = vector.load %arg9[%c2_172, %c0_173, %c0_174] : memref<9x64x64xbf16, #tpu.memory_space<vmem>>, vector<1x64x64xbf16>
    %192 = vector.shape_cast %191 : vector<1x64x64xbf16> to vector<64x64xbf16>
    %cst_175 = arith.constant dense<0.000000e+00> : vector<1x64xf32>
    %193 = tpu.matmul %190, %192, %cst_175 {dimension_numbers = #tpu.dot_dimension_numbers<[1], [0], [0], [1], [0, 0, 1, 1], [], []>} : vector<1x64xbf16>, vector<64x64xbf16>, vector<1x64xf32> -> vector<1x64xf32>
    %194 = arith.addf %186, %193 : vector<1x64xf32>
    %c3_176 = arith.constant 3 : index
    %c0_177 = arith.constant 0 : index
    %c0_178 = arith.constant 0 : index
    %195 = vector.load %arg8[%c3_176, %c0_177, %c0_178] : memref<9x1x9xbf16, #tpu.memory_space<vmem>>, vector<1x1x9xbf16>
    %196 = vector.shape_cast %195 : vector<1x1x9xbf16> to vector<1x9xbf16>
    %cst_179 = arith.constant dense<0.000000e+00> : vector<1x64xf32>
    %197 = tpu.matmul %196, %171, %cst_179 {dimension_numbers = #tpu.dot_dimension_numbers<[1], [0], [0], [1], [0, 0, 1, 1], [], []>} : vector<1x9xbf16>, vector<9x64xbf16>, vector<1x64xf32> -> vector<1x64xf32>
    %198 = arith.truncf %197 : vector<1x64xf32> to vector<1x64xbf16>
    %c3_180 = arith.constant 3 : index
    %c0_181 = arith.constant 0 : index
    %c0_182 = arith.constant 0 : index
    %199 = vector.load %arg9[%c3_180, %c0_181, %c0_182] : memref<9x64x64xbf16, #tpu.memory_space<vmem>>, vector<1x64x64xbf16>
    %200 = vector.shape_cast %199 : vector<1x64x64xbf16> to vector<64x64xbf16>
    %cst_183 = arith.constant dense<0.000000e+00> : vector<1x64xf32>
    %201 = tpu.matmul %198, %200, %cst_183 {dimension_numbers = #tpu.dot_dimension_numbers<[1], [0], [0], [1], [0, 0, 1, 1], [], []>} : vector<1x64xbf16>, vector<64x64xbf16>, vector<1x64xf32> -> vector<1x64xf32>
    %202 = arith.addf %194, %201 : vector<1x64xf32>
    %c4_184 = arith.constant 4 : index
    %c0_185 = arith.constant 0 : index
    %c0_186 = arith.constant 0 : index
    %203 = vector.load %arg8[%c4_184, %c0_185, %c0_186] : memref<9x1x9xbf16, #tpu.memory_space<vmem>>, vector<1x1x9xbf16>
    %204 = vector.shape_cast %203 : vector<1x1x9xbf16> to vector<1x9xbf16>
    %cst_187 = arith.constant dense<0.000000e+00> : vector<1x64xf32>
    %205 = tpu.matmul %204, %171, %cst_187 {dimension_numbers = #tpu.dot_dimension_numbers<[1], [0], [0], [1], [0, 0, 1, 1], [], []>} : vector<1x9xbf16>, vector<9x64xbf16>, vector<1x64xf32> -> vector<1x64xf32>
    %206 = arith.truncf %205 : vector<1x64xf32> to vector<1x64xbf16>
    %c4_188 = arith.constant 4 : index
    %c0_189 = arith.constant 0 : index
    %c0_190 = arith.constant 0 : index
    %207 = vector.load %arg9[%c4_188, %c0_189, %c0_190] : memref<9x64x64xbf16, #tpu.memory_space<vmem>>, vector<1x64x64xbf16>
    %208 = vector.shape_cast %207 : vector<1x64x64xbf16> to vector<64x64xbf16>
    %cst_191 = arith.constant dense<0.000000e+00> : vector<1x64xf32>
    %209 = tpu.matmul %206, %208, %cst_191 {dimension_numbers = #tpu.dot_dimension_numbers<[1], [0], [0], [1], [0, 0, 1, 1], [], []>} : vector<1x64xbf16>, vector<64x64xbf16>, vector<1x64xf32> -> vector<1x64xf32>
    %210 = arith.addf %202, %209 : vector<1x64xf32>
    %c5_192 = arith.constant 5 : index
    %c0_193 = arith.constant 0 : index
    %c0_194 = arith.constant 0 : index
    %211 = vector.load %arg8[%c5_192, %c0_193, %c0_194] : memref<9x1x9xbf16, #tpu.memory_space<vmem>>, vector<1x1x9xbf16>
    %212 = vector.shape_cast %211 : vector<1x1x9xbf16> to vector<1x9xbf16>
    %cst_195 = arith.constant dense<0.000000e+00> : vector<1x64xf32>
    %213 = tpu.matmul %212, %171, %cst_195 {dimension_numbers = #tpu.dot_dimension_numbers<[1], [0], [0], [1], [0, 0, 1, 1], [], []>} : vector<1x9xbf16>, vector<9x64xbf16>, vector<1x64xf32> -> vector<1x64xf32>
    %214 = arith.truncf %213 : vector<1x64xf32> to vector<1x64xbf16>
    %c5_196 = arith.constant 5 : index
    %c0_197 = arith.constant 0 : index
    %c0_198 = arith.constant 0 : index
    %215 = vector.load %arg9[%c5_196, %c0_197, %c0_198] : memref<9x64x64xbf16, #tpu.memory_space<vmem>>, vector<1x64x64xbf16>
    %216 = vector.shape_cast %215 : vector<1x64x64xbf16> to vector<64x64xbf16>
    %cst_199 = arith.constant dense<0.000000e+00> : vector<1x64xf32>
    %217 = tpu.matmul %214, %216, %cst_199 {dimension_numbers = #tpu.dot_dimension_numbers<[1], [0], [0], [1], [0, 0, 1, 1], [], []>} : vector<1x64xbf16>, vector<64x64xbf16>, vector<1x64xf32> -> vector<1x64xf32>
    %218 = arith.addf %210, %217 : vector<1x64xf32>
    %c6_200 = arith.constant 6 : index
    %c0_201 = arith.constant 0 : index
    %c0_202 = arith.constant 0 : index
    %219 = vector.load %arg8[%c6_200, %c0_201, %c0_202] : memref<9x1x9xbf16, #tpu.memory_space<vmem>>, vector<1x1x9xbf16>
    %220 = vector.shape_cast %219 : vector<1x1x9xbf16> to vector<1x9xbf16>
    %cst_203 = arith.constant dense<0.000000e+00> : vector<1x64xf32>
    %221 = tpu.matmul %220, %171, %cst_203 {dimension_numbers = #tpu.dot_dimension_numbers<[1], [0], [0], [1], [0, 0, 1, 1], [], []>} : vector<1x9xbf16>, vector<9x64xbf16>, vector<1x64xf32> -> vector<1x64xf32>
    %222 = arith.truncf %221 : vector<1x64xf32> to vector<1x64xbf16>
    %c6_204 = arith.constant 6 : index
    %c0_205 = arith.constant 0 : index
    %c0_206 = arith.constant 0 : index
    %223 = vector.load %arg9[%c6_204, %c0_205, %c0_206] : memref<9x64x64xbf16, #tpu.memory_space<vmem>>, vector<1x64x64xbf16>
    %224 = vector.shape_cast %223 : vector<1x64x64xbf16> to vector<64x64xbf16>
    %cst_207 = arith.constant dense<0.000000e+00> : vector<1x64xf32>
    %225 = tpu.matmul %222, %224, %cst_207 {dimension_numbers = #tpu.dot_dimension_numbers<[1], [0], [0], [1], [0, 0, 1, 1], [], []>} : vector<1x64xbf16>, vector<64x64xbf16>, vector<1x64xf32> -> vector<1x64xf32>
    %226 = arith.addf %218, %225 : vector<1x64xf32>
    %c7_208 = arith.constant 7 : index
    %c0_209 = arith.constant 0 : index
    %c0_210 = arith.constant 0 : index
    %227 = vector.load %arg8[%c7_208, %c0_209, %c0_210] : memref<9x1x9xbf16, #tpu.memory_space<vmem>>, vector<1x1x9xbf16>
    %228 = vector.shape_cast %227 : vector<1x1x9xbf16> to vector<1x9xbf16>
    %cst_211 = arith.constant dense<0.000000e+00> : vector<1x64xf32>
    %229 = tpu.matmul %228, %171, %cst_211 {dimension_numbers = #tpu.dot_dimension_numbers<[1], [0], [0], [1], [0, 0, 1, 1], [], []>} : vector<1x9xbf16>, vector<9x64xbf16>, vector<1x64xf32> -> vector<1x64xf32>
    %230 = arith.truncf %229 : vector<1x64xf32> to vector<1x64xbf16>
    %c7_212 = arith.constant 7 : index
    %c0_213 = arith.constant 0 : index
    %c0_214 = arith.constant 0 : index
    %231 = vector.load %arg9[%c7_212, %c0_213, %c0_214] : memref<9x64x64xbf16, #tpu.memory_space<vmem>>, vector<1x64x64xbf16>
    %232 = vector.shape_cast %231 : vector<1x64x64xbf16> to vector<64x64xbf16>
    %cst_215 = arith.constant dense<0.000000e+00> : vector<1x64xf32>
    %233 = tpu.matmul %230, %232, %cst_215 {dimension_numbers = #tpu.dot_dimension_numbers<[1], [0], [0], [1], [0, 0, 1, 1], [], []>} : vector<1x64xbf16>, vector<64x64xbf16>, vector<1x64xf32> -> vector<1x64xf32>
    %234 = arith.addf %226, %233 : vector<1x64xf32>
    %c8_216 = arith.constant 8 : index
    %c0_217 = arith.constant 0 : index
    %c0_218 = arith.constant 0 : index
    %235 = vector.load %arg8[%c8_216, %c0_217, %c0_218] : memref<9x1x9xbf16, #tpu.memory_space<vmem>>, vector<1x1x9xbf16>
    %236 = vector.shape_cast %235 : vector<1x1x9xbf16> to vector<1x9xbf16>
    %cst_219 = arith.constant dense<0.000000e+00> : vector<1x64xf32>
    %237 = tpu.matmul %236, %171, %cst_219 {dimension_numbers = #tpu.dot_dimension_numbers<[1], [0], [0], [1], [0, 0, 1, 1], [], []>} : vector<1x9xbf16>, vector<9x64xbf16>, vector<1x64xf32> -> vector<1x64xf32>
    %238 = arith.truncf %237 : vector<1x64xf32> to vector<1x64xbf16>
    %c8_220 = arith.constant 8 : index
    %c0_221 = arith.constant 0 : index
    %c0_222 = arith.constant 0 : index
    %239 = vector.load %arg9[%c8_220, %c0_221, %c0_222] : memref<9x64x64xbf16, #tpu.memory_space<vmem>>, vector<1x64x64xbf16>
    %240 = vector.shape_cast %239 : vector<1x64x64xbf16> to vector<64x64xbf16>
    %cst_223 = arith.constant dense<0.000000e+00> : vector<1x64xf32>
    %241 = tpu.matmul %238, %240, %cst_223 {dimension_numbers = #tpu.dot_dimension_numbers<[1], [0], [0], [1], [0, 0, 1, 1], [], []>} : vector<1x64xbf16>, vector<64x64xbf16>, vector<1x64xf32> -> vector<1x64xf32>
    %242 = arith.addf %234, %241 : vector<1x64xf32>
    %c0_224 = arith.constant 0 : index
    %c0_225 = arith.constant 0 : index
    %243 = vector.load %arg10[%c0_224, %c0_225] : memref<1x64xf32, #tpu.memory_space<vmem>>, vector<1x64xf32>
    %244 = arith.addf %242, %243 : vector<1x64xf32>
    %cst_226 = arith.constant 0.000000e+00 : f32
    %245 = vector.broadcast %cst_226 : f32 to vector<1x64xf32>
    %246 = arith.maximumf %244, %245 : vector<1x64xf32>
    %247 = arith.truncf %246 : vector<1x64xf32> to vector<1x64xbf16>
    %c0_227 = arith.constant 0 : index
    %c0_228 = arith.constant 0 : index
    %c0_229 = arith.constant 0 : index
    %248 = vector.load %arg11[%c0_227, %c0_228, %c0_229] : memref<1x64x512xbf16, #tpu.memory_space<vmem>>, vector<1x64x512xbf16>
    %249 = vector.shape_cast %248 : vector<1x64x512xbf16> to vector<64x512xbf16>
    %cst_230 = arith.constant dense<0.000000e+00> : vector<1x512xf32>
    %250 = tpu.matmul %247, %249, %cst_230 {dimension_numbers = #tpu.dot_dimension_numbers<[1], [0], [0], [1], [0, 0, 1, 1], [], []>} : vector<1x64xbf16>, vector<64x512xbf16>, vector<1x512xf32> -> vector<1x512xf32>
    %c0_231 = arith.constant 0 : index
    %c0_232 = arith.constant 0 : index
    %251 = vector.load %arg12[%c0_231, %c0_232] : memref<1x512xf32, #tpu.memory_space<vmem>>, vector<1x512xf32>
    %252 = arith.addf %250, %251 : vector<1x512xf32>
    %cst_233 = arith.constant 0.000000e+00 : f32
    %253 = vector.broadcast %cst_233 : f32 to vector<1x512xf32>
    %254 = arith.maximumf %252, %253 : vector<1x512xf32>
    %255 = arith.truncf %254 : vector<1x512xf32> to vector<1x512xbf16>
    %c0_234 = arith.constant 0 : index
    %c0_235 = arith.constant 0 : index
    %256 = vector.load %arg13[%c0_234, %c0_235] : memref<512x6xbf16, #tpu.memory_space<vmem>>, vector<512x6xbf16>
    %cst_236 = arith.constant dense<0.000000e+00> : vector<1x6xf32>
    %257 = tpu.matmul %255, %256, %cst_236 {dimension_numbers = #tpu.dot_dimension_numbers<[1], [0], [0], [1], [0, 0, 1, 1], [], []>} : vector<1x512xbf16>, vector<512x6xbf16>, vector<1x6xf32> -> vector<1x6xf32>
    %c0_237 = arith.constant 0 : index
    %c0_238 = arith.constant 0 : index
    %258 = vector.load %arg14[%c0_237, %c0_238] : memref<1x6xf32, #tpu.memory_space<vmem>>, vector<1x6xf32>
    %259 = arith.addf %257, %258 : vector<1x6xf32>
    %cst_239 = arith.constant dense<0xFF800000> : vector<1xf32>
    %260 = vector.multi_reduction <maximumf>, %259, %cst_239 [1] : vector<1x6xf32> to vector<1xf32>
    %261 = vector.shape_cast %260 : vector<1xf32> to vector<1x1xf32>
    %262 = vector.broadcast %261 : vector<1x1xf32> to vector<1x6xf32>
    %263 = arith.subf %259, %262 : vector<1x6xf32>
    %264 = math.exp %263 : vector<1x6xf32>
    %cst_240 = arith.constant dense<0.000000e+00> : vector<1xf32>
    %265 = vector.multi_reduction <add>, %264, %cst_240 [1] : vector<1x6xf32> to vector<1xf32>
    %266 = vector.shape_cast %265 : vector<1xf32> to vector<1x1xf32>
    %267 = tpu.reciprocal %266 {approx = true} : vector<1x1xf32> -> vector<1x1xf32>
    %268 = vector.broadcast %267 : vector<1x1xf32> to vector<1x6xf32>
    %269 = arith.mulf %264, %268 : vector<1x6xf32>
    %c0_241 = arith.constant 0 : index
    %c0_242 = arith.constant 0 : index
    %c0_243 = arith.constant 0 : index
    %270 = vector.load %arg15[%c0_241, %c0_242, %c0_243] : memref<1x1x6xf32, #tpu.memory_space<vmem>>, vector<1x1x6xf32>
    %271 = vector.shape_cast %270 : vector<1x1x6xf32> to vector<1x6xf32>
    %272 = vector.shape_cast %269 : vector<1x6xf32> to vector<1x1x6xf32>
    tpu.vector_store %arg15[%c0_241, %c0_242, %c0_243], %272 {strides = array<i32>} : memref<1x1x6xf32, #tpu.memory_space<vmem>>, vector<1x1x6xf32>,
    return
  }
  func.func @transform_0(%arg0: i32) -> (i32, i32, i32) {
    %c0_i32 = arith.constant 0 : i32
    %c0_i32_0 = arith.constant 0 : i32
    %c0_i32_1 = arith.constant 0 : i32
    return %arg0, %c0_i32, %c0_i32_0 : i32, i32, i32
  }
  func.func @transform_1(%arg0: i32) -> (i32, i32, i32) {
    %c0_i32 = arith.constant 0 : i32
    %c0_i32_0 = arith.constant 0 : i32
    %c0_i32_1 = arith.constant 0 : i32
    %c0_i32_2 = arith.constant 0 : i32
    return %c0_i32, %c0_i32_0, %c0_i32_1 : i32, i32, i32
  }
  func.func @transform_2(%arg0: i32) -> (i32, i32, i32) {
    %c0_i32 = arith.constant 0 : i32
    %c0_i32_0 = arith.constant 0 : i32
    %c0_i32_1 = arith.constant 0 : i32
    %c0_i32_2 = arith.constant 0 : i32
    return %c0_i32, %c0_i32_0, %c0_i32_1 : i32, i32, i32
  }
  func.func @transform_3(%arg0: i32) -> (i32, i32) {
    %c0_i32 = arith.constant 0 : i32
    %c0_i32_0 = arith.constant 0 : i32
    %c0_i32_1 = arith.constant 0 : i32
    return %c0_i32, %c0_i32_0 : i32, i32
  }
  func.func @transform_4(%arg0: i32) -> (i32, i32, i32) {
    %c0_i32 = arith.constant 0 : i32
    %c0_i32_0 = arith.constant 0 : i32
    %c0_i32_1 = arith.constant 0 : i32
    %c0_i32_2 = arith.constant 0 : i32
    return %c0_i32, %c0_i32_0, %c0_i32_1 : i32, i32, i32
  }
  func.func @transform_5(%arg0: i32) -> (i32, i32, i32) {
    %c0_i32 = arith.constant 0 : i32
    %c0_i32_0 = arith.constant 0 : i32
    %c0_i32_1 = arith.constant 0 : i32
    %c0_i32_2 = arith.constant 0 : i32
    return %c0_i32, %c0_i32_0, %c0_i32_1 : i32, i32, i32
  }
  func.func @transform_6(%arg0: i32) -> (i32, i32) {
    %c0_i32 = arith.constant 0 : i32
    %c0_i32_0 = arith.constant 0 : i32
    %c0_i32_1 = arith.constant 0 : i32
    return %c0_i32, %c0_i32_0 : i32, i32
  }
  func.func @transform_7(%arg0: i32) -> (i32, i32, i32) {
    %c0_i32 = arith.constant 0 : i32
    %c0_i32_0 = arith.constant 0 : i32
    %c0_i32_1 = arith.constant 0 : i32
    %c0_i32_2 = arith.constant 0 : i32
    return %c0_i32, %c0_i32_0, %c0_i32_1 : i32, i32, i32
  }
  func.func @transform_8(%arg0: i32) -> (i32, i32, i32) {
    %c0_i32 = arith.constant 0 : i32
    %c0_i32_0 = arith.constant 0 : i32
    %c0_i32_1 = arith.constant 0 : i32
    %c0_i32_2 = arith.constant 0 : i32
    return %c0_i32, %c0_i32_0, %c0_i32_1 : i32, i32, i32
  }
  func.func @transform_9(%arg0: i32) -> (i32, i32) {
    %c0_i32 = arith.constant 0 : i32
    %c0_i32_0 = arith.constant 0 : i32
    %c0_i32_1 = arith.constant 0 : i32
    return %c0_i32, %c0_i32_0 : i32, i32
  }
  func.func @transform_10(%arg0: i32) -> (i32, i32, i32) {
    %c0_i32 = arith.constant 0 : i32
    %c0_i32_0 = arith.constant 0 : i32
    %c0_i32_1 = arith.constant 0 : i32
    %c0_i32_2 = arith.constant 0 : i32
    return %c0_i32, %c0_i32_0, %c0_i32_1 : i32, i32, i32
  }
  func.func @transform_11(%arg0: i32) -> (i32, i32) {
    %c0_i32 = arith.constant 0 : i32
    %c0_i32_0 = arith.constant 0 : i32
    %c0_i32_1 = arith.constant 0 : i32
    return %c0_i32, %c0_i32_0 : i32, i32
  }
  func.func @transform_12(%arg0: i32) -> (i32, i32) {
    %c0_i32 = arith.constant 0 : i32
    %c0_i32_0 = arith.constant 0 : i32
    %c0_i32_1 = arith.constant 0 : i32
    return %c0_i32, %c0_i32_0 : i32, i32
  }
  func.func @transform_13(%arg0: i32) -> (i32, i32) {
    %c0_i32 = arith.constant 0 : i32
    %c0_i32_0 = arith.constant 0 : i32
    %c0_i32_1 = arith.constant 0 : i32
    return %c0_i32, %c0_i32_0 : i32, i32
  }
  func.func @transform_14(%arg0: i32) -> (i32, i32, i32) {
    %c0_i32 = arith.constant 0 : i32
    %c0_i32_0 = arith.constant 0 : i32
    %c0_i32_1 = arith.constant 0 : i32
    return %arg0, %c0_i32, %c0_i32_0 : i32, i32, i32
  }
}

</mosaic_0001>

<bundles_post_ra>
// kernel: action_model_forward.1
= control target key start
LH: loop header
LB: loop body
LE: loop exit
PB: predicated region body
PF: predicated region fallthrough
CT: control target
= control target key end

     0   :  { %s7943_s0 = inlined_call_operand.vmem [shape: bf16[2,81,64], index: 0, kind: input, shape index: {}]   ;;  %s7944_s1 = inlined_call_operand.vmem [shape: bf16[4,64,81], index: 1, kind: input, shape index: {}]   ;;  %s7945_s2 = inlined_call_operand.vmem [shape: bf16[4,64,32], index: 2, kind: input, shape index: {}]   ;;  %s7946_s3 = inlined_call_operand.vmem [shape: f32[1,32], index: 3, kind: input, shape index: {}]   ;;  %s7947_s4 = inlined_call_operand.vmem [shape: bf16[16,9,64], index: 4, kind: input, shape index: {}]   ;;  %s7948_s5 = inlined_call_operand.vmem [shape: bf16[16,32,64], index: 5, kind: input, shape index: {}]   ;;  %s7949_s6 = inlined_call_operand.vmem [shape: f32[1,64], index: 6, kind: input, shape index: {}]   ;;  %s7950_s7 = inlined_call_operand.vmem [shape: bf16[9,1,9], index: 7, kind: input, shape index: {}]   ;;  %s7951_s8 = inlined_call_operand.vmem [shape: bf16[9,64,64], index: 8, kind: input, shape index: {}]   ;;  %s7952_s9 = inlined_call_operand.vmem [shape: f32[1,64], index: 9, kind: input, shape index: {}]   ;;  %s7953_s10 = inlined_call_operand.vmem [shape: bf16[1,64,512], index: 10, kind: input, shape index: {}]   ;;  %s7954_s11 = inlined_call_operand.vmem [shape: f32[1,512], index: 11, kind: input, shape index: {}]   ;;  %s7955_s12 = inlined_call_operand.vmem [shape: bf16[512,6], index: 12, kind: input, shape index: {}]   ;;  %s7956_s13 = inlined_call_operand.vmem [shape: f32[1,6], index: 13, kind: input, shape index: {}]   ;;  %s7957_s14 = inlined_call_operand.hbm [shape: f32[2,1,6], index: 14, kind: output, shape index: {}]  }
   0x1   :  { %7959 = sst [smem:[#allocation7_spill]] %s7943_s0 }
   0x2   :  { %7960 = sst [smem:[#allocation8_spill]] %s7944_s1 }
   0x3   :  { %7961 = sst [smem:[#allocation9_spill]] %s7945_s2 }
   0x4   :  { %19 = vsyncpa [#allocation3], 0 }
   0x5   :  { %21 = vsyncpa [#allocation3 + $0x1], 0  ;;  %s6821_s29 = smov 0   ;;  %s6823_s30 = smov 0  }
   0x6   :  { %s6825_s15 = smov 0   ;;  %s6827_s16 = smov 0  }
   0x7 LB: > { %7962 = sst [smem:[#allocation5_spill]] %s6735_s15  ;;  %s6842_s17 = sadd.s32 4294967295, %s6739_s16   ;;  %s6739_s16 = sphi %s6827_s16, %s7973_s16   ;;  %s6735_s15 = sphi %s6825_s15, %s7970_s15   ;;  %s6731_s30 = sphi %s6823_s30, %s7972_s30   ;;  %s6727_s29 = sphi %s6821_s29, %s7971_s29  }
   0x8   : > { %s5046_s18 = sadd.s32 4294967294, %s6739_s16   ;;  %s6846_s19 = sadd.s32 1, %s6739_s16  }
   0x9   : > { %s333_s20 = sadd.s32 1, %s6735_s15  ;;  %s330_s21 = ssub.s32 %s6739_s16, %s6846_s19 }
   0xa   : > { %p343_p0 = scmp.ne.s32.totalorder %s6735_s15, %s6731_s30  ;;  %p331_p1 = scmp.eq.s32.totalorder %s330_s21, 0 }
   0xb   : > { %p344_p2 = scmp.eq.s32.totalorder %s6842_s17, 1  ;;  %p349_p3 = scmp.ne.s32.totalorder %s6731_s30, %s6727_s29 }
   0xc   : > { %p350_p4 = scmp.eq.s32.totalorder %s5046_s18, 1  ;;  %p5049_p7 = scmp.ge.s32.totalorder %s6739_s16, 1 }
   0xd   : > { %s6857_s22 = scalar_select %p331_p1, %s6735_s15, %s333_s20  }
   0xe   : > { %p6859_p5 = por %p344_p2, %p343_p0  ;;  %p6863_p6 = por %p350_p4, %p349_p3 }
   0xf   : > { %7963 = sst [smem:[#allocation6_spill]] %s6857_s22  ;;  %p415_p8 = scmp.lt.s32.totalorder %s6739_s16, 3 }
  0x11   : > { %p416_p9 = pnand %p5049_p7, %p415_p8 }
  0x12   : > { %p460_p10 = scmp.lt.s32.totalorder (!%p416_p9), %s6842_s17, 1  ;;  %s7966_s1 = sld [smem:[#allocation8_spill]] (!%p416_p9) }
  0x13   : > { %419 = sbr.rel (%p416_p9) target bundleno = 6293 (0x1895), region = 76  ;;  %s7967_s0 = sld [smem:[#allocation7_spill]] (!%p416_p9) }
  0x14   : > { %s7968_s2 = sld [smem:[#allocation9_spill]] (!%p416_p9)  ;;  %s458_s26 = sand.u32 (!%p416_p9), 1, %s6731_s30  }
  0x15   : > { %s4979_s21 = scalar_lea.sflag (!%p416_p9), [#allocation3], %s458_s26  ;;  %s6745_s25 = smov (!%p416_p9), [#allocation2]  }
  0x18   : > { %v6503_v0 = vld [vmem:[%s7966_s1] sm:$0xff]   ;;  %vm538_vm0 = vcmask 662528   ;;  %s461_s27 = scalar_select %p460_p10, %s6842_s17, 1  ;;  %vm551_vm1 = vcmask 1040384   ;;  %v6741_v2 = vmov 0   ;;  %v6505_v13 = vld [vmem:[%s7966_s1 + $0x8] sm:$0xff]  }
  0x19   : > { %5839 = vmatprep.mubr.msk.bf16.mxu0 %vm538_vm0, %v6503_v0  ;;  %v6504_v1 = vld [vmem:[%s7966_s1 + $0x20] sm:$0xff]   ;;  %v553_v3 = vsel %vm551_vm1, 65535, %v6741_v2  ;;  %v6506_v14 = vld [vmem:[%s7966_s1 + $0x28] sm:$0xff]   ;;  %v6507_v15 = vld [vmem:[%s7966_s1 + $0x10] sm:$0xff]   ;;  %vm777_vm2 = vcmask 523264   ;;  %vm6743_vm3 = vmmov 0  }
  0x1a   : > { %s6453_s20 = smul.u32 44, %s461_s27  ;;  %5859 = vmatprep.mubr.msk.bf16.mxu1 %vm538_vm0, %v6504_v1  ;;  %v6511_v11 = vld [vmem:[%s7968_s2 + $0x38] sm:$0xff]   ;;  %v6508_v16 = vld [vmem:[%s7966_s1 + $0x30] sm:$0xff]   ;;  %v6515_v21 = vld [vmem:[%s7968_s2 + $0x28] sm:$0xff]   ;;  %vm1565_vm4 = vcmask 261120   ;;  %vm3307_vm5 = vcmask 1043456  }
  0x1b   : > { %v6512_v12 = vld [vmem:[%s7968_s2 + $0x18] sm:$0xff]   ;;  %v6513_v17 = vld [vmem:[%s7968_s2 + $0x30] sm:$0xff]   ;;  %v6516_v22 = vld [vmem:[%s7968_s2 + $0x8] sm:$0xff]   ;;  %vm3308_vm6 = vcmask 1044480   ;;  %vm3303_vm7 = vcmask 72704   ;;  %vm4965_vm8 = vcmask 40960  }
  0x1c   : > { %s464_s15 = scalar_lea.vmem %s7967_s0, %s6453_s20  ;;  %v6514_v18 = vld [vmem:[%s7968_s2 + $0x10] sm:$0xff]   ;;  %v6509_v19 = vld [vmem:[%s7966_s1 + $0x18] sm:$0xff]   ;;  %v6517_v23 = vld [vmem:[%s7968_s2 + $0x20] sm:$0xff]   ;;  %s5517_s27 = sshll.u32 %s6842_s17, 4 }
  0x1d   : > { %v6497_v4 = vld [vmem:[%s464_s15 + $0x28] ss:$0 sps:$4 sm:$0x11]   ;;  %v6885_v6 = vld [vmem:[%s464_s15 + $0x20] sm:$0xff]   ;;  %v6893_v7 = vld [vmem:[%s464_s15 + $0x18] sm:$0xff]   ;;  %s4989_s0 = scalar_lea.hbm %s7957_s14, %s5517_s27 }
  0x1e   : > { %v6883_v5 = vand.u32 %v6497_v4, %v553_v3  ;;  %v6899_v8 = vld [vmem:[%s464_s15 + $0x10] sm:$0xff]   ;;  %v6901_v9 = vld [vmem:[%s464_s15 + $0x8] sm:$0xff]   ;;  %v6907_v10 = vld [vmem:[%s464_s15] sm:$0xff]   ;;  %s459_s15 = scalar_lea.vmem [#allocation2], %s458_s26 }
  0x1f   : > { %v6510_v20 = vld [vmem:[%s7966_s1 + $0x38] sm:$0xff]   ;;  %v6518_v24 = vld [vmem:[%s7968_s2] sm:$0xff]   ;;  %v6520_v50 = vld [vmem:[%s7966_s1 + $0x48] sm:$0xff]   ;;  %s4991_s28 = sshll.u32 %s459_s15, 4  ;;  %s4992_s28 = int_to_ptr.vmem [resolvable:$true] %s4991_s28 }
  0x20   : > { %5827 = vmatprep.subr.bf16.mxu0 %v6883_v5  ;;  %5847 = vmatprep.subr.bf16.mxu1 %v6883_v5  ;;  %v6519_v49 = vld [vmem:[%s7966_s1 + $0x40] sm:$0xff]   ;;  %v6521_v51 = vld [vmem:[%s7966_s1 + $0x50] sm:$0xff]   ;;  %v6522_v52 = vld [vmem:[%s7966_s1 + $0x58] sm:$0xff]   ;;  %s6679_s22 = scalar_lea.vmem %s4992_s28, 16 }
  0x21   : > { %5828 = vmatpush3.bf16.msra.mxu0 %v6883_v5  ;;  %5848 = vmatpush3.bf16.msra.mxu1 %v6883_v5  ;;  %v6523_v53 = vld [vmem:[%s7968_s2 + $0x58] sm:$0xff]   ;;  %v6524_v54 = vld [vmem:[%s7968_s2 + $0x50] sm:$0xff]   ;;  %v6525_v55 = vld [vmem:[%s7968_s2 + $0x48] sm:$0xff]   ;;  %p6680_p11 = scmp.ne.s32.totalorder %s4992_s28, %s6679_s22 }
  0x22   : > { %5829 = vmatprep.subr.bf16.mxu0 %v6885_v6  ;;  %5849 = vmatprep.subr.bf16.mxu1 %v6885_v6  ;;  %v6526_v56 = vld [vmem:[%s7968_s2 + $0x40] sm:$0xff]  }
  0x23   : > { %p6681_p12 = pnand %p6680_p11, %p6859_p5 }
  0x25   : > { %5830 = vmatpush3.bf16.msra.mxu0 %v6885_v6  ;;  %5850 = vmatpush3.bf16.msra.mxu1 %v6885_v6  ;;  %p6682_p13 = pneg %p6681_p12 }
  0x26   : > { %5831 = vmatprep.subr.bf16.mxu0 %v6893_v7  ;;  %5851 = vmatprep.subr.bf16.mxu1 %v6893_v7 }
  0x29   : > { %5832 = vmatpush3.bf16.msra.mxu0 %v6893_v7  ;;  %5852 = vmatpush3.bf16.msra.mxu1 %v6893_v7 }
  0x2a   : > { %5833 = vmatprep.subr.bf16.mxu0 %v6899_v8  ;;  %5853 = vmatprep.subr.bf16.mxu1 %v6899_v8 }
  0x2d   : > { %5834 = vmatpush3.bf16.msra.mxu0 %v6899_v8  ;;  %5854 = vmatpush3.bf16.msra.mxu1 %v6899_v8 }
  0x2e   : > { %5835 = vmatprep.subr.bf16.mxu0 %v6901_v9  ;;  %5855 = vmatprep.subr.bf16.mxu1 %v6901_v9 }
  0x31   : > { %5836 = vmatpush3.bf16.msra.mxu0 %v6901_v9  ;;  %5856 = vmatpush3.bf16.msra.mxu1 %v6901_v9 }
  0x32   : > { %5837 = vmatprep.subr.bf16.mxu0 %v6907_v10  ;;  %5857 = vmatprep.subr.bf16.mxu1 %v6907_v10 }
  0x35   : > { %5838 = vmatpush3.bf16.msra.mxu0 %v6907_v10  ;;  %5858 = vmatpush3.bf16.msra.mxu1 %v6907_v10 }
  0x36   : > { %5867 = vmatprep.subr.bf16.mxu0 %v6511_v11  ;;  %5883 = vmatprep.subr.bf16.mxu1 %v6512_v12 }
  0x38   : > { %5840 = vmatmul.mubr.msk.bf16.vlgmr.msra.gmra.mxu0 %vm538_vm0, %v6505_v13  ;;  %5860 = vmatmul.mubr.msk.bf16.vlgmr.msra.gmra.mxu1 %vm538_vm0, %v6506_v14 }
  0x39   : > { %5843 = vmatprep.mubr.msk.bf16.mxu0 %vm538_vm0, %v6507_v15  ;;  %5863 = vmatprep.mubr.msk.bf16.mxu1 %vm538_vm0, %v6508_v16 }
  0x3a   : > { %5868 = vmatpush3.bf16.msra.mxu0 %v6511_v11  ;;  %5884 = vmatpush3.bf16.msra.mxu1 %v6512_v12 }
  0x3b   : > { %5869 = vmatprep.subr.bf16.mxu0 %v6513_v17  ;;  %5885 = vmatprep.subr.bf16.mxu1 %v6514_v18 }
  0x3e   : > { %5870 = vmatpush3.bf16.msra.mxu0 %v6513_v17  ;;  %5886 = vmatpush3.bf16.msra.mxu1 %v6514_v18 }
  0x3f   : > { %5871 = vmatprep.subr.bf16.mxu0 %v6515_v21  ;;  %5887 = vmatprep.subr.bf16.mxu1 %v6516_v22 }
  0x40   : > { %5844 = vmatmul.mubr.msk.bf16.gmra.mxu0 %vm538_vm0, %v6509_v19  ;;  %5864 = vmatmul.mubr.msk.bf16.gmra.mxu1 %vm538_vm0, %v6510_v20 }
  0x42   : > { %5872 = vmatpush3.bf16.msra.mxu0 %v6515_v21  ;;  %5888 = vmatpush3.bf16.msra.mxu1 %v6516_v22 }
  0x43   : > { %5873 = vmatprep.subr.bf16.mxu0 %v6517_v23  ;;  %5889 = vmatprep.subr.bf16.mxu1 %v6518_v24 }
  0x46   : > { %5874 = vmatpush3.bf16.msra.mxu0 %v6517_v23  ;;  %5890 = vmatpush3.bf16.msra.mxu1 %v6518_v24 }
  0x47   : > { %5899 = vmatprep.subr.bf16.mxu0 %v6883_v5  ;;  %5919 = vmatprep.subr.bf16.mxu1 %v6523_v53 }
  0xf8   : > { %v5841_v25 = vpop.f32.mrf.mxu0  ;;  %v5861_v26 = vpop.f32.mrf.mxu1 }
  0xfa   : > { %v591_v27 = vpop.f32.mrf.mxu0  ;;  %v709_v28 = vpop.f32.mrf.mxu1 }
  0xfc   : > { %v5842_v29 = vpop.f32.mrf.mxu0  ;;  %v5862_v30 = vpop.f32.mrf.mxu1 }
  0xfd   : > { %v623_v31 = vpack.c.bf16 %v5842_v29, %v5841_v25  ;;  %v741_v36 = vpack.c.bf16 %v5862_v30, %v5861_v26 }
  0xfe   : > { %v594_v32 = vpop.f32.mrf.mxu0  ;;  %v712_v33 = vpop.f32.mrf.mxu1 }
  0xff   : > { %v622_v34 = vpack.c.bf16 %v594_v32, %v591_v27  ;;  %v740_v35 = vpack.c.bf16 %v712_v33, %v709_v28  ;;  %v6527_v33 = vld [vmem:[%s7966_s1 + $0x60] sm:$0xff]  }
 0x100   : > { %v5845_v37 = vpop.f32.mrf.mxu0  ;;  %v5865_v38 = vpop.f32.mrf.mxu1 }
 0x101   : > { %5875 = vmatprep.mubr.msk.bf16.mxu0 %vm777_vm2, %v740_v35  ;;  %5891 = vmatprep.mubr.msk.bf16.mxu1 %vm777_vm2, %v622_v34  ;;  %v6534_v34 = vld [vmem:[%s7968_s2 + $0x60] sm:$0xff]  }
 0x102   : > { %v607_v39 = vpop.f32.mrf.mxu0  ;;  %v725_v40 = vpop.f32.mrf.mxu1  ;;  %5876 = vmatmul.mubr.msk.bf16.vlgmr.msra.gmra.mxu0 %vm777_vm2, %v741_v36  ;;  %5892 = vmatmul.mubr.msk.bf16.vlgmr.msra.gmra.mxu1 %vm777_vm2, %v623_v31 }
 0x103   : > { %5900 = vmatpush3.bf16.msra.mxu0 %v6883_v5  ;;  %5920 = vmatpush3.bf16.msra.mxu1 %v6523_v53 }
 0x104   : > { %v5846_v41 = vpop.f32.mrf.mxu0  ;;  %v5866_v42 = vpop.f32.mrf.mxu1  ;;  %5901 = vmatprep.subr.bf16.mxu0 %v6885_v6  ;;  %5921 = vmatprep.subr.bf16.mxu1 %v6524_v54 }
 0x105   : > { %v625_v43 = vpack.c.bf16 %v5846_v41, %v5845_v37  ;;  %v743_v44 = vpack.c.bf16 %v5866_v42, %v5865_v38 }
 0x106   : > { %v610_v45 = vpop.f32.mrf.mxu0  ;;  %v728_v46 = vpop.f32.mrf.mxu1 }
 0x107   : > { %v624_v47 = vpack.c.bf16 %v610_v45, %v607_v39  ;;  %v742_v48 = vpack.c.bf16 %v728_v46, %v725_v40  ;;  %5902 = vmatpush3.bf16.msra.mxu0 %v6885_v6  ;;  %5922 = vmatpush3.bf16.msra.mxu1 %v6524_v54 }
 0x108   : > { %5903 = vmatprep.subr.bf16.mxu0 %v6893_v7  ;;  %5923 = vmatprep.subr.bf16.mxu1 %v6525_v55 }
 0x109   : > { %5879 = vmatprep.mubr.msk.bf16.mxu0 %vm777_vm2, %v742_v48  ;;  %5895 = vmatprep.mubr.msk.bf16.mxu1 %vm777_vm2, %v624_v47 }
 0x10a   : > { %5880 = vmatmul.mubr.msk.bf16.gmra.mxu0 %vm777_vm2, %v743_v44  ;;  %5896 = vmatmul.mubr.msk.bf16.gmra.mxu1 %vm777_vm2, %v625_v43 }
 0x10b   : > { %5904 = vmatpush3.bf16.msra.mxu0 %v6893_v7  ;;  %5911 = vmatprep.mubr.msk.bf16.mxu0 %vm538_vm0, %v6519_v49 }
 0x10c   : > { %5905 = vmatprep.subr.bf16.mxu0 %v6899_v8  ;;  %5924 = vmatpush3.bf16.msra.mxu1 %v6525_v55 }
 0x10d   : > { %5925 = vmatprep.subr.bf16.mxu1 %v6526_v56 }
 0x10f   : > { %5906 = vmatpush3.bf16.msra.mxu0 %v6899_v8 }
 0x110   : > { %5907 = vmatprep.subr.bf16.mxu0 %v6901_v9  ;;  %5926 = vmatpush3.bf16.msra.mxu1 %v6526_v56 }
 0x111   : > { %5935 = vmatprep.subr.bf16.mxu1 %v6883_v5 }
 0x113   : > { %5908 = vmatpush3.bf16.msra.mxu0 %v6901_v9 }
 0x114   : > { %5909 = vmatprep.subr.bf16.mxu0 %v6907_v10 }
 0x117   : > { %5910 = vmatpush3.bf16.msra.mxu0 %v6907_v10 }
 0x11a   : > { %5912 = vmatmul.mubr.msk.bf16.vlgmr.msra.gmra.mxu0 %vm538_vm0, %v6520_v50 }
 0x11b   : > { %5915 = vmatprep.mubr.msk.bf16.mxu0 %vm538_vm0, %v6521_v51 }
 0x122   : > { %5916 = vmatmul.mubr.msk.bf16.gmra.mxu0 %vm538_vm0, %v6522_v52 }
 0x1c2   : > { %v5877_v57 = vpop.f32.mrf.mxu0  ;;  %v5893_v58 = vpop.f32.mrf.mxu1 }
 0x1c3   : > { %v7016_v59 = vadd.f32 %v5893_v58, %v5877_v57 }
 0x1c4   : > { %v824_v60 = vpop.f32.mrf.mxu0  ;;  %v925_v61 = vpop.f32.mrf.mxu1 }
 0x1c5   : > { %v7018_v62 = vadd.f32 %v925_v61, %v824_v60 }
 0x1c6   : > { %v5878_v63 = vpop.f32.mrf.mxu0  ;;  %v5894_v0 = vpop.f32.mrf.mxu1 }
 0x1c7   : > { %v7020_v1 = vadd.f32 %v5894_v0, %v5878_v63 }
 0x1c8   : > { %v7022_v3 = vpop.f32.mrf.mxu0  ;;  %v7024_v4 = vpop.f32.mrf.mxu1 }
 0x1ca   : > { %v5881_v11 = vpop.f32.mrf.mxu0  ;;  %v5897_v12 = vpop.f32.mrf.mxu1 }
 0x1cb   : > { %v7026_v13 = vadd.f32 %v5897_v12, %v5881_v11 }
 0x1cc   : > { %v840_v14 = vpop.f32.mrf.mxu0  ;;  %v941_v15 = vpop.f32.mrf.mxu1 }
 0x1cd   : > { %v7028_v16 = vadd.f32 %v941_v15, %v840_v14 }
 0x1ce   : > { %v5882_v17 = vpop.f32.mrf.mxu0  ;;  %v5898_v18 = vpop.f32.mrf.mxu1 }
 0x1cf   : > { %v953_v19 = vadd.f32 %v5898_v18, %v5882_v17 }
 0x1d0   : > { %v7030_v20 = vpop.f32.mrf.mxu0  ;;  %v944_v35 = vpop.f32.mrf.mxu1 }
 0x1da   : > { %v5913_v21 = vpop.f32.mrf.mxu0 }
 0x1dc   : > { %v1031_v22 = vpop.f32.mrf.mxu0 }
 0x1de   : > { %v5914_v23 = vpop.f32.mrf.mxu0 }
 0x1df   : > { %v1063_v26 = vpack.c.bf16 %v5914_v23, %v5913_v21  ;;  %v945_v23 = vadd.f32 %v944_v35, %v7030_v20 }
 0x1e0   : > { %v1034_v24 = vpop.f32.mrf.mxu0 }
 0x1e1   : > { %v1062_v25 = vpack.c.bf16 %v1034_v24, %v1031_v22 }
 0x1e2   : > { %v5917_v27 = vpop.f32.mrf.mxu0 }
 0x1e3   : > { %5927 = vmatprep.mubr.msk.bf16.mxu1 %vm777_vm2, %v1062_v25 }
 0x1e4   : > { %v1047_v28 = vpop.f32.mrf.mxu0  ;;  %5928 = vmatmul.mubr.msk.bf16.vlgmr.msra.gmra.mxu1 %vm777_vm2, %v1063_v26 }
 0x1e5   : > { %5936 = vmatpush3.bf16.msra.mxu1 %v6883_v5  ;;  %v6528_v5 = vld [vmem:[%s7966_s1 + $0x68] sm:$0xff]  }
 0x1e6   : > { %v5918_v29 = vpop.f32.mrf.mxu0  ;;  %5937 = vmatprep.subr.bf16.mxu1 %v6885_v6 }
 0x1e7   : > { %v1065_v30 = vpack.c.bf16 %v5918_v29, %v5917_v27 }
 0x1e8   : > { %v1050_v31 = vpop.f32.mrf.mxu0 }
 0x1e9   : > { %v1064_v32 = vpack.c.bf16 %v1050_v31, %v1047_v28  ;;  %5938 = vmatpush3.bf16.msra.mxu1 %v6885_v6  ;;  %v6529_v6 = vld [vmem:[%s7966_s1 + $0x70] sm:$0xff]  }
 0x1ea   : > { %5939 = vmatprep.subr.bf16.mxu1 %v6893_v7 }
 0x1eb   : > { %5931 = vmatprep.mubr.msk.bf16.mxu1 %vm777_vm2, %v1064_v32 }
 0x1ec   : > { %5932 = vmatmul.mubr.msk.bf16.gmra.mxu1 %vm777_vm2, %v1065_v30  ;;  %v929_v30 = vadd.f32 %v7024_v4, %v7022_v3 }
 0x1ed   : > { %5940 = vmatpush3.bf16.msra.mxu1 %v6893_v7  ;;  %5947 = vmatprep.mubr.msk.bf16.mxu1 %vm538_vm0, %v6527_v33  ;;  %v6530_v7 = vld [vmem:[%s7966_s1 + $0x78] sm:$0xff]   ;;  %s6683_s1 = sshll.u32 %s6745_s25, 4  ;;  %s6684_s1 = int_to_ptr.vmem [resolvable:$false] %s6683_s1 }
 0x1ee   : > { %5941 = vmatprep.subr.bf16.mxu1 %v6899_v8  ;;  %s6685_s17 = scalar_lea.vmem %s6684_s1, 32  ;;  %p6686_p0 = scmp.lt.s32.totalorder %s4992_s28, %s6684_s1 }
 0x1ef   : > { %p6687_p1 = scmp.lt.s32.totalorder %s6685_s17, %s6679_s22 }
 0x1f1   : > { %5942 = vmatpush3.bf16.msra.mxu1 %v6899_v8  ;;  %v6531_v8 = vld [vmem:[%s7968_s2 + $0x78] sm:$0xff]   ;;  %p6688_p2 = por %p6687_p1, %p6686_p0 }
 0x1f2   : > { %5943 = vmatprep.subr.bf16.mxu1 %v6901_v9  ;;  %5955 = vmatprep.subr.bf16.mxu0 %v6531_v8 }
 0x1f3   : > { %5956 = vmatpush3.bf16.msra.mxu0 %v6531_v8  ;;  %p6689_p3 = pnand %p6688_p2, %p6682_p13 }
 0x1f5   : > { %5944 = vmatpush3.bf16.msra.mxu1 %v6901_v9  ;;  %v6532_v9 = vld [vmem:[%s7968_s2 + $0x70] sm:$0xff]  }
 0x1f6   : > { %5945 = vmatprep.subr.bf16.mxu1 %v6907_v10  ;;  %5957 = vmatprep.subr.bf16.mxu0 %v6532_v9 }
 0x1f7   : > { %5958 = vmatpush3.bf16.msra.mxu0 %v6532_v9 }
 0x1f9   : > { %5946 = vmatpush3.bf16.msra.mxu1 %v6907_v10  ;;  %v6533_v10 = vld [vmem:[%s7968_s2 + $0x68] sm:$0xff]  }
 0x1fa   : > { %5959 = vmatprep.subr.bf16.mxu0 %v6533_v10 }
 0x1fb   : > { %5960 = vmatpush3.bf16.msra.mxu0 %v6533_v10 }
 0x1fc   : > { %5948 = vmatmul.mubr.msk.bf16.vlgmr.msra.gmra.mxu1 %vm538_vm0, %v6528_v5  ;;  %5961 = vmatprep.subr.bf16.mxu0 %v6534_v34 }
 0x1fd   : > { %5951 = vmatprep.mubr.msk.bf16.mxu1 %vm538_vm0, %v6529_v6 }
 0x1ff   : > { %5962 = vmatpush3.bf16.msra.mxu0 %v6534_v34 }
 0x204   : > { %5952 = vmatmul.mubr.msk.bf16.gmra.mxu1 %vm538_vm0, %v6530_v7 }
 0x2a4   : > { %v5929_v36 = vpop.f32.mrf.mxu1 }
 0x2a5   : > { %v1178_v37 = vadd.f32 %v5929_v36, %v7016_v59 }
 0x2a6   : > { %v1145_v38 = vpop.f32.mrf.mxu1 }
 0x2a7   : > { %v7077_v39 = vadd.f32 %v1145_v38, %v7018_v62  ;;  %v6742_v62 = vmov 0.0  }
 0x2a8   : > { %v5930_v40 = vpop.f32.mrf.mxu1  ;;  %5971 = vmatprep.subr.bf16.mxu0 %v6742_v62  ;;  %5983 = vmatprep.subr.bf16.mxu1 %v6742_v62 }
 0x2a9   : > { %v1179_v41 = vadd.f32 %v5930_v40, %v7020_v1  ;;  %5991 = vmatprep.mubr.msk.bf16.mxu1 %vm6743_vm3, %v6742_v62  ;;  %v5169_v1 = vld [vmem:[%s7946_s3] ss:$0 sm:$0xff] }
 0x2aa   : > { %v1148_v42 = vpop.f32.mrf.mxu1 }
 0x2ab   : > { %v1177_v5 = vadd.f32 %v1148_v42, %v929_v30  ;;  %v6536_v42 = vld [vmem:[%s7947_s4 + $0x8] sm:$0x1f]  }
 0x2ac   : > { %v5933_v43 = vpop.f32.mrf.mxu1 }
 0x2ad   : > { %v1182_v44 = vadd.f32 %v5933_v43, %v7026_v13  ;;  %v6537_v43 = vld [vmem:[%s7948_s5 + $0x18] sm:$0xff]  }
 0x2ae   : > { %v1161_v45 = vpop.f32.mrf.mxu1 }
 0x2af   : > { %v1180_v46 = vadd.f32 %v1161_v45, %v7028_v16  ;;  %v6539_v45 = vld [vmem:[%s7948_s5 + $0x10] sm:$0xff]  }
 0x2b0   : > { %v5934_v47 = vpop.f32.mrf.mxu1 }
 0x2b1   : > { %v1183_v48 = vadd.f32 %v5934_v47, %v953_v19 }
 0x2b2   : > { %v1164_v49 = vpop.f32.mrf.mxu1 }
 0x2b3   : > { %v1181_v26 = vadd.f32 %v1164_v49, %v945_v23  ;;  %v6545_v23 = vld [vmem:[%s7948_s5 + $0x38] sm:$0xff]  }
 0x2bc   : > { %v5949_v50 = vpop.f32.mrf.mxu1 }
 0x2be   : > { %v1259_v51 = vpop.f32.mrf.mxu1 }
 0x2c0   : > { %v5950_v52 = vpop.f32.mrf.mxu1 }
 0x2c1   : > { %v1291_v55 = vpack.c.bf16 %v5950_v52, %v5949_v50 }
 0x2c2   : > { %v1262_v53 = vpop.f32.mrf.mxu1 }
 0x2c3   : > { %v1290_v54 = vpack.c.bf16 %v1262_v53, %v1259_v51 }
 0x2c4   : > { %v5953_v56 = vpop.f32.mrf.mxu1 }
 0x2c5   : > { %5963 = vmatprep.mubr.msk.bf16.mxu0 %vm777_vm2, %v1290_v54 }
 0x2c6   : > { %v1275_v57 = vpop.f32.mrf.mxu1  ;;  %5964 = vmatmul.mubr.msk.bf16.vlgmr.msra.gmra.mxu0 %vm777_vm2, %v1291_v55 }
 0x2c8   : > { %v5954_v58 = vpop.f32.mrf.mxu1 }
 0x2c9   : > { %v1293_v61 = vpack.c.bf16 %v5954_v58, %v5953_v56  ;;  %v6542_v58 = vld [vmem:[%s7948_s5 + $0x28] sm:$0xff]  }
 0x2ca   : > { %v1278_v59 = vpop.f32.mrf.mxu1 }
 0x2cb   : > { %v1292_v60 = vpack.c.bf16 %v1278_v59, %v1275_v57  ;;  %v6541_v57 = vld [vmem:[%s7947_s4 + $0x10] sm:$0x1f]   ;;  %v6543_v59 = vld [vmem:[%s7948_s5 + $0x20] sm:$0xff]  }
 0x2cd   : > { %5967 = vmatprep.mubr.msk.bf16.mxu0 %vm777_vm2, %v1292_v60 }
 0x2ce   : > { %5968 = vmatmul.mubr.msk.bf16.gmra.mxu0 %vm777_vm2, %v1293_v61 }
 0x2cf   : > { %5979 = vmatprep.mubr.msk.bf16.mxu0 %vm6743_vm3, %v6742_v62 }
 0x386   : > { %v5965_v63 = vpop.f32.mrf.mxu0 }
 0x387   : > { %v1406_v0 = vadd.f32 %v5965_v63, %v1178_v37 }
 0x388   : > { %v1373_v11 = vpop.f32.mrf.mxu0 }
 0x389   : > { %v1421_v13 = vadd.f32 %v5169_v1, %v1406_v0  ;;  %v1404_v35 = vadd.f32 %v1373_v11, %v7077_v39 }
 0x38a   : > { %v5966_v12 = vpop.f32.mrf.mxu0 }
 0x38b   : > { %v1407_v14 = vadd.f32 %v5966_v12, %v1179_v41  ;;  %v1429_v18 = vmax.f32 %v1421_v13, 0.0  ;;  %v1419_v37 = vadd.f32 %v5169_v1, %v1404_v35  ;;  %v6535_v41 = vld [vmem:[%s7947_s4] sm:$0x1f]  }
 0x38c   : > { %v1376_v15 = vpop.f32.mrf.mxu0 }
 0x38d   : > { %v1422_v16 = vadd.f32 %v5169_v1, %v1407_v14  ;;  %v1405_v10 = vadd.f32 %v1376_v15, %v1177_v5  ;;  %v1427_v39 = vmax.f32 %v1419_v37, 0.0 }
 0x38e   : > { %v5969_v17 = vpop.f32.mrf.mxu0 }
 0x38f   : > { %v1430_v19 = vmax.f32 %v1422_v16, 0.0  ;;  %v1410_v21 = vadd.f32 %v5969_v17, %v1182_v44  ;;  %v1420_v3 = vadd.f32 %v5169_v1, %v1405_v10  ;;  %v6538_v44 = vld [vmem:[%s7948_s5 + $0x8] sm:$0xff]   ;;  %v6549_v10 = vld [vmem:[%s7948_s5 + $0x40] sm:$0xff]  }
 0x390   : > { %v1389_v22 = vpop.f32.mrf.mxu0 }
 0x391   : > { %v7096_v24 = vpack.c.bf16 %v1430_v19, %v1429_v18  ;;  %v1425_v27 = vadd.f32 %v5169_v1, %v1410_v21  ;;  %v1408_v28 = vadd.f32 %v1389_v22, %v1180_v46  ;;  %v1428_v38 = vmax.f32 %v1420_v3, 0.0  ;;  %v6540_v46 = vld [vmem:[%s7948_s5] sm:$0xff]   ;;  %v6544_v22 = vld [vmem:[%s7947_s4 + $0x18] sm:$0x1f]  }
 0x392   : > { %v5970_v25 = vpop.f32.mrf.mxu0 }
 0x393   : > { %v1411_v29 = vadd.f32 %v5970_v25, %v1183_v48  ;;  %v1433_v6 = vmax.f32 %v1425_v27, 0.0  ;;  %v1423_v7 = vadd.f32 %v5169_v1, %v1408_v28  ;;  %v7117_v40 = vpack.c.bf16 %v1428_v38, %v1427_v39  ;;  %v6546_v25 = vld [vmem:[%s7948_s5 + $0x30] sm:$0xff]  }
 0x394   : > { %v1392_v31 = vpop.f32.mrf.mxu0 }
 0x395   : > { %v1426_v32 = vadd.f32 %v5169_v1, %v1411_v29  ;;  %v1409_v33 = vadd.f32 %v1392_v31, %v1181_v26  ;;  %v1431_v36 = vmax.f32 %v1423_v7, 0.0 }
 0x397   : > { %v1434_v8 = vmax.f32 %v1426_v32, 0.0  ;;  %v1424_v9 = vadd.f32 %v5169_v1, %v1409_v33 }
 0x399   : > { %v7100_v20 = vpack.c.bf16 %v1434_v8, %v1433_v6  ;;  %v1432_v34 = vmax.f32 %v1424_v9, 0.0  ;;  %v6547_v8 = vld [vmem:[%s7947_s4 + $0x20] sm:$0x1f]   ;;  %v6548_v9 = vld [vmem:[%s7948_s5 + $0x48] sm:$0xff]  }
 0x39b   : > { %5972 = vmatpush3.bf16.msra.mxu0 %v7100_v20  ;;  %5984 = vmatpush3.bf16.msra.mxu1 %v7100_v20  ;;  %v7107_v4 = vpack.c.bf16 %v1432_v34, %v1431_v36 }
 0x39c   : > { %5973 = vmatprep.subr.bf16.mxu0 %v6742_v62  ;;  %5985 = vmatprep.subr.bf16.mxu1 %v6742_v62 }
 0x39f   : > { %5974 = vmatpush3.bf16.msra.mxu0 %v7107_v4  ;;  %5986 = vmatpush3.bf16.msra.mxu1 %v7107_v4 }
 0x3a0   : > { %5975 = vmatprep.subr.bf16.mxu0 %v6742_v62  ;;  %5987 = vmatprep.subr.bf16.mxu1 %v6742_v62 }
 0x3a3   : > { %5976 = vmatpush3.bf16.msra.mxu0 %v7096_v24  ;;  %5988 = vmatpush3.bf16.msra.mxu1 %v7096_v24 }
 0x3a4   : > { %5977 = vmatprep.subr.bf16.mxu0 %v6742_v62  ;;  %5989 = vmatprep.subr.bf16.mxu1 %v6742_v62 }
 0x3a7   : > { %5978 = vmatpush3.bf16.msra.mxu0 %v7117_v40  ;;  %5990 = vmatpush3.bf16.msra.mxu1 %v7117_v40 }
 0x3a8   : > { %5995 = vmatprep.subr.bf16.mxu0 %v6742_v62  ;;  %6003 = vmatprep.subr.bf16.mxu1 %v6742_v62 }
 0x3aa   : > { %5980 = vmatmul.mubr.msk.bf16.vlgmr.msra.gmra.mxu0 %vm777_vm2, %v6535_v41  ;;  %5992 = vmatmul.mubr.msk.bf16.vlgmr.msra.gmra.mxu1 %vm777_vm2, %v6536_v42 }
 0x3ab   : > { %5996 = vmatpush3.bf16.msra.mxu0 %v6537_v43  ;;  %5999 = vmatprep.mubr.msk.bf16.mxu0 %vm6743_vm3, %v6742_v62 }
 0x3ac   : > { %5997 = vmatprep.subr.bf16.mxu0 %v6742_v62  ;;  %6007 = vmatprep.mubr.msk.bf16.mxu1 %vm6743_vm3, %v6742_v62 }
 0x3ad   : > { %6004 = vmatpush3.bf16.msra.mxu1 %v6538_v44 }
 0x3ae   : > { %6005 = vmatprep.subr.bf16.mxu1 %v6742_v62 }
 0x3af   : > { %5998 = vmatpush3.bf16.msra.mxu0 %v6539_v45  ;;  %v6550_v45 = vld [vmem:[%s7947_s4 + $0x28] sm:$0x1f]  }
 0x3b0   : > { %6011 = vmatprep.subr.bf16.mxu0 %v6742_v62 }
 0x3b1   : > { %6006 = vmatpush3.bf16.msra.mxu1 %v6540_v46  ;;  %v6551_v46 = vld [vmem:[%s7948_s5 + $0x58] sm:$0xff]  }
 0x3b2   : > { %6023 = vmatprep.subr.bf16.mxu1 %v6742_v62 }
 0x46a   : > { %v1483_v47 = vpop.f32.mrf.mxu0  ;;  %v1540_v48 = vpop.f32.mrf.mxu1 }
 0x46c   : > { %v5981_v49 = vpop.f32.mrf.mxu0  ;;  %v5993_v50 = vpop.f32.mrf.mxu1 }
 0x46e   : > { %v1486_v51 = vpop.f32.mrf.mxu0  ;;  %v1543_v52 = vpop.f32.mrf.mxu1 }
 0x46f   : > { %v1490_v53 = vpack.c.bf16 %v1486_v51, %v1483_v47  ;;  %v1547_v54 = vpack.c.bf16 %v1543_v52, %v1540_v48  ;;  %v6552_v47 = vld [vmem:[%s7948_s5 + $0x50] sm:$0xff]  }
 0x470   : > { %v5994_v55 = vpop.f32.mrf.mxu1  ;;  %v5982_v56 = vpop.f32.mrf.mxu0 }
 0x471   : > { %6000 = vmatmul.mubr.msk.bf16.vlgmr.msra.gmra.mxu0 %vm1565_vm4, %v1547_v54  ;;  %6008 = vmatmul.mubr.msk.bf16.vlgmr.msra.gmra.mxu1 %vm1565_vm4, %v1490_v53 }
 0x472   : > { %6012 = vmatpush3.bf16.msra.mxu0 %v7100_v20  ;;  %6019 = vmatprep.mubr.msk.bf16.mxu0 %vm6743_vm3, %v6742_v62 }
 0x473   : > { %6013 = vmatprep.subr.bf16.mxu0 %v6742_v62  ;;  %6027 = vmatprep.mubr.msk.bf16.mxu1 %vm6743_vm3, %v6742_v62 }
 0x474   : > { %6024 = vmatpush3.bf16.msra.mxu1 %v6542_v58 }
 0x475   : > { %6025 = vmatprep.subr.bf16.mxu1 %v6742_v62 }
 0x476   : > { %6014 = vmatpush3.bf16.msra.mxu0 %v7107_v4 }
 0x477   : > { %6015 = vmatprep.subr.bf16.mxu0 %v6742_v62 }
 0x478   : > { %6026 = vmatpush3.bf16.msra.mxu1 %v6543_v59  ;;  %v6553_v59 = vld [vmem:[%s7947_s4 + $0x30] sm:$0x1f]  }
 0x479   : > { %6031 = vmatprep.subr.bf16.mxu1 %v6742_v62 }
 0x47a   : > { %6016 = vmatpush3.bf16.msra.mxu0 %v7096_v24 }
 0x47b   : > { %6017 = vmatprep.subr.bf16.mxu0 %v6742_v62 }
 0x47e   : > { %6018 = vmatpush3.bf16.msra.mxu0 %v7117_v40 }
 0x47f   : > { %6043 = vmatprep.subr.bf16.mxu0 %v6742_v62 }
 0x481   : > { %6020 = vmatmul.mubr.msk.bf16.vlgmr.msra.gmra.mxu0 %vm777_vm2, %v6541_v57 }
 0x482   : > { %6047 = vmatprep.mubr.msk.bf16.mxu0 %vm6743_vm3, %v6742_v62  ;;  %6044 = vmatpush3.bf16.msra.mxu0 %v6545_v23 }
 0x483   : > { %6045 = vmatprep.subr.bf16.mxu0 %v6742_v62 }
 0x486   : > { %6046 = vmatpush3.bf16.msra.mxu0 %v6546_v25 }
 0x487   : > { %6051 = vmatprep.subr.bf16.mxu0 %v6742_v62 }
 0x531   : > { %v1603_v60 = vpop.f32.mrf.mxu0  ;;  %v1659_v61 = vpop.f32.mrf.mxu1 }
 0x532   : > { %v1660_v63 = vadd.f32 %v1659_v61, %v1603_v60  ;;  %v6554_v60 = vld [vmem:[%s7948_s5 + $0x68] sm:$0xff]   ;;  %v6555_v61 = vld [vmem:[%s7948_s5 + $0x60] sm:$0xff]  }
 0x533   : > { %v6001_v0 = vpop.f32.mrf.mxu0  ;;  %v6009_v1 = vpop.f32.mrf.mxu1 }
 0x535   : > { %v1606_v11 = vpop.f32.mrf.mxu0  ;;  %v1662_v12 = vpop.f32.mrf.mxu1 }
 0x536   : > { %v1663_v13 = vadd.f32 %v1662_v12, %v1606_v11 }
 0x537   : > { %v6002_v14 = vpop.f32.mrf.mxu0  ;;  %v6010_v15 = vpop.f32.mrf.mxu1 }
 0x541   : > { %v1711_v16 = vpop.f32.mrf.mxu0 }
 0x543   : > { %v6021_v17 = vpop.f32.mrf.mxu0 }
 0x545   : > { %v1714_v18 = vpop.f32.mrf.mxu0 }
 0x546   : > { %v1718_v19 = vpack.c.bf16 %v1714_v18, %v1711_v16 }
 0x547   : > { %v6022_v21 = vpop.f32.mrf.mxu0 }
 0x548   : > { %6028 = vmatmul.mubr.msk.bf16.vlgmr.msra.gmra.mxu1 %vm1565_vm4, %v1718_v19  ;;  %v6556_v19 = vld [vmem:[%s7947_s4 + $0x38] sm:$0x1f]  }
 0x549   : > { %6032 = vmatpush3.bf16.msra.mxu1 %v7100_v20  ;;  %6039 = vmatprep.mubr.msk.bf16.mxu1 %vm6743_vm3, %v6742_v62  ;;  %v6557_v21 = vld [vmem:[%s7948_s5 + $0x78] sm:$0xff]  }
 0x54a   : > { %6033 = vmatprep.subr.bf16.mxu1 %v6742_v62 }
 0x54d   : > { %6034 = vmatpush3.bf16.msra.mxu1 %v7107_v4 }
 0x54e   : > { %6035 = vmatprep.subr.bf16.mxu1 %v6742_v62 }
 0x551   : > { %6036 = vmatpush3.bf16.msra.mxu1 %v7096_v24 }
 0x552   : > { %6037 = vmatprep.subr.bf16.mxu1 %v6742_v62 }
 0x555   : > { %6038 = vmatpush3.bf16.msra.mxu1 %v7117_v40 }
 0x556   : > { %6063 = vmatprep.subr.bf16.mxu1 %v6742_v62 }
 0x558   : > { %6040 = vmatmul.mubr.msk.bf16.vlgmr.msra.gmra.mxu1 %vm777_vm2, %v6544_v22  ;;  %v6558_v22 = vld [vmem:[%s7948_s5 + $0x70] sm:$0xff]  }
 0x559   : > { %6067 = vmatprep.mubr.msk.bf16.mxu1 %vm6743_vm3, %v6742_v62  ;;  %6064 = vmatpush3.bf16.msra.mxu1 %v6548_v9 }
 0x55a   : > { %6065 = vmatprep.subr.bf16.mxu1 %v6742_v62 }
 0x55d   : > { %6066 = vmatpush3.bf16.msra.mxu1 %v6549_v10 }
 0x55e   : > { %6071 = vmatprep.subr.bf16.mxu1 %v6742_v62 }
 0x608   : > { %v1773_v26 = vpop.f32.mrf.mxu1 }
 0x609   : > { %v1780_v27 = vadd.f32 %v1773_v26, %v1660_v63 }
 0x60a   : > { %v6029_v28 = vpop.f32.mrf.mxu1 }
 0x60c   : > { %v1776_v29 = vpop.f32.mrf.mxu1 }
 0x60d   : > { %v1781_v30 = vadd.f32 %v1776_v29, %v1663_v13 }
 0x60e   : > { %v6030_v31 = vpop.f32.mrf.mxu1 }
 0x618   : > { %v1827_v32 = vpop.f32.mrf.mxu1 }
 0x61a   : > { %v6041_v33 = vpop.f32.mrf.mxu1 }
 0x61c   : > { %v1830_v5 = vpop.f32.mrf.mxu1 }
 0x61d   : > { %v1834_v6 = vpack.c.bf16 %v1830_v5, %v1827_v32 }
 0x61e   : > { %v6042_v7 = vpop.f32.mrf.mxu1 }
 0x61f   : > { %6048 = vmatmul.mubr.msk.bf16.vlgmr.msra.gmra.mxu0 %vm1565_vm4, %v1834_v6  ;;  %v6559_v6 = vld [vmem:[%s7947_s4 + $0x40] sm:$0x1f]   ;;  %v6560_v7 = vld [vmem:[%s7948_s5 + $0x88] sm:$0xff]  }
 0x620   : > { %6052 = vmatpush3.bf16.msra.mxu0 %v7100_v20  ;;  %6059 = vmatprep.mubr.msk.bf16.mxu0 %vm6743_vm3, %v6742_v62 }
 0x621   : > { %6053 = vmatprep.subr.bf16.mxu0 %v6742_v62 }
 0x624   : > { %6054 = vmatpush3.bf16.msra.mxu0 %v7107_v4 }
 0x625   : > { %6055 = vmatprep.subr.bf16.mxu0 %v6742_v62 }
 0x628   : > { %6056 = vmatpush3.bf16.msra.mxu0 %v7096_v24 }
 0x629   : > { %6057 = vmatprep.subr.bf16.mxu0 %v6742_v62 }
 0x62c   : > { %6058 = vmatpush3.bf16.msra.mxu0 %v7117_v40 }
 0x62d   : > { %6083 = vmatprep.subr.bf16.mxu0 %v6742_v62 }
 0x62f   : > { %6060 = vmatmul.mubr.msk.bf16.vlgmr.msra.gmra.mxu0 %vm777_vm2, %v6547_v8  ;;  %v6561_v8 = vld [vmem:[%s7948_s5 + $0x80] sm:$0xff]  }
 0x630   : > { %6087 = vmatprep.mubr.msk.bf16.mxu0 %vm6743_vm3, %v6742_v62  ;;  %6084 = vmatpush3.bf16.msra.mxu0 %v6551_v46 }
 0x631   : > { %6085 = vmatprep.subr.bf16.mxu0 %v6742_v62 }
 0x634   : > { %6086 = vmatpush3.bf16.msra.mxu0 %v6552_v47 }
 0x635   : > { %6091 = vmatprep.subr.bf16.mxu0 %v6742_v62 }
 0x6df   : > { %v1889_v34 = vpop.f32.mrf.mxu0 }
 0x6e0   : > { %v1896_v35 = vadd.f32 %v1889_v34, %v1780_v27 }
 0x6e1   : > { %v6049_v36 = vpop.f32.mrf.mxu0 }
 0x6e3   : > { %v1892_v3 = vpop.f32.mrf.mxu0 }
 0x6e4   : > { %v1897_v37 = vadd.f32 %v1892_v3, %v1781_v30 }
 0x6e5   : > { %v6050_v38 = vpop.f32.mrf.mxu0 }
 0x6ef   : > { %v1943_v39 = vpop.f32.mrf.mxu0 }
 0x6f1   : > { %v6061_v41 = vpop.f32.mrf.mxu0 }
 0x6f3   : > { %v1946_v42 = vpop.f32.mrf.mxu0 }
 0x6f4   : > { %v1950_v43 = vpack.c.bf16 %v1946_v42, %v1943_v39 }
 0x6f5   : > { %v6062_v44 = vpop.f32.mrf.mxu0 }
 0x6f6   : > { %6068 = vmatmul.mubr.msk.bf16.vlgmr.msra.gmra.mxu1 %vm1565_vm4, %v1950_v43  ;;  %v6562_v43 = vld [vmem:[%s7947_s4 + $0x48] sm:$0x1f]   ;;  %v6563_v44 = vld [vmem:[%s7948_s5 + $0x98] sm:$0xff]  }
 0x6f7   : > { %6072 = vmatpush3.bf16.msra.mxu1 %v7100_v20  ;;  %6079 = vmatprep.mubr.msk.bf16.mxu1 %vm6743_vm3, %v6742_v62 }
 0x6f8   : > { %6073 = vmatprep.subr.bf16.mxu1 %v6742_v62 }
 0x6fb   : > { %6074 = vmatpush3.bf16.msra.mxu1 %v7107_v4 }
 0x6fc   : > { %6075 = vmatprep.subr.bf16.mxu1 %v6742_v62 }
 0x6ff   : > { %6076 = vmatpush3.bf16.msra.mxu1 %v7096_v24 }
 0x700   : > { %6077 = vmatprep.subr.bf16.mxu1 %v6742_v62 }
 0x703   : > { %6078 = vmatpush3.bf16.msra.mxu1 %v7117_v40 }
 0x704   : > { %6103 = vmatprep.subr.bf16.mxu1 %v6742_v62 }
 0x706   : > { %6080 = vmatmul.mubr.msk.bf16.vlgmr.msra.gmra.mxu1 %vm777_vm2, %v6550_v45  ;;  %v6564_v45 = vld [vmem:[%s7948_s5 + $0x90] sm:$0xff]  }
 0x707   : > { %6107 = vmatprep.mubr.msk.bf16.mxu1 %vm6743_vm3, %v6742_v62  ;;  %6104 = vmatpush3.bf16.msra.mxu1 %v6554_v60 }
 0x708   : > { %6105 = vmatprep.subr.bf16.mxu1 %v6742_v62 }
 0x70b   : > { %6106 = vmatpush3.bf16.msra.mxu1 %v6555_v61 }
 0x70c   : > { %6111 = vmatprep.subr.bf16.mxu1 %v6742_v62 }
 0x7b6   : > { %v2005_v48 = vpop.f32.mrf.mxu1 }
 0x7b7   : > { %v2012_v49 = vadd.f32 %v2005_v48, %v1896_v35 }
 0x7b8   : > { %v6069_v50 = vpop.f32.mrf.mxu1 }
 0x7ba   : > { %v2008_v51 = vpop.f32.mrf.mxu1 }
 0x7bb   : > { %v2013_v52 = vadd.f32 %v2008_v51, %v1897_v37 }
 0x7bc   : > { %v6070_v53 = vpop.f32.mrf.mxu1 }
 0x7c6   : > { %v2059_v54 = vpop.f32.mrf.mxu1 }
 0x7c8   : > { %v6081_v55 = vpop.f32.mrf.mxu1 }
 0x7ca   : > { %v2062_v56 = vpop.f32.mrf.mxu1 }
 0x7cb   : > { %v2066_v57 = vpack.c.bf16 %v2062_v56, %v2059_v54 }
 0x7cc   : > { %v6082_v58 = vpop.f32.mrf.mxu1 }
 0x7cd   : > { %6088 = vmatmul.mubr.msk.bf16.vlgmr.msra.gmra.mxu0 %vm1565_vm4, %v2066_v57  ;;  %v6565_v57 = vld [vmem:[%s7947_s4 + $0x50] sm:$0x1f]   ;;  %v6566_v58 = vld [vmem:[%s7948_s5 + $0xa8] sm:$0xff]  }
 0x7ce   : > { %6092 = vmatpush3.bf16.msra.mxu0 %v7100_v20  ;;  %6099 = vmatprep.mubr.msk.bf16.mxu0 %vm6743_vm3, %v6742_v62 }
 0x7cf   : > { %6093 = vmatprep.subr.bf16.mxu0 %v6742_v62 }
 0x7d2   : > { %6094 = vmatpush3.bf16.msra.mxu0 %v7107_v4 }
 0x7d3   : > { %6095 = vmatprep.subr.bf16.mxu0 %v6742_v62 }
 0x7d6   : > { %6096 = vmatpush3.bf16.msra.mxu0 %v7096_v24 }
 0x7d7   : > { %6097 = vmatprep.subr.bf16.mxu0 %v6742_v62 }
 0x7da   : > { %6098 = vmatpush3.bf16.msra.mxu0 %v7117_v40 }
 0x7db   : > { %6123 = vmatprep.subr.bf16.mxu0 %v6742_v62 }
 0x7dd   : > { %6100 = vmatmul.mubr.msk.bf16.vlgmr.msra.gmra.mxu0 %vm777_vm2, %v6553_v59  ;;  %v6567_v59 = vld [vmem:[%s7948_s5 + $0xa0] sm:$0xff]  }
 0x7de   : > { %6127 = vmatprep.mubr.msk.bf16.mxu0 %vm6743_vm3, %v6742_v62  ;;  %6124 = vmatpush3.bf16.msra.mxu0 %v6557_v21 }
 0x7df   : > { %6125 = vmatprep.subr.bf16.mxu0 %v6742_v62 }
 0x7e2   : > { %6126 = vmatpush3.bf16.msra.mxu0 %v6558_v22 }
 0x7e3   : > { %6131 = vmatprep.subr.bf16.mxu0 %v6742_v62 }
 0x88d   : > { %v2121_v63 = vpop.f32.mrf.mxu0 }
 0x88e   : > { %v2128_v0 = vadd.f32 %v2121_v63, %v2012_v49 }
 0x88f   : > { %v6089_v1 = vpop.f32.mrf.mxu0 }
 0x891   : > { %v2124_v11 = vpop.f32.mrf.mxu0 }
 0x892   : > { %v2129_v12 = vadd.f32 %v2124_v11, %v2013_v52 }
 0x893   : > { %v6090_v13 = vpop.f32.mrf.mxu0 }
 0x89d   : > { %v2175_v14 = vpop.f32.mrf.mxu0 }
 0x89f   : > { %v6101_v15 = vpop.f32.mrf.mxu0 }
 0x8a1   : > { %v2178_v16 = vpop.f32.mrf.mxu0 }
 0x8a2   : > { %v2182_v17 = vpack.c.bf16 %v2178_v16, %v2175_v14 }
 0x8a3   : > { %v6102_v18 = vpop.f32.mrf.mxu0 }
 0x8a4   : > { %6108 = vmatmul.mubr.msk.bf16.vlgmr.msra.gmra.mxu1 %vm1565_vm4, %v2182_v17  ;;  %v6568_v17 = vld [vmem:[%s7947_s4 + $0x58] sm:$0x1f]  }
 0x8a5   : > { %6112 = vmatpush3.bf16.msra.mxu1 %v7100_v20  ;;  %6119 = vmatprep.mubr.msk.bf16.mxu1 %vm6743_vm3, %v6742_v62  ;;  %v6569_v18 = vld [vmem:[%s7948_s5 + $0xb8] sm:$0xff]  }
 0x8a6   : > { %6113 = vmatprep.subr.bf16.mxu1 %v6742_v62 }
 0x8a9   : > { %6114 = vmatpush3.bf16.msra.mxu1 %v7107_v4 }
 0x8aa   : > { %6115 = vmatprep.subr.bf16.mxu1 %v6742_v62 }
 0x8ad   : > { %6116 = vmatpush3.bf16.msra.mxu1 %v7096_v24 }
 0x8ae   : > { %6117 = vmatprep.subr.bf16.mxu1 %v6742_v62 }
 0x8b1   : > { %6118 = vmatpush3.bf16.msra.mxu1 %v7117_v40 }
 0x8b2   : > { %6143 = vmatprep.subr.bf16.mxu1 %v6742_v62 }
 0x8b4   : > { %6120 = vmatmul.mubr.msk.bf16.vlgmr.msra.gmra.mxu1 %vm777_vm2, %v6556_v19  ;;  %v6570_v19 = vld [vmem:[%s7948_s5 + $0xb0] sm:$0xff]  }
 0x8b5   : > { %6147 = vmatprep.mubr.msk.bf16.mxu1 %vm6743_vm3, %v6742_v62  ;;  %6144 = vmatpush3.bf16.msra.mxu1 %v6560_v7 }
 0x8b6   : > { %6145 = vmatprep.subr.bf16.mxu1 %v6742_v62 }
 0x8b9   : > { %6146 = vmatpush3.bf16.msra.mxu1 %v6561_v8 }
 0x8ba   : > { %6151 = vmatprep.subr.bf16.mxu1 %v6742_v62 }
 0x964   : > { %v2237_v23 = vpop.f32.mrf.mxu1 }
 0x965   : > { %v2244_v25 = vadd.f32 %v2237_v23, %v2128_v0 }
 0x966   : > { %v6109_v26 = vpop.f32.mrf.mxu1 }
 0x968   : > { %v2240_v27 = vpop.f32.mrf.mxu1 }
 0x969   : > { %v2245_v28 = vadd.f32 %v2240_v27, %v2129_v12 }
 0x96a   : > { %v6110_v29 = vpop.f32.mrf.mxu1 }
 0x974   : > { %v2291_v30 = vpop.f32.mrf.mxu1 }
 0x976   : > { %v6121_v31 = vpop.f32.mrf.mxu1 }
 0x978   : > { %v2294_v32 = vpop.f32.mrf.mxu1 }
 0x979   : > { %v2298_v33 = vpack.c.bf16 %v2294_v32, %v2291_v30 }
 0x97a   : > { %v6122_v5 = vpop.f32.mrf.mxu1 }
 0x97b   : > { %6128 = vmatmul.mubr.msk.bf16.vlgmr.msra.gmra.mxu0 %vm1565_vm4, %v2298_v33  ;;  %v6571_v33 = vld [vmem:[%s7947_s4 + $0x60] sm:$0x1f]   ;;  %v6572_v5 = vld [vmem:[%s7948_s5 + $0xc8] sm:$0xff]  }
 0x97c   : > { %6132 = vmatpush3.bf16.msra.mxu0 %v7100_v20  ;;  %6139 = vmatprep.mubr.msk.bf16.mxu0 %vm6743_vm3, %v6742_v62 }
 0x97d   : > { %6133 = vmatprep.subr.bf16.mxu0 %v6742_v62 }
 0x980   : > { %6134 = vmatpush3.bf16.msra.mxu0 %v7107_v4 }
 0x981   : > { %6135 = vmatprep.subr.bf16.mxu0 %v6742_v62 }
 0x984   : > { %6136 = vmatpush3.bf16.msra.mxu0 %v7096_v24 }
 0x985   : > { %6137 = vmatprep.subr.bf16.mxu0 %v6742_v62 }
 0x988   : > { %6138 = vmatpush3.bf16.msra.mxu0 %v7117_v40 }
 0x989   : > { %6163 = vmatprep.subr.bf16.mxu0 %v6742_v62 }
 0x98b   : > { %6140 = vmatmul.mubr.msk.bf16.vlgmr.msra.gmra.mxu0 %vm777_vm2, %v6559_v6  ;;  %v6573_v6 = vld [vmem:[%s7948_s5 + $0xc0] sm:$0xff]  }
 0x98c   : > { %6167 = vmatprep.mubr.msk.bf16.mxu0 %vm6743_vm3, %v6742_v62  ;;  %6164 = vmatpush3.bf16.msra.mxu0 %v6563_v44 }
 0x98d   : > { %6165 = vmatprep.subr.bf16.mxu0 %v6742_v62 }
 0x990   : > { %6166 = vmatpush3.bf16.msra.mxu0 %v6564_v45 }
 0x991   : > { %6171 = vmatprep.subr.bf16.mxu0 %v6742_v62 }
 0xa3b   : > { %v2353_v9 = vpop.f32.mrf.mxu0 }
 0xa3c   : > { %v2360_v10 = vadd.f32 %v2353_v9, %v2244_v25 }
 0xa3d   : > { %v6129_v34 = vpop.f32.mrf.mxu0 }
 0xa3f   : > { %v2356_v35 = vpop.f32.mrf.mxu0 }
 0xa40   : > { %v2361_v36 = vadd.f32 %v2356_v35, %v2245_v28 }
 0xa41   : > { %v6130_v3 = vpop.f32.mrf.mxu0 }
 0xa4b   : > { %v2407_v37 = vpop.f32.mrf.mxu0 }
 0xa4d   : > { %v6141_v38 = vpop.f32.mrf.mxu0 }
 0xa4f   : > { %v2410_v39 = vpop.f32.mrf.mxu0 }
 0xa50   : > { %v2414_v41 = vpack.c.bf16 %v2410_v39, %v2407_v37 }
 0xa51   : > { %v6142_v42 = vpop.f32.mrf.mxu0 }
 0xa52   : > { %6148 = vmatmul.mubr.msk.bf16.vlgmr.msra.gmra.mxu1 %vm1565_vm4, %v2414_v41  ;;  %v6574_v41 = vld [vmem:[%s7947_s4 + $0x68] sm:$0x1f]   ;;  %v6575_v42 = vld [vmem:[%s7948_s5 + $0xd8] sm:$0xff]  }
 0xa53   : > { %6152 = vmatpush3.bf16.msra.mxu1 %v7100_v20  ;;  %6159 = vmatprep.mubr.msk.bf16.mxu1 %vm6743_vm3, %v6742_v62 }
 0xa54   : > { %6153 = vmatprep.subr.bf16.mxu1 %v6742_v62 }
 0xa57   : > { %6154 = vmatpush3.bf16.msra.mxu1 %v7107_v4 }
 0xa58   : > { %6155 = vmatprep.subr.bf16.mxu1 %v6742_v62 }
 0xa5b   : > { %6156 = vmatpush3.bf16.msra.mxu1 %v7096_v24 }
 0xa5c   : > { %6157 = vmatprep.subr.bf16.mxu1 %v6742_v62 }
 0xa5f   : > { %6158 = vmatpush3.bf16.msra.mxu1 %v7117_v40 }
 0xa60   : > { %6183 = vmatprep.subr.bf16.mxu1 %v6742_v62 }
 0xa62   : > { %6160 = vmatmul.mubr.msk.bf16.vlgmr.msra.gmra.mxu1 %vm777_vm2, %v6562_v43  ;;  %v6576_v43 = vld [vmem:[%s7948_s5 + $0xd0] sm:$0xff]  }
 0xa63   : > { %6187 = vmatprep.mubr.msk.bf16.mxu1 %vm6743_vm3, %v6742_v62  ;;  %6184 = vmatpush3.bf16.msra.mxu1 %v6566_v58 }
 0xa64   : > { %6185 = vmatprep.subr.bf16.mxu1 %v6742_v62 }
 0xa67   : > { %6186 = vmatpush3.bf16.msra.mxu1 %v6567_v59 }
 0xa68   : > { %6191 = vmatprep.subr.bf16.mxu1 %v6742_v62 }
 0xb12   : > { %v2469_v46 = vpop.f32.mrf.mxu1 }
 0xb13   : > { %v2476_v47 = vadd.f32 %v2469_v46, %v2360_v10 }
 0xb14   : > { %v6149_v48 = vpop.f32.mrf.mxu1 }
 0xb16   : > { %v2472_v49 = vpop.f32.mrf.mxu1 }
 0xb17   : > { %v2477_v50 = vadd.f32 %v2472_v49, %v2361_v36 }
 0xb18   : > { %v6150_v51 = vpop.f32.mrf.mxu1 }
 0xb22   : > { %v2523_v52 = vpop.f32.mrf.mxu1 }
 0xb24   : > { %v6161_v53 = vpop.f32.mrf.mxu1 }
 0xb26   : > { %v2526_v54 = vpop.f32.mrf.mxu1 }
 0xb27   : > { %v2530_v55 = vpack.c.bf16 %v2526_v54, %v2523_v52 }
 0xb28   : > { %v6162_v56 = vpop.f32.mrf.mxu1 }
 0xb29   : > { %6168 = vmatmul.mubr.msk.bf16.vlgmr.msra.gmra.mxu0 %vm1565_vm4, %v2530_v55  ;;  %v6577_v55 = vld [vmem:[%s7947_s4 + $0x70] sm:$0x1f]   ;;  %v6578_v56 = vld [vmem:[%s7948_s5 + $0xe8] sm:$0xff]  }
 0xb2a   : > { %6172 = vmatpush3.bf16.msra.mxu0 %v7100_v20  ;;  %6179 = vmatprep.mubr.msk.bf16.mxu0 %vm6743_vm3, %v6742_v62 }
 0xb2b   : > { %6173 = vmatprep.subr.bf16.mxu0 %v6742_v62 }
 0xb2e   : > { %6174 = vmatpush3.bf16.msra.mxu0 %v7107_v4 }
 0xb2f   : > { %6175 = vmatprep.subr.bf16.mxu0 %v6742_v62 }
 0xb32   : > { %6176 = vmatpush3.bf16.msra.mxu0 %v7096_v24 }
 0xb33   : > { %6177 = vmatprep.subr.bf16.mxu0 %v6742_v62 }
 0xb36   : > { %6178 = vmatpush3.bf16.msra.mxu0 %v7117_v40 }
 0xb37   : > { %6203 = vmatprep.subr.bf16.mxu0 %v6742_v62 }
 0xb39   : > { %6180 = vmatmul.mubr.msk.bf16.vlgmr.msra.gmra.mxu0 %vm777_vm2, %v6565_v57  ;;  %v6579_v57 = vld [vmem:[%s7948_s5 + $0xe0] sm:$0xff]  }
 0xb3a   : > { %6207 = vmatprep.mubr.msk.bf16.mxu0 %vm6743_vm3, %v6742_v62  ;;  %6204 = vmatpush3.bf16.msra.mxu0 %v6569_v18 }
 0xb3b   : > { %6205 = vmatprep.subr.bf16.mxu0 %v6742_v62 }
 0xb3e   : > { %6206 = vmatpush3.bf16.msra.mxu0 %v6570_v19 }
 0xb3f   : > { %6211 = vmatprep.subr.bf16.mxu0 %v6742_v62 }
 0xbe9   : > { %v2585_v60 = vpop.f32.mrf.mxu0 }
 0xbea   : > { %v2592_v61 = vadd.f32 %v2585_v60, %v2476_v47 }
 0xbeb   : > { %v6169_v63 = vpop.f32.mrf.mxu0 }
 0xbed   : > { %v2588_v0 = vpop.f32.mrf.mxu0 }
 0xbee   : > { %v2593_v1 = vadd.f32 %v2588_v0, %v2477_v50 }
 0xbef   : > { %v6170_v11 = vpop.f32.mrf.mxu0 }
 0xbf9   : > { %v2639_v12 = vpop.f32.mrf.mxu0 }
 0xbfb   : > { %v6181_v13 = vpop.f32.mrf.mxu0 }
 0xbfd   : > { %v2642_v14 = vpop.f32.mrf.mxu0 }
 0xbfe   : > { %v2646_v15 = vpack.c.bf16 %v2642_v14, %v2639_v12 }
 0xbff   : > { %v6182_v16 = vpop.f32.mrf.mxu0 }
 0xc00   : > { %6188 = vmatmul.mubr.msk.bf16.vlgmr.msra.gmra.mxu1 %vm1565_vm4, %v2646_v15  ;;  %v6580_v15 = vld [vmem:[%s7947_s4 + $0x78] sm:$0x1f]  }
 0xc01   : > { %6192 = vmatpush3.bf16.msra.mxu1 %v7100_v20  ;;  %6199 = vmatprep.mubr.msk.bf16.mxu1 %vm6743_vm3, %v6742_v62 }
 0xc02   : > { %6193 = vmatprep.subr.bf16.mxu1 %v6742_v62 }
 0xc05   : > { %6194 = vmatpush3.bf16.msra.mxu1 %v7107_v4 }
 0xc06   : > { %6195 = vmatprep.subr.bf16.mxu1 %v6742_v62 }
 0xc09   : > { %6196 = vmatpush3.bf16.msra.mxu1 %v7096_v24 }
 0xc0a   : > { %6197 = vmatprep.subr.bf16.mxu1 %v6742_v62 }
 0xc0d   : > { %6198 = vmatpush3.bf16.msra.mxu1 %v7117_v40 }
 0xc0e   : > { %6223 = vmatprep.subr.bf16.mxu1 %v6742_v62 }
 0xc10   : > { %6200 = vmatmul.mubr.msk.bf16.vlgmr.msra.gmra.mxu1 %vm777_vm2, %v6568_v17 }
 0xc11   : > { %6227 = vmatprep.mubr.msk.bf16.mxu1 %vm6743_vm3, %v6742_v62  ;;  %6224 = vmatpush3.bf16.msra.mxu1 %v6572_v5 }
 0xc12   : > { %6225 = vmatprep.subr.bf16.mxu1 %v6742_v62 }
 0xc15   : > { %6226 = vmatpush3.bf16.msra.mxu1 %v6573_v6 }
 0xc16   : > { %6231 = vmatprep.subr.bf16.mxu1 %v6742_v62 }
 0xcc0   : > { %v2701_v21 = vpop.f32.mrf.mxu1 }
 0xcc1   : > { %v2708_v22 = vadd.f32 %v2701_v21, %v2592_v61 }
 0xcc2   : > { %v6189_v23 = vpop.f32.mrf.mxu1 }
 0xcc4   : > { %v2704_v25 = vpop.f32.mrf.mxu1 }
 0xcc5   : > { %v2709_v26 = vadd.f32 %v2704_v25, %v2593_v1 }
 0xcc6   : > { %v6190_v27 = vpop.f32.mrf.mxu1 }
 0xcd0   : > { %v2755_v28 = vpop.f32.mrf.mxu1 }
 0xcd2   : > { %v6201_v29 = vpop.f32.mrf.mxu1 }
 0xcd3   : > { %v5340_v29 = vld [vmem:[%s7949_s6] ss:$0 sm:$0xff] }
 0xcd4   : > { %v2758_v30 = vpop.f32.mrf.mxu1 }
 0xcd5   : > { %v2762_v31 = vpack.c.bf16 %v2758_v30, %v2755_v28 }
 0xcd6   : > { %v6202_v32 = vpop.f32.mrf.mxu1 }
 0xcd7   : > { %6208 = vmatmul.mubr.msk.bf16.vlgmr.msra.gmra.mxu0 %vm1565_vm4, %v2762_v31 }
 0xcd8   : > { %6212 = vmatpush3.bf16.msra.mxu0 %v7100_v20  ;;  %6219 = vmatprep.mubr.msk.bf16.mxu0 %vm6743_vm3, %v6742_v62 }
 0xcd9   : > { %6213 = vmatprep.subr.bf16.mxu0 %v6742_v62 }
 0xcdc   : > { %6214 = vmatpush3.bf16.msra.mxu0 %v7107_v4 }
 0xcdd   : > { %6215 = vmatprep.subr.bf16.mxu0 %v6742_v62 }
 0xce0   : > { %6216 = vmatpush3.bf16.msra.mxu0 %v7096_v24 }
 0xce1   : > { %6217 = vmatprep.subr.bf16.mxu0 %v6742_v62 }
 0xce4   : > { %6218 = vmatpush3.bf16.msra.mxu0 %v7117_v40 }
 0xce5   : > { %6243 = vmatprep.subr.bf16.mxu0 %v6742_v62 }
 0xce7   : > { %6220 = vmatmul.mubr.msk.bf16.vlgmr.msra.gmra.mxu0 %vm777_vm2, %v6571_v33 }
 0xce8   : > { %6247 = vmatprep.mubr.msk.bf16.mxu0 %vm6743_vm3, %v6742_v62  ;;  %6244 = vmatpush3.bf16.msra.mxu0 %v6575_v42  ;;  %v6587_v42 = vld [vmem:[%s7951_s8 + $0x10] sm:$0xff]  }
 0xce9   : > { %6245 = vmatprep.subr.bf16.mxu0 %v6742_v62 }
 0xcec   : > { %6246 = vmatpush3.bf16.msra.mxu0 %v6576_v43  ;;  %v6586_v43 = vld [vmem:[%s7951_s8 + $0x28] sm:$0xff]  }
 0xced   : > { %6251 = vmatprep.subr.bf16.mxu0 %v6742_v62 }
 0xd97   : > { %v2817_v7 = vpop.f32.mrf.mxu0 }
 0xd98   : > { %v2824_v8 = vadd.f32 %v2817_v7, %v2708_v22  ;;  %v6744_v7 = vmov 65535  }
 0xd99   : > { %v6209_v9 = vpop.f32.mrf.mxu0 }
 0xd9b   : > { %v2820_v10 = vpop.f32.mrf.mxu0 }
 0xd9c   : > { %v2825_v34 = vadd.f32 %v2820_v10, %v2709_v26 }
 0xd9d   : > { %v6210_v35 = vpop.f32.mrf.mxu0 }
 0xda7   : > { %v2871_v36 = vpop.f32.mrf.mxu0 }
 0xda9   : > { %v6221_v3 = vpop.f32.mrf.mxu0 }
 0xdaa   : > { %v5342_v3 = vld [vmem:[%s7950_s7 + $0x1] sm:$0x1] }
 0xdab   : > { %v2874_v37 = vpop.f32.mrf.mxu0 }
 0xdac   : > { %v2878_v38 = vpack.c.bf16 %v2874_v37, %v2871_v36  ;;  %v3302_v37 = vld [vmem:[%s7950_s7] sm:$0x1] }
 0xdad   : > { %v6222_v39 = vpop.f32.mrf.mxu0 }
 0xdae   : > { %6228 = vmatmul.mubr.msk.bf16.vlgmr.msra.gmra.mxu1 %vm1565_vm4, %v2878_v38  ;;  %v6583_v38 = vld [vmem:[%s7951_s8 + $0x38] sm:$0xff]  }
 0xdaf   : > { %6232 = vmatpush3.bf16.msra.mxu1 %v7100_v20  ;;  %6239 = vmatprep.mubr.msk.bf16.mxu1 %vm6743_vm3, %v6742_v62  ;;  %v6585_v39 = vld [vmem:[%s7951_s8 + $0x18] sm:$0xff]  }
 0xdb0   : > { %6233 = vmatprep.subr.bf16.mxu1 %v6742_v62 }
 0xdb3   : > { %6234 = vmatpush3.bf16.msra.mxu1 %v7107_v4 }
 0xdb4   : > { %6235 = vmatprep.subr.bf16.mxu1 %v6742_v62 }
 0xdb7   : > { %6236 = vmatpush3.bf16.msra.mxu1 %v7096_v24 }
 0xdb8   : > { %6237 = vmatprep.subr.bf16.mxu1 %v6742_v62 }
 0xdbb   : > { %6238 = vmatpush3.bf16.msra.mxu1 %v7117_v40 }
 0xdbc   : > { %6263 = vmatprep.subr.bf16.mxu1 %v6742_v62 }
 0xdbe   : > { %6240 = vmatmul.mubr.msk.bf16.vlgmr.msra.gmra.mxu1 %vm777_vm2, %v6574_v41  ;;  %v6584_v41 = vld [vmem:[%s7951_s8 + $0x30] sm:$0xff]  }
 0xdbf   : > { %6267 = vmatprep.mubr.msk.bf16.mxu1 %vm6743_vm3, %v6742_v62  ;;  %6264 = vmatpush3.bf16.msra.mxu1 %v6578_v56  ;;  %v6592_v56 = vld [vmem:[%s7951_s8 + $0x50] sm:$0xff]  }
 0xdc0   : > { %6265 = vmatprep.subr.bf16.mxu1 %v6742_v62 }
 0xdc3   : > { %6266 = vmatpush3.bf16.msra.mxu1 %v6579_v57 }
 0xdc4   : > { %6271 = vmatprep.subr.bf16.mxu1 %v6742_v62 }
 0xe6e   : > { %v2933_v44 = vpop.f32.mrf.mxu1 }
 0xe6f   : > { %v2940_v45 = vadd.f32 %v2933_v44, %v2824_v8  ;;  %v3309_v8 = vsel %vm3307_vm5, 4294967295, %v6744_v7  ;;  %v6588_v44 = vld [vmem:[%s7951_s8 + $0x20] sm:$0xff]  }
 0xe70   : > { %v6229_v46 = vpop.f32.mrf.mxu1  ;;  %v6603_v7 = vld [vmem:[%s7951_s8 + $0x80] sm:$0xff]  }
 0xe71   : > { %v6590_v46 = vld [vmem:[%s7951_s8] sm:$0xff]  }
 0xe72   : > { %v2936_v47 = vpop.f32.mrf.mxu1 }
 0xe73   : > { %v2941_v48 = vadd.f32 %v2936_v47, %v2825_v34  ;;  %v3310_v34 = vsel %vm3308_vm6, %v3309_v8, 0  ;;  %v6604_v8 = vld [vmem:[%s7951_s8 + $0xb0] sm:$0xff]  }
 0xe74   : > { %v6230_v49 = vpop.f32.mrf.mxu1 }
 0xe7e   : > { %v2987_v50 = vpop.f32.mrf.mxu1 }
 0xe80   : > { %v6241_v51 = vpop.f32.mrf.mxu1 }
 0xe81   : > { %v6591_v51 = vld [vmem:[%s7951_s8 + $0x58] sm:$0xff]  }
 0xe82   : > { %v2990_v52 = vpop.f32.mrf.mxu1 }
 0xe83   : > { %v2994_v53 = vpack.c.bf16 %v2990_v52, %v2987_v50 }
 0xe84   : > { %v6242_v54 = vpop.f32.mrf.mxu1 }
 0xe85   : > { %6248 = vmatmul.mubr.msk.bf16.vlgmr.msra.gmra.mxu0 %vm1565_vm4, %v2994_v53 }
 0xe86   : > { %6252 = vmatpush3.bf16.msra.mxu0 %v7100_v20  ;;  %6259 = vmatprep.mubr.msk.bf16.mxu0 %vm6743_vm3, %v6742_v62 }
 0xe87   : > { %6253 = vmatprep.subr.bf16.mxu0 %v6742_v62 }
 0xe8a   : > { %6254 = vmatpush3.bf16.msra.mxu0 %v7107_v4 }
 0xe8b   : > { %6255 = vmatprep.subr.bf16.mxu0 %v6742_v62 }
 0xe8e   : > { %6256 = vmatpush3.bf16.msra.mxu0 %v7096_v24 }
 0xe8f   : > { %6257 = vmatprep.subr.bf16.mxu0 %v6742_v62 }
 0xe92   : > { %6258 = vmatpush3.bf16.msra.mxu0 %v7117_v40 }
 0xe93   : > { %6283 = vmatprep.subr.bf16.mxu0 %v6742_v62 }
 0xe95   : > { %6260 = vmatmul.mubr.msk.bf16.vlgmr.msra.gmra.mxu0 %vm777_vm2, %v6577_v55 }
 0xe96   : > { %6287 = vmatprep.mubr.msk.bf16.mxu0 %vm6743_vm3, %v6742_v62 }
 0xf45   : > { %v3049_v58 = vpop.f32.mrf.mxu0 }
 0xf46   : > { %v3056_v59 = vadd.f32 %v3049_v58, %v2940_v45  ;;  %v6589_v45 = vld [vmem:[%s7951_s8 + $0x8] sm:$0xff]  }
 0xf47   : > { %v6249_v60 = vpop.f32.mrf.mxu0 }
 0xf48   : > { %v5377_v60 = vld [vmem:[%s7950_s7 + $0x3] sm:$0x1] }
 0xf49   : > { %v3052_v61 = vpop.f32.mrf.mxu0 }
 0xf4a   : > { %v3057_v63 = vadd.f32 %v3052_v61, %v2941_v48  ;;  %v6593_v61 = vld [vmem:[%s7951_s8 + $0x48] sm:$0xff]  }
 0xf4b   : > { %v6250_v0 = vpop.f32.mrf.mxu0 }
 0xf4c   : > { %v6595_v0 = vld [vmem:[%s7951_s8 + $0x40] sm:$0xff]  }
 0xf55   : > { %v3103_v1 = vpop.f32.mrf.mxu0 }
 0xf57   : > { %v6261_v11 = vpop.f32.mrf.mxu0 }
 0xf58   : > { %v6597_v11 = vld [vmem:[%s7951_s8 + $0x68] sm:$0xff]  }
 0xf59   : > { %v3106_v12 = vpop.f32.mrf.mxu0 }
 0xf5a   : > { %v3110_v13 = vpack.c.bf16 %v3106_v12, %v3103_v1  ;;  %v6596_v1 = vld [vmem:[%s7951_s8 + $0x70] sm:$0xff]   ;;  %v6598_v12 = vld [vmem:[%s7951_s8 + $0x60] sm:$0xff]  }
 0xf5b   : > { %v6262_v14 = vpop.f32.mrf.mxu0 }
 0xf5c   : > { %6268 = vmatmul.mubr.msk.bf16.vlgmr.msra.gmra.mxu1 %vm1565_vm4, %v3110_v13 }
 0xf5d   : > { %6272 = vmatpush3.bf16.msra.mxu1 %v7100_v20  ;;  %6279 = vmatprep.mubr.msk.bf16.mxu1 %vm6743_vm3, %v6742_v62  ;;  %v6581_v20 = vld [vmem:[%s7948_s5 + $0xf8] sm:$0xff]  }
 0xf5e   : > { %6273 = vmatprep.subr.bf16.mxu1 %v6742_v62  ;;  %6284 = vmatpush3.bf16.msra.mxu0 %v6581_v20 }
 0xf5f   : > { %6285 = vmatprep.subr.bf16.mxu0 %v6742_v62 }
 0xf61   : > { %6274 = vmatpush3.bf16.msra.mxu1 %v7107_v4 }
 0xf62   : > { %6275 = vmatprep.subr.bf16.mxu1 %v6742_v62 }
 0xf65   : > { %6276 = vmatpush3.bf16.msra.mxu1 %v7096_v24  ;;  %v6582_v24 = vld [vmem:[%s7948_s5 + $0xf0] sm:$0xff]  }
 0xf66   : > { %6277 = vmatprep.subr.bf16.mxu1 %v6742_v62  ;;  %6286 = vmatpush3.bf16.msra.mxu0 %v6582_v24 }
 0xf67   : > { %6291 = vmatprep.subr.bf16.mxu0 %v6742_v62 }
 0xf69   : > { %6278 = vmatpush3.bf16.msra.mxu1 %v7117_v40 }
 0xf6a   : > { %6297 = vmatprep.subr.bf16.mxu1 %v6742_v62 }
 0xf6c   : > { %6280 = vmatmul.mubr.msk.bf16.vlgmr.msra.gmra.mxu1 %vm777_vm2, %v6580_v15 }
 0xf6d   : > { %6299 = vmatprep.mubr.msk.bf16.mxu1 %vm6743_vm3, %v6742_v62 }
0x101c   : > { %v3165_v4 = vpop.f32.mrf.mxu1 }
0x101d   : > { %v3172_v40 = vadd.f32 %v3165_v4, %v3056_v59  ;;  %v5362_v59 = vld [vmem:[%s7950_s7 + $0x2] sm:$0x1] }
0x101e   : > { %v6269_v16 = vpop.f32.mrf.mxu1 }
0x1020   : > { %v3168_v17 = vpop.f32.mrf.mxu1 }
0x1021   : > { %v3173_v18 = vadd.f32 %v3168_v17, %v3057_v63  ;;  %v6594_v63 = vld [vmem:[%s7951_s8 + $0x78] sm:$0xff]  }
0x1022   : > { %v6270_v19 = vpop.f32.mrf.mxu1 }
0x102c   : > { %v3219_v21 = vpop.f32.mrf.mxu1 }
0x102e   : > { %v6281_v22 = vpop.f32.mrf.mxu1 }
0x1030   : > { %v3222_v23 = vpop.f32.mrf.mxu1 }
0x1031   : > { %v3226_v25 = vpack.c.bf16 %v3222_v23, %v3219_v21 }
0x1032   : > { %v6282_v26 = vpop.f32.mrf.mxu1 }
0x1033   : > { %6288 = vmatmul.mubr.msk.bf16.vlgmr.msra.gmra.mxu0 %vm1565_vm4, %v3226_v25  ;;  %v5392_v26 = vld [vmem:[%s7950_s7 + $0x4] sm:$0x1] }
0x1034   : > { %6293 = vmatprep.mubr.msk.bf16.mxu0 %vm6743_vm3, %v6742_v62 }
0x10f3   : > { %v3281_v27 = vpop.f32.mrf.mxu0 }
0x10f4   : > { %v3288_v28 = vadd.f32 %v3281_v27, %v3172_v40 }
0x10f5   : > { %v6289_v30 = vpop.f32.mrf.mxu0 }
0x10f6   : > { %v3297_v32 = vadd.f32 %v5340_v29, %v3288_v28  ;;  %v6599_v28 = vld [vmem:[%s7951_s8 + $0x98] sm:$0xff]  }
0x10f7   : > { %v3284_v31 = vpop.f32.mrf.mxu0 }
0x10f8   : > { %v3289_v33 = vadd.f32 %v3284_v31, %v3173_v18  ;;  %v3299_v9 = vmax.f32 %v3297_v32, 0.0  ;;  %v6600_v31 = vld [vmem:[%s7951_s8 + $0x90] sm:$0xff]  }
0x10f9   : > { %v6290_v5 = vpop.f32.mrf.mxu0 }
0x10fa   : > { %v3298_v6 = vadd.f32 %v5340_v29, %v3289_v33  ;;  %v5407_v33 = vld [vmem:[%s7950_s7 + $0x5] sm:$0x1]  ;;  %v6601_v5 = vld [vmem:[%s7951_s8 + $0x88] sm:$0xff]  }
0x10fc   : > { %v3300_v10 = vmax.f32 %v3298_v6, 0.0  ;;  %v6602_v6 = vld [vmem:[%s7951_s8 + $0xb8] sm:$0xff]  }
0x10fe   : > { %v3301_v35 = vpack.c.bf16 %v3300_v10, %v3299_v9  ;;  %v6605_v9 = vld [vmem:[%s7951_s8 + $0xa8] sm:$0xff]   ;;  %v6606_v10 = vld [vmem:[%s7951_s8 + $0xa0] sm:$0xff]  }
0x1100   : > { %v7510_v36 = vand.u32 %v3310_v34, %v3301_v35 }
0x1102   : > { %6292 = vmatpush3.bf16.msra.mxu0 %v7510_v36  ;;  %6298 = vmatpush3.bf16.msra.mxu1 %v7510_v36 }
0x1103   : > { %6303 = vmatprep.subr.bf16.mxu0 %v6742_v62  ;;  %6315 = vmatprep.subr.bf16.mxu1 %v6742_v62 }
0x1105   : > { %6300 = vmatmul.mubr.msk.bf16.vlgmr.msra.gmra.mxu1 %vm3303_vm7, %v5342_v3  ;;  %6294 = vmatmul.mubr.msk.bf16.vlgmr.msra.gmra.mxu0 %vm3303_vm7, %v3302_v37 }
0x1106   : > { %6304 = vmatpush3.bf16.msra.mxu0 %v6583_v38  ;;  %6316 = vmatpush3.bf16.msra.mxu1 %v6585_v39 }
0x1107   : > { %6305 = vmatprep.subr.bf16.mxu0 %v6742_v62  ;;  %6317 = vmatprep.subr.bf16.mxu1 %v6742_v62 }
0x1108   : > { %6311 = vmatprep.mubr.msk.bf16.mxu0 %vm6743_vm3, %v6742_v62  ;;  %6323 = vmatprep.mubr.msk.bf16.mxu1 %vm6743_vm3, %v6742_v62 }
0x110a   : > { %6306 = vmatpush3.bf16.msra.mxu0 %v6584_v41  ;;  %6318 = vmatpush3.bf16.msra.mxu1 %v6587_v42 }
0x110b   : > { %6307 = vmatprep.subr.bf16.mxu0 %v6742_v62  ;;  %6319 = vmatprep.subr.bf16.mxu1 %v6742_v62 }
0x110e   : > { %6308 = vmatpush3.bf16.msra.mxu0 %v6586_v43  ;;  %6320 = vmatpush3.bf16.msra.mxu1 %v6589_v45 }
0x110f   : > { %6309 = vmatprep.subr.bf16.mxu0 %v6742_v62  ;;  %6321 = vmatprep.subr.bf16.mxu1 %v6742_v62 }
0x1112   : > { %6310 = vmatpush3.bf16.msra.mxu0 %v6588_v44  ;;  %6322 = vmatpush3.bf16.msra.mxu1 %v6590_v46 }
0x1113   : > { %6327 = vmatprep.subr.bf16.mxu0 %v6742_v62  ;;  %6333 = vmatprep.subr.bf16.mxu1 %v6742_v62 }
0x11c5   : > { %v3402_v47 = vpop.f32.mrf.mxu1  ;;  %v3348_v48 = vpop.f32.mrf.mxu0 }
0x11c6   : > { %v3408_v49 = vpack.c.bf16 %v3402_v47, %v3402_v47  ;;  %v3354_v50 = vpack.c.bf16 %v3348_v48, %v3348_v48 }
0x11c7   : > { %v6301_v52 = vpop.f32.mrf.mxu1  ;;  %v6295_v53 = vpop.f32.mrf.mxu0 }
0x11c8   : > { %6312 = vmatmul.mubr.msk.bf16.vlgmr.msra.gmra.mxu0 %vm777_vm2, %v3408_v49  ;;  %6324 = vmatmul.mubr.msk.bf16.vlgmr.msra.gmra.mxu1 %vm777_vm2, %v3354_v50  ;;  %v6607_v53 = vld [vmem:[%s7951_s8 + $0xd8] sm:$0xff]  }
0x11c9   : > { %6328 = vmatpush3.bf16.msra.mxu0 %v7510_v36  ;;  %v3405_v54 = vpop.f32.mrf.mxu1  ;;  %6329 = vmatprep.mubr.msk.bf16.mxu0 %vm6743_vm3, %v6742_v62  ;;  %v3351_v55 = vpop.f32.mrf.mxu0 }
0x11ca   : > { %6345 = vmatprep.subr.bf16.mxu0 %v6742_v62  ;;  %6334 = vmatpush3.bf16.msra.mxu1 %v6591_v51  ;;  %v5422_v51 = vld [vmem:[%s7950_s7 + $0x6] sm:$0x1] }
0x11cb   : > { %v6302_v57 = vpop.f32.mrf.mxu1  ;;  %v6296_v58 = vpop.f32.mrf.mxu0  ;;  %6335 = vmatprep.subr.bf16.mxu1 %v6742_v62  ;;  %6341 = vmatprep.mubr.msk.bf16.mxu1 %vm6743_vm3, %v6742_v62 }
0x11cc   : > { %v5437_v58 = vld [vmem:[%s7950_s7 + $0x7] sm:$0x1] }
0x11ce   : > { %6336 = vmatpush3.bf16.msra.mxu1 %v6592_v56  ;;  %v6608_v56 = vld [vmem:[%s7951_s8 + $0xd0] sm:$0xff]  }
0x11cf   : > { %6337 = vmatprep.subr.bf16.mxu1 %v6742_v62 }
0x11d0   : > { %6330 = vmatmul.mubr.msk.bf16.vlgmr.msra.gmra.mxu0 %vm3303_vm7, %v5362_v59  ;;  %v6609_v59 = vld [vmem:[%s7951_s8 + $0xc8] sm:$0xff]  }
0x11d1   : > { %6346 = vmatpush3.bf16.msra.mxu0 %v7510_v36  ;;  %6347 = vmatprep.mubr.msk.bf16.mxu0 %vm6743_vm3, %v6742_v62 }
0x11d2   : > { %6351 = vmatprep.subr.bf16.mxu0 %v6742_v62  ;;  %6338 = vmatpush3.bf16.msra.mxu1 %v6593_v61  ;;  %v6611_v61 = vld [vmem:[%s7951_s8 + $0xc0] sm:$0xff]  }
0x11d3   : > { %6339 = vmatprep.subr.bf16.mxu1 %v6742_v62 }
0x11d6   : > { %6340 = vmatpush3.bf16.msra.mxu1 %v6595_v0  ;;  %v6613_v0 = vld [vmem:[%s7951_s8 + $0xe8] sm:$0xff]  }
0x11d7   : > { %6363 = vmatprep.subr.bf16.mxu1 %v6742_v62 }
0x11d8   : > { %6348 = vmatmul.mubr.msk.bf16.vlgmr.msra.gmra.mxu0 %vm3303_vm7, %v5377_v60  ;;  %v6610_v60 = vld [vmem:[%s7951_s8 + $0xf8] sm:$0xff]  }
0x11d9   : > { %6359 = vmatprep.mubr.msk.bf16.mxu0 %vm6743_vm3, %v6742_v62  ;;  %6352 = vmatpush3.bf16.msra.mxu0 %v6594_v63  ;;  %v6612_v63 = vld [vmem:[%s7951_s8 + $0xf0] sm:$0xff]  }
0x11da   : > { %6353 = vmatprep.subr.bf16.mxu0 %v6742_v62 }
0x11dd   : > { %6354 = vmatpush3.bf16.msra.mxu0 %v6596_v1  ;;  %v6614_v1 = vld [vmem:[%s7951_s8 + $0xe0] sm:$0xff]  }
0x11de   : > { %6355 = vmatprep.subr.bf16.mxu0 %v6742_v62 }
0x11e1   : > { %6356 = vmatpush3.bf16.msra.mxu0 %v6597_v11 }
0x11e2   : > { %6357 = vmatprep.subr.bf16.mxu0 %v6742_v62 }
0x11e5   : > { %6358 = vmatpush3.bf16.msra.mxu0 %v6598_v12 }
0x11e6   : > { %6381 = vmatprep.subr.bf16.mxu0 %v6742_v62 }
0x1288   : > { %v3479_v13 = vpop.f32.mrf.mxu0  ;;  %v3546_v14 = vpop.f32.mrf.mxu1 }
0x1289   : > { %v3547_v15 = vadd.f32 %v3546_v14, %v3479_v13 }
0x128a   : > { %v6313_v20 = vpop.f32.mrf.mxu0  ;;  %v6325_v24 = vpop.f32.mrf.mxu1 }
0x128c   : > { %v3482_v4 = vpop.f32.mrf.mxu0  ;;  %v3549_v40 = vpop.f32.mrf.mxu1 }
0x128e   : > { %v6314_v16 = vpop.f32.mrf.mxu0  ;;  %v6326_v17 = vpop.f32.mrf.mxu1 }
0x1290   : > { %v3591_v18 = vpop.f32.mrf.mxu0 }
0x1291   : > { %v3597_v19 = vpack.c.bf16 %v3591_v18, %v3591_v18 }
0x1292   : > { %v6331_v21 = vpop.f32.mrf.mxu0 }
0x1293   : > { %6342 = vmatmul.mubr.msk.bf16.vlgmr.msra.gmra.mxu1 %vm777_vm2, %v3597_v19 }
0x1294   : > { %6364 = vmatpush3.bf16.msra.mxu1 %v7510_v36  ;;  %v3594_v22 = vpop.f32.mrf.mxu0  ;;  %6365 = vmatprep.mubr.msk.bf16.mxu1 %vm6743_vm3, %v6742_v62 }
0x1295   : > { %6369 = vmatprep.subr.bf16.mxu1 %v6742_v62 }
0x1296   : > { %v6332_v23 = vpop.f32.mrf.mxu0 }
0x1298   : > { %v3714_v25 = vpop.f32.mrf.mxu0 }
0x1299   : > { %v3720_v27 = vpack.c.bf16 %v3714_v25, %v3714_v25  ;;  %v5452_v25 = vld [vmem:[%s7950_s7 + $0x8] sm:$0x1] }
0x129a   : > { %v6349_v29 = vpop.f32.mrf.mxu0 }
0x129b   : > { %6360 = vmatmul.mubr.msk.bf16.vlgmr.msra.gmra.mxu0 %vm777_vm2, %v3720_v27  ;;  %6366 = vmatmul.mubr.msk.bf16.vlgmr.msra.gmra.mxu1 %vm3303_vm7, %v5392_v26  ;;  %v6615_v26 = vld [vmem:[%s7951_s8 + $0x118] sm:$0xff]  }
0x129c   : > { %6382 = vmatpush3.bf16.msra.mxu0 %v7510_v36  ;;  %6383 = vmatprep.mubr.msk.bf16.mxu0 %vm6743_vm3, %v6742_v62  ;;  %v3717_v30 = vpop.f32.mrf.mxu0 }
0x129d   : > { %6370 = vmatpush3.bf16.msra.mxu1 %v6599_v28  ;;  %6387 = vmatprep.subr.bf16.mxu0 %v6742_v62  ;;  %v6616_v30 = vld [vmem:[%s7951_s8 + $0x110] sm:$0xff]  }
0x129e   : > { %6371 = vmatprep.subr.bf16.mxu1 %v6742_v62  ;;  %v6350_v32 = vpop.f32.mrf.mxu0  ;;  %6377 = vmatprep.mubr.msk.bf16.mxu1 %vm6743_vm3, %v6742_v62 }
0x129f   : > { %v6618_v32 = vld [vmem:[%s7951_s8 + $0x100] sm:$0xff]  }
0x12a1   : > { %6372 = vmatpush3.bf16.msra.mxu1 %v6600_v31  ;;  %v6617_v31 = vld [vmem:[%s7951_s8 + $0x108] sm:$0xff]  }
0x12a2   : > { %6373 = vmatprep.subr.bf16.mxu1 %v6742_v62 }
0x12a3   : > { %6384 = vmatmul.mubr.msk.bf16.vlgmr.msra.gmra.mxu0 %vm3303_vm7, %v5407_v33  ;;  %v6619_v33 = vld [vmem:[%s7953_s10 + $0x60] ss:$16 sps:$4 sm:$0xff]  }
0x12a4   : > { %6395 = vmatprep.mubr.msk.bf16.mxu0 %vm6743_vm3, %v6742_v62  ;;  %6388 = vmatpush3.bf16.msra.mxu0 %v6602_v6  ;;  %v6624_v6 = vld [vmem:[%s7953_s10 + $0x6c] ss:$16 sps:$4 sm:$0xff]  }
0x12a5   : > { %6374 = vmatpush3.bf16.msra.mxu1 %v6601_v5  ;;  %6389 = vmatprep.subr.bf16.mxu0 %v6742_v62  ;;  %v6621_v5 = vld [vmem:[%s7953_s10 + $0x64] ss:$16 sps:$4 sm:$0xff]  }
0x12a6   : > { %6375 = vmatprep.subr.bf16.mxu1 %v6742_v62 }
0x12a8   : > { %6390 = vmatpush3.bf16.msra.mxu0 %v6604_v8 }
0x12a9   : > { %6376 = vmatpush3.bf16.msra.mxu1 %v6603_v7  ;;  %6391 = vmatprep.subr.bf16.mxu0 %v6742_v62  ;;  %v6625_v7 = vld [vmem:[%s7953_s10 + $0x40] ss:$16 sps:$4 sm:$0xff]  }
0x12aa   : > { %6399 = vmatprep.subr.bf16.mxu1 %v6742_v62 }
0x12ac   : > { %6392 = vmatpush3.bf16.msra.mxu0 %v6605_v9 }
0x12ad   : > { %6393 = vmatprep.subr.bf16.mxu0 %v6742_v62 }
0x12b0   : > { %6394 = vmatpush3.bf16.msra.mxu0 %v6606_v10 }
0x12b1   : > { %6417 = vmatprep.subr.bf16.mxu0 %v6742_v62 }
0x1353   : > { %v3668_v34 = vpop.f32.mrf.mxu1 }
0x1354   : > { %v3674_v35 = vadd.f32 %v3668_v34, %v3547_v15 }
0x1355   : > { %v6343_v3 = vpop.f32.mrf.mxu1 }
0x1357   : > { %v3671_v37 = vpop.f32.mrf.mxu1 }
0x1359   : > { %v6344_v38 = vpop.f32.mrf.mxu1 }
0x135a   : > { %v6622_v38 = vld [vmem:[%s7953_s10 + $0x68] ss:$16 sps:$4 sm:$0xff]  }
0x135b   : > { %v3791_v39 = vpop.f32.mrf.mxu0  ;;  %v3837_v41 = vpop.f32.mrf.mxu1 }
0x135c   : > { %v3797_v42 = vadd.f32 %v3791_v39, %v3674_v35  ;;  %v3843_v43 = vpack.c.bf16 %v3837_v41, %v3837_v41 }
0x135d   : > { %v6361_v44 = vpop.f32.mrf.mxu0  ;;  %v6367_v45 = vpop.f32.mrf.mxu1 }
0x135e   : > { %6378 = vmatmul.mubr.msk.bf16.vlgmr.msra.gmra.mxu1 %vm777_vm2, %v3843_v43 }
0x135f   : > { %6400 = vmatpush3.bf16.msra.mxu1 %v7510_v36  ;;  %v3794_v46 = vpop.f32.mrf.mxu0  ;;  %v3840_v47 = vpop.f32.mrf.mxu1  ;;  %6401 = vmatprep.mubr.msk.bf16.mxu1 %vm6743_vm3, %v6742_v62 }
0x1360   : > { %6405 = vmatprep.subr.bf16.mxu1 %v6742_v62  ;;  %v6628_v46 = vld [vmem:[%s7953_s10 + $0x48] ss:$16 sps:$4 sm:$0xff]  }
0x1361   : > { %v6362_v48 = vpop.f32.mrf.mxu0  ;;  %v6368_v49 = vpop.f32.mrf.mxu1 }
0x1363   : > { %v3960_v50 = vpop.f32.mrf.mxu0 }
0x1364   : > { %v3966_v52 = vpack.c.bf16 %v3960_v50, %v3960_v50  ;;  %v6633_v50 = vld [vmem:[%s7953_s10 + $0x24] ss:$16 sps:$4 sm:$0xff]  }
0x1365   : > { %v6385_v54 = vpop.f32.mrf.mxu0 }
0x1366   : > { %6396 = vmatmul.mubr.msk.bf16.vlgmr.msra.gmra.mxu0 %vm777_vm2, %v3966_v52  ;;  %6402 = vmatmul.mubr.msk.bf16.vlgmr.msra.gmra.mxu1 %vm3303_vm7, %v5422_v51  ;;  %v6636_v51 = vld [vmem:[%s7953_s10 + $0x2c] ss:$16 sps:$4 sm:$0xff]   ;;  %v6631_v52 = vld [vmem:[%s7953_s10 + $0x20] ss:$16 sps:$4 sm:$0xff]  }
0x1367   : > { %6418 = vmatpush3.bf16.msra.mxu0 %v7510_v36  ;;  %6419 = vmatprep.mubr.msk.bf16.mxu0 %vm6743_vm3, %v6742_v62  ;;  %v3963_v55 = vpop.f32.mrf.mxu0  ;;  %v6642_v54 = vld [vmem:[%s7953_s10 + $0xc] ss:$16 sps:$4 sm:$0xff]  }
0x1368   : > { %6406 = vmatpush3.bf16.msra.mxu1 %v6607_v53  ;;  %6423 = vmatprep.subr.bf16.mxu0 %v6742_v62  ;;  %v6639_v53 = vld [vmem:[%s7953_s10 + $0x4] ss:$16 sps:$4 sm:$0xff]   ;;  %v6637_v55 = vld [vmem:[%s7953_s10] ss:$16 sps:$4 sm:$0xff]  }
0x1369   : > { %6407 = vmatprep.subr.bf16.mxu1 %v6742_v62  ;;  %v6386_v57 = vpop.f32.mrf.mxu0  ;;  %6413 = vmatprep.mubr.msk.bf16.mxu1 %vm6743_vm3, %v6742_v62 }
0x136a   : > { %v6643_v57 = vld [vmem:[%s7955_s12 + $0x78] sm:$0xff]  }
0x136c   : > { %6408 = vmatpush3.bf16.msra.mxu1 %v6608_v56  ;;  %v6640_v56 = vld [vmem:[%s7953_s10 + $0x8] ss:$16 sps:$4 sm:$0xff]  }
0x136d   : > { %6409 = vmatprep.subr.bf16.mxu1 %v6742_v62 }
0x136e   : > { %6420 = vmatmul.mubr.msk.bf16.vlgmr.msra.gmra.mxu0 %vm3303_vm7, %v5437_v58  ;;  %v6644_v58 = vld [vmem:[%s7955_s12 + $0xf8] sm:$0xff]  }
0x136f   : > { %6431 = vmatprep.mubr.msk.bf16.mxu0 %vm6743_vm3, %v6742_v62  ;;  %6424 = vmatpush3.bf16.msra.mxu0 %v6610_v60  ;;  %v4413_v60 = vld [vmem:[%s7952_s9] sm:$0x1] }
0x1370   : > { %6410 = vmatpush3.bf16.msra.mxu1 %v6609_v59  ;;  %6425 = vmatprep.subr.bf16.mxu0 %v6742_v62 }
0x1371   : > { %6411 = vmatprep.subr.bf16.mxu1 %v6742_v62 }
0x1373   : > { %6426 = vmatpush3.bf16.msra.mxu0 %v6612_v63 }
0x1374   : > { %6412 = vmatpush3.bf16.msra.mxu1 %v6611_v61  ;;  %6427 = vmatprep.subr.bf16.mxu0 %v6742_v62 }
0x1375   : > { %6435 = vmatprep.subr.bf16.mxu1 %v6742_v62 }
0x1377   : > { %6428 = vmatpush3.bf16.msra.mxu0 %v6613_v0 }
0x1378   : > { %6429 = vmatprep.subr.bf16.mxu0 %v6742_v62 }
0x137b   : > { %6430 = vmatpush3.bf16.msra.mxu0 %v6614_v1 }
0x137c   : > { %4546 = vmatprep.subr.bf16.mxu0 %v6621_v5  ;;  %v6668_v5 = vld [vmem:[%s7955_s12 + $0xc8] sm:$0xff]  }
0x141e   : > { %v3914_v11 = vpop.f32.mrf.mxu1 }
0x141f   : > { %v3920_v12 = vadd.f32 %v3914_v11, %v3797_v42  ;;  %v6630_v42 = vld [vmem:[%s7953_s10 + $0x4c] ss:$16 sps:$4 sm:$0xff]  }
0x1420   : > { %v6379_v13 = vpop.f32.mrf.mxu1 }
0x1421   : > { %v6645_v13 = vld [vmem:[%s7955_s12 + $0x38] sm:$0xff]  }
0x1422   : > { %v3917_v14 = vpop.f32.mrf.mxu1 }
0x1423   : > { %v6646_v14 = vld [vmem:[%s7955_s12 + $0xb8] sm:$0xff]  }
0x1424   : > { %v6380_v15 = vpop.f32.mrf.mxu1 }
0x1426   : > { %v4037_v20 = vpop.f32.mrf.mxu0  ;;  %v4083_v24 = vpop.f32.mrf.mxu1 }
0x1427   : > { %v4043_v4 = vadd.f32 %v4037_v20, %v3920_v12  ;;  %v4089_v40 = vpack.c.bf16 %v4083_v24, %v4083_v24  ;;  %v6647_v20 = vld [vmem:[%s7955_s12 + $0x70] sm:$0xff]  }
0x1428   : > { %v6397_v16 = vpop.f32.mrf.mxu0  ;;  %v6403_v17 = vpop.f32.mrf.mxu1  ;;  %v6648_v24 = vld [vmem:[%s7955_s12 + $0xf0] sm:$0xff]  }
0x1429   : > { %6414 = vmatmul.mubr.msk.bf16.vlgmr.msra.gmra.mxu1 %vm777_vm2, %v4089_v40  ;;  %v6650_v40 = vld [vmem:[%s7955_s12 + $0xb0] sm:$0xff]   ;;  %v6651_v16 = vld [vmem:[%s7955_s12 + $0x68] sm:$0xff]  }
0x142a   : > { %6436 = vmatpush3.bf16.msra.mxu1 %v7510_v36  ;;  %v4040_v18 = vpop.f32.mrf.mxu0  ;;  %v4086_v19 = vpop.f32.mrf.mxu1  ;;  %6437 = vmatprep.mubr.msk.bf16.mxu1 %vm6743_vm3, %v6742_v62  ;;  %v6652_v17 = vld [vmem:[%s7955_s12 + $0xe8] sm:$0xff]  }
0x142b   : > { %6441 = vmatprep.subr.bf16.mxu1 %v6742_v62  ;;  %v6653_v18 = vld [vmem:[%s7955_s12 + $0x28] sm:$0xff]  }
0x142c   : > { %v6398_v21 = vpop.f32.mrf.mxu0  ;;  %v6404_v22 = vpop.f32.mrf.mxu1  ;;  %v6654_v19 = vld [vmem:[%s7955_s12 + $0xa8] sm:$0xff]  }
0x142d   : > { %v6655_v21 = vld [vmem:[%s7955_s12 + $0x60] sm:$0xff]  }
0x142e   : > { %v4206_v23 = vpop.f32.mrf.mxu0  ;;  %v6656_v22 = vld [vmem:[%s7955_s12 + $0xe0] sm:$0xff]  }
0x142f   : > { %v4212_v27 = vpack.c.bf16 %v4206_v23, %v4206_v23  ;;  %v6657_v23 = vld [vmem:[%s7955_s12 + $0x20] sm:$0xff]  }
0x1430   : > { %v6421_v36 = vpop.f32.mrf.mxu0 }
0x1431   : > { %6432 = vmatmul.mubr.msk.bf16.vlgmr.msra.gmra.mxu0 %vm777_vm2, %v4212_v27  ;;  %6438 = vmatmul.mubr.msk.bf16.vlgmr.msra.gmra.mxu1 %vm3303_vm7, %v5452_v25  ;;  %v6658_v25 = vld [vmem:[%s7955_s12 + $0xa0] sm:$0xff]   ;;  %v6660_v27 = vld [vmem:[%s7955_s12 + $0xd8] sm:$0xff]  }
0x1432   : > { %6442 = vmatpush3.bf16.msra.mxu1 %v6615_v26  ;;  %v4209_v28 = vpop.f32.mrf.mxu0  ;;  %6449 = vmatprep.mubr.msk.bf16.mxu1 %vm6743_vm3, %v6742_v62  ;;  %v6659_v26 = vld [vmem:[%s7955_s12 + $0x58] sm:$0xff]  }
0x1433   : > { %6443 = vmatprep.subr.bf16.mxu1 %v6742_v62  ;;  %4570 = vmatprep.mubr.bf16.mxu0 %v6741_v2  ;;  %v6661_v36 = vld [vmem:[%s7955_s12 + $0x18] sm:$0xff]  }
0x1434   : > { %v6422_v29 = vpop.f32.mrf.mxu0  ;;  %4547 = vmatpush1.bf16.msra.mxu0 %v6619_v33  ;;  %v6662_v28 = vld [vmem:[%s7955_s12 + $0x98] sm:$0xff]   ;;  %v6667_v33 = vld [vmem:[%s7955_s12 + $0x48] sm:$0xff]  }
0x1435   : > { %v6663_v29 = vld [vmem:[%s7955_s12 + $0x50] sm:$0xff]  }
0x1436   : > { %6444 = vmatpush3.bf16.msra.mxu1 %v6616_v30  ;;  %v6664_v30 = vld [vmem:[%s7955_s12 + $0xd0] sm:$0xff]  }
0x1437   : > { %6445 = vmatprep.subr.bf16.mxu1 %v6742_v62 }
0x143a   : > { %6446 = vmatpush3.bf16.msra.mxu1 %v6617_v31  ;;  %v6665_v31 = vld [vmem:[%s7955_s12 + $0x10] sm:$0xff]  }
0x143b   : > { %6447 = vmatprep.subr.bf16.mxu1 %v6742_v62  ;;  %v6627_v62 = vld [vmem:[%s7953_s10 + $0x44] ss:$16 sps:$4 sm:$0xff]  }
0x143c   : > { %4548 = vmatprep.subr.bf16.mxu0 %v6627_v62  ;;  %v6670_v62 = vld [vmem:[%s7955_s12 + $0x88] sm:$0xff]  }
0x143d   : > { %4549 = vmatpush1.bf16.msra.mxu0 %v6625_v7  ;;  %v6671_v7 = vld [vmem:[%s7955_s12 + $0x40] sm:$0xff]  }
0x143e   : > { %6448 = vmatpush3.bf16.msra.mxu1 %v6618_v32  ;;  %4550 = vmatprep.subr.bf16.mxu0 %v6633_v50  ;;  %v6666_v32 = vld [vmem:[%s7955_s12 + $0x90] sm:$0xff]  }
0x143f   : > { %4587 = vmatprep.subr.bf16.mxu1 %v6624_v6  ;;  %v6669_v6 = vld [vmem:[%s7955_s12 + $0x8] sm:$0xff]  }
0x1441   : > { %4551 = vmatpush1.bf16.msra.mxu0 %v6631_v52 }
0x1442   : > { %4552 = vmatprep.subr.bf16.mxu0 %v6639_v53 }
0x1445   : > { %4553 = vmatpush1.bf16.msra.mxu0 %v6637_v55 }
0x1446   : > { %5783 = vmatprep.subr.bf16.mxu0 %v6643_v57 }
0x14e9   : > { %v4160_v8 = vpop.f32.mrf.mxu1 }
0x14ea   : > { %v4166_v9 = vadd.f32 %v4160_v8, %v4043_v4  ;;  %v6649_v4 = vld [vmem:[%s7955_s12 + $0x30] sm:$0xff]   ;;  %v6672_v8 = vld [vmem:[%s7955_s12 + $0xc0] sm:$0xff]  }
0x14eb   : > { %v6415_v10 = vpop.f32.mrf.mxu1 }
0x14ec   : > { %v6674_v10 = vld [vmem:[%s7955_s12 + $0x80] sm:$0xff]  }
0x14ed   : > { %v4163_v34 = vpop.f32.mrf.mxu1 }
0x14ee   : > { %v4515_v34 = vlaneseq }
0x14ef   : > { %v6416_v35 = vpop.f32.mrf.mxu1 }
0x14f0   : > { %v4516_v35 = vshrl.u32 %v4515_v34, 7 }
0x14f1   : > { %v4283_v3 = vpop.f32.mrf.mxu0  ;;  %v4329_v37 = vpop.f32.mrf.mxu1 }
0x14f2   : > { %v4289_v39 = vadd.f32 %v4283_v3, %v4166_v9  ;;  %v4335_v41 = vpack.c.bf16 %v4329_v37, %v4329_v37  ;;  %v6673_v9 = vld [vmem:[%s7955_s12] sm:$0xff]   ;;  %v4517_v3 = vsub.s32 0, %v4516_v35  ;;  %v4525_v37 = vsub.s32 2, %v4516_v35 }
0x14f3   : > { %v6439_v43 = vpop.f32.mrf.mxu1  ;;  %v6433_v44 = vpop.f32.mrf.mxu0 }
0x14f4   : > { %6450 = vmatmul.mubr.msk.bf16.vlgmr.msra.gmra.mxu1 %vm777_vm2, %v4335_v41  ;;  %v4529_v41 = vsub.s32 3, %v4516_v35 }
0x14f5   : > { %v4332_v45 = vpop.f32.mrf.mxu1  ;;  %4588 = vmatpush1.bf16.msra.mxu1 %v6622_v38  ;;  %v4286_v47 = vpop.f32.mrf.mxu0  ;;  %4611 = vmatprep.mubr.bf16.mxu1 %v6741_v2  ;;  %v6634_v2 = vld [vmem:[%s7953_s10 + $0x28] ss:$16 sps:$4 sm:$0xff]   ;;  %v4433_v38 = vld [vmem:[%s7954_s11] sm:$0xf] }
0x14f6   : > { %4589 = vmatprep.subr.bf16.mxu1 %v6630_v42  ;;  %v4518_v42 = vrot.slane %v4433_v38, %v4517_v3  ;;  %v4526_v43 = vrot.slane %v4433_v38, %v4525_v37  ;;  %v4530_v45 = vrot.slane %v4433_v38, %v4529_v41 }
0x14f7   : > { %v6440_v48 = vpop.f32.mrf.mxu1  ;;  %v6434_v49 = vpop.f32.mrf.mxu0 }
0x14f9   : > { %4590 = vmatpush1.bf16.msra.mxu1 %v6628_v46 }
0x14fa   : > { %4591 = vmatprep.subr.bf16.mxu1 %v6636_v51 }
0x14fd   : > { %4592 = vmatpush1.bf16.msra.mxu1 %v6634_v2 }
0x14fe   : > { %4593 = vmatprep.subr.bf16.mxu1 %v6642_v54 }
0x1501   : > { %4594 = vmatpush1.bf16.msra.mxu1 %v6640_v56 }
0x1502   : > { %5805 = vmatprep.subr.bf16.mxu1 %v6644_v58 }
0x15b4   : > { %v4406_v59 = vpop.f32.mrf.mxu1 }
0x15b5   : > { %v4412_v61 = vadd.f32 %v4406_v59, %v4289_v39  ;;  %v4521_v39 = vsub.s32 1, %v4516_v35 }
0x15b6   : > { %v6451_v63 = vpop.f32.mrf.mxu1 }
0x15b7   : > { %v4414_v0 = vadd.f32 %v4413_v60, %v4412_v61  ;;  %v4522_v44 = vrot.slane %v4433_v38, %v4521_v39 }
0x15b8   : > { %v4409_v1 = vpop.f32.mrf.mxu1 }
0x15b9   : > { %v4415_v11 = vmax.f32 %v4414_v0, 0.0 }
0x15ba   : > { %v6452_v12 = vpop.f32.mrf.mxu1 }
0x15bb   : > { %v4416_v15 = vpack.c.bf16 %v4415_v11, %v4415_v11 }
0x15bd   : > { %5483 = vmatmul.mubr.msk.bf16.vlgmr.msra.gmra.mxu0 %vm777_vm2, %v4416_v15  ;;  %5484 = vmatmul.mubr.msk.bf16.vlgmr.msra.gmra.mxu1 %vm777_vm2, %v4416_v15 }
0x15be   : > { %5784 = vmatpush3.bf16.msra.mxu0 %v6645_v13  ;;  %5806 = vmatpush3.bf16.msra.mxu1 %v6646_v14  ;;  %v4692_v13 = vld [vmem:[%s7956_s13] sm:$0x1] }
0x15bf   : > { %5785 = vmatprep.subr.bf16.mxu0 %v6647_v20  ;;  %5807 = vmatprep.subr.bf16.mxu1 %v6648_v24 }
0x15c2   : > { %5786 = vmatpush3.bf16.msra.mxu0 %v6649_v4  ;;  %5808 = vmatpush3.bf16.msra.mxu1 %v6650_v40 }
0x15c3   : > { %5787 = vmatprep.subr.bf16.mxu0 %v6651_v16  ;;  %5809 = vmatprep.subr.bf16.mxu1 %v6652_v17 }
0x15c6   : > { %5788 = vmatpush3.bf16.msra.mxu0 %v6653_v18  ;;  %5810 = vmatpush3.bf16.msra.mxu1 %v6654_v19 }
0x15c7   : > { %5789 = vmatprep.subr.bf16.mxu0 %v6655_v21  ;;  %5811 = vmatprep.subr.bf16.mxu1 %v6656_v22 }
0x15ca   : > { %5790 = vmatpush3.bf16.msra.mxu0 %v6657_v23  ;;  %5812 = vmatpush3.bf16.msra.mxu1 %v6658_v25 }
0x15cb   : > { %5791 = vmatprep.subr.bf16.mxu0 %v6659_v26  ;;  %5813 = vmatprep.subr.bf16.mxu1 %v6660_v27 }
0x15ce   : > { %5792 = vmatpush3.bf16.msra.mxu0 %v6661_v36  ;;  %5814 = vmatpush3.bf16.msra.mxu1 %v6662_v28 }
0x15cf   : > { %5793 = vmatprep.subr.bf16.mxu0 %v6663_v29  ;;  %5815 = vmatprep.subr.bf16.mxu1 %v6664_v30 }
0x15d2   : > { %5794 = vmatpush3.bf16.msra.mxu0 %v6665_v31  ;;  %5816 = vmatpush3.bf16.msra.mxu1 %v6666_v32 }
0x15d3   : > { %5795 = vmatprep.subr.bf16.mxu0 %v6667_v33  ;;  %5817 = vmatprep.subr.bf16.mxu1 %v6668_v5 }
0x15d6   : > { %5796 = vmatpush3.bf16.msra.mxu0 %v6669_v6  ;;  %5818 = vmatpush3.bf16.msra.mxu1 %v6670_v62 }
0x15d7   : > { %5797 = vmatprep.subr.bf16.mxu0 %v6671_v7  ;;  %5819 = vmatprep.subr.bf16.mxu1 %v6672_v8 }
0x15da   : > { %5798 = vmatpush3.bf16.msra.mxu0 %v6673_v9  ;;  %5820 = vmatpush3.bf16.msra.mxu1 %v6674_v10 }
0x167d   : > { %v4572_v46 = vpop.f32.mrf.mxu0  ;;  %v4613_v47 = vpop.f32.mrf.mxu1 }
0x167e   : > { %v4573_v48 = vadd.f32 %v4572_v46, %v4518_v42  ;;  %v4614_v49 = vadd.f32 %v4613_v47, %v4526_v43 }
0x167f   : > { %v4574_v50 = vpop.f32.mrf.mxu0  ;;  %v4615_v51 = vpop.f32.mrf.mxu1 }
0x1680   : > { %v4575_v52 = vadd.f32 %v4574_v50, %v4522_v44  ;;  %v4616_v2 = vadd.f32 %v4615_v51, %v4530_v45  ;;  %v4620_v53 = vmax.f32 %v4573_v48, 0.0  ;;  %v4622_v54 = vmax.f32 %v4614_v49, 0.0 }
0x1681   : > { %v4576_v55 = vpop.f32.mrf.mxu0  ;;  %v4617_v56 = vpop.f32.mrf.mxu1 }
0x1682   : > { %v4621_v57 = vmax.f32 %v4575_v52, 0.0  ;;  %v4623_v58 = vmax.f32 %v4616_v2, 0.0  ;;  %v4624_v0 = vpack.c.bf16 %v4620_v53, %v4620_v53  ;;  %v4626_v1 = vpack.c.bf16 %v4622_v54, %v4622_v54 }
0x1683   : > { %v4577_v59 = vpop.f32.mrf.mxu0  ;;  %v4618_v60 = vpop.f32.mrf.mxu1 }
0x1684   : > { %v4625_v61 = vpack.c.bf16 %v4621_v57, %v4621_v57  ;;  %v4627_v63 = vpack.c.bf16 %v4623_v58, %v4623_v58 }
0x1686   : > { %4917 = vmatprep.mubr.bf16.mxu0 %v4625_v61  ;;  %4957 = vmatprep.mubr.bf16.mxu1 %v4627_v63 }
0x1687   : > { %4918 = vmatmul.mubr.bf16.vlgmr.msra.gmra.mxu0 %v4624_v0  ;;  %4958 = vmatmul.mubr.bf16.vlgmr.msra.gmra.mxu1 %v4626_v1 }
0x1747   : > { %v5799_v11 = vpop.f32.mrf.mxu0  ;;  %v5821_v12 = vpop.f32.mrf.mxu1 }
0x1749   : > { %v5800_v14 = vpop.f32.mrf.mxu0  ;;  %v5822_v15 = vpop.f32.mrf.mxu1 }
0x174a   : > { %v5801_v20 = vadd.f32 %v5800_v14, %v5799_v11  ;;  %v5823_v16 = vadd.f32 %v5822_v15, %v5821_v12 }
0x174b   : > { %v5802_v24 = vpop.f32.mrf.mxu0  ;;  %v5824_v4 = vpop.f32.mrf.mxu1 }
0x174c   : > { %v4920_v40 = vadd.f32 %v5801_v20, %v4692_v13 }
0x174d   : > { %v5803_v17 = vpop.f32.mrf.mxu0  ;;  %v5825_v18 = vpop.f32.mrf.mxu1 }
0x174e   : > { %v4960_v19 = vadd.f32 %v5823_v16, %v4920_v40 }
0x1750   : > { %v4966_v21 = vsel %vm4965_vm8, %v4960_v19, -inf }
0x1751   : > { %4967 = vmax.xlane.f32.xlu0 %v4966_v21 }
0x17da   : > { %v4968_v22 = vpop.xlane.xlu0 %4967 }
0x17db   : > { %v4969_v23 = vsub.f32 %v4960_v19, %v4968_v22 }
0x17dd   : > { %v4970_v25 = vmul.f32 1.442695, %v4969_v23 }
0x17df   : > { %6675 = vpow2.f32 %v4970_v25 }
0x17ec   : > { %v6676_v26 = vpop.eup %6675 }
0x17ed   : > { %v4972_v27 = vsel %vm4965_vm8, %v6676_v26, 0.0 }
0x17ee   : > { %4973 = vadd.xlane.f32.xlu0 %v4972_v27 }
0x1877   : > { %v4974_v36 = vpop.xlane.xlu0 %4973 }
0x1878   : > { %6677 = vrcp.f32 %v4974_v36 }
0x1885   : > { %v6678_v28 = vpop.eup %6677 }
0x1886   : > { %v4976_v29 = vmul.f32 %v6678_v28, %v6676_v26 }
0x1888   : > { %4977 = vst.msk [vmem:[%s459_s15] sm:$0x1] %vm4965_vm8, %v4976_v29 }
0x1889   : > { %6692 = shalt.err (!%p6689_p3)
}
0x188a   : > { %s6693_s18 = scalar_lea.hbm %s4989_s0, 16  ;;  %s6697_s15 = scalar_lea.hbm %s7957_s14, 32 }
0x188b   : > { %p6694_p4 = scmp.ne.s32.totalorder %s4989_s0, %s6693_s18  ;;  %p6698_p9 = scmp.lt.s32.totalorder %s4989_s0, %s7957_s14 }
0x188c   : > { %p6699_p10 = scmp.lt.s32.totalorder %s6697_s15, %s6693_s18 }
0x188d   : > { %p6695_p7 = pnand %p6694_p4, %p6859_p5 }
0x188e   : > { %p6700_p11 = por %p6699_p10, %p6698_p9 }
0x188f   : > { %p6696_p8 = pneg %p6695_p7 }
0x1891   : > { %p6701_p12 = pnand %p6700_p11, %p6696_p8 }
0x1893   : > { %6704 = shalt.err (!%p6701_p12)
}
0x1894   : > { %6454 = dma.vmem_to_hbm [thread:$0]  (%p6859_p5), %s4992_s28, 16, %s4989_s0, %s4979_s21  }
0x1895 PF: > { %p6460_p13 = scmp.ge.s32.totalorder %s6739_s16, 2  ;;  %s5003_s1 = sand.u32 1, %s6727_s29  }
0x1896   : > { %s5004_s22 = scalar_lea.sflag [#allocation3], %s5003_s1 }
0x1897   : > { %p6457_p0 = pnand %p6460_p13, %p6863_p6 }
0x1899   : > { %p6458_p1 = pneg %p6457_p0 }
0x189b   : > { %6722 = dma.done.wait (%p6458_p1), %s5004_s22, 16  }
0x189c   : > { %6724 = vsyncadd (%p6458_p1), %s5004_s22, 4294967280  ;;  %s7969_s2 = sld [smem:[#allocation5_spill]]  ;;  %p24_p2 = scmp.ge.s32.totalorder %s6846_s19, 4  }
0x189d   : > { %s7970_s15 = sld [smem:[#allocation6_spill]]  ;;  %s7971_s29 = smov %s6731_s30 }
0x189e   : > { %s7973_s16 = smov %s6846_s19  ;;  %26 = sbr.rel (!%p24_p2) target bundleno = 7 (0x7), region = 163 }
0x18a2   : > { %s7972_s30 = smov %s7969_s2 }
0x18a3   :  { %5008 = vsyncpa [#allocation3], 1 }
0x18a4   :  { %5010 = vsyncpa [#allocation3 + $0x1], 1 }

</bundles_post_ra>
